<compile_context>
chip_gen: v7x
topology: tpu7x:2x2x1
jax: 0.10.0
libtpu: 0.0.40
codegen_flags: <defaults>
</compile_context>

<pallas_src>
import functools
import math

import jax
import jax.numpy as jnp
from jax.experimental import pallas as pl
from jax.experimental.pallas import tpu as pltpu

LOG2 = math.log(2.0)


def _ssp(x):
    # PhysNet shifted softplus: log(exp(x) + 1) - log(2)
    return jax.nn.softplus(x) - LOG2


def _round_up(a, b):
    return (a + b - 1) // b * b


def _default_edge_shards():
    # Use both TensorCores for the edge stage on v7x; single core otherwise.
    try:
        kind = jax.devices()[0].device_kind.lower()
    except Exception:
        return 1
    return 2 if "v7" in kind else 1


# --------------------------------------------------------------------------
# Kernel 1: per-edge message + chunked one-hot scatter-add (edge-tile grid)
# --------------------------------------------------------------------------
def edge_aggregate_kernel(xj_ref,        # (te, F)   bf16: ssp(x)[src] (pre-gathered)
                          dst_ref,       # (1, te)   int32 edge targets (-1 = pad)
                          rbf_ref,       # (te, K)   bf16 edge rbf attrs
                          w_diff_t_ref,  # (F, F)    bf16 lin_for_diff.weight^T (in,out)
                          b_diff_ref,    # (1, F)    f32
                          g_w_t_ref,     # (K, F)    bf16 G.weight^T (in,out)
                          aggr_ref,      # (1, N_pad, F) f32 per-shard accumulator
                          *, n_chunk):
    e = pl.program_id(1)

    @pl.when(e == 0)
    def _():
        aggr_ref[...] = jnp.zeros_like(aggr_ref)

    te = xj_ref.shape[0]
    n_pad = aggr_ref.shape[1]

    # message(): activation(lin_for_diff(x_j)) * G(rbf)   (bf16 MXU, f32 acc)
    msg = _ssp(jnp.dot(xj_ref[...], w_diff_t_ref[...],
                       preferred_element_type=jnp.float32) + b_diff_ref[...])
    gate = jnp.dot(rbf_ref[...], g_w_t_ref[...],
                   preferred_element_type=jnp.float32)
    msg_bf = (msg * gate).astype(jnp.bfloat16)                        # (te, F)

    # aggregate (aggr='add'): chunked one-hot scatter-add onto target nodes.
    # bf16 0/1 mask is exact; chunks keep the mask vreg-resident.
    dst_ids = dst_ref[...]                                            # (1, te)
    row_ids = jax.lax.broadcasted_iota(jnp.int32, (n_chunk, te), 0)
    for c in range(n_pad // n_chunk):
        sel = (row_ids + c * n_chunk == dst_ids).astype(jnp.bfloat16)  # (n_chunk, te)
        aggr_ref[0, pl.ds(c * n_chunk, n_chunk), :] += jnp.dot(
            sel, msg_bf, preferred_element_type=jnp.float32)


# --------------------------------------------------------------------------
# Kernel 2: node update + residual stack + output head (node-tile grid)
# --------------------------------------------------------------------------
def node_update_kernel(x_ref,     # (tm, F) f32 raw node embeddings
                       aggr_ref,  # (tm, F) f32 aggregated messages
                       w_ref,     # (2*n_res+2, F, F) bf16 pre-transposed weights
                       b_ref,     # (2*n_res+3, F)    f32 biases + u (last row)
                       out_ref,   # (tm, F) v + x * u
                       msg_ref,   # (tm, F) msged_x
                       *, n_res):
    def lin(h, i):
        # activation -> linear (bf16 MXU operands, f32 accumulation/carry)
        return jnp.dot(_ssp(h).astype(jnp.bfloat16), w_ref[i],
                       preferred_element_type=jnp.float32) + b_ref[i]

    x = x_ref[...]

    # update(): activation(lin_for_same(ssp(x))) + aggr_out
    msged = _ssp(lin(x, 0)) + aggr_ref[...]

    # residual interaction layers (unrolled, static trip count)
    t = msged
    for i in range(n_res):
        y = lin(t, 1 + 2 * i)
        y = lin(y, 2 + 2 * i)
        t = t + y

    # output head: activation -> lin_last -> + x * u
    v = lin(t, 1 + 2 * n_res)
    out_ref[...] = (v + x * b_ref[2 + 2 * n_res]).astype(out_ref.dtype)
    msg_ref[...] = msged.astype(msg_ref.dtype)


# --------------------------------------------------------------------------
# Host wrapper
# --------------------------------------------------------------------------
def interaction_forward(x, edge_index, rbf, params, n_res, *,
                        tile_e=512, tile_n=256, scatter_chunk=256,
                        edge_shards=None):
    """x: (N, F) f32; edge_index: (2, E) int32; rbf: (E, K) f32."""
    N, F = x.shape
    E, K = rbf.shape
    dtype = x.dtype
    assert tile_e % 128 == 0

    bf16, f32 = jnp.bfloat16, jnp.float32
    shards = int(edge_shards) if edge_shards else _default_edge_shards()
    shards = max(shards, 1)

    # ---- tile sizes / padding (lane = F, sublane tiles multiple of 8) ----
    te = tile_e
    E_pad = _round_up(max(E, 1), te * shards)
    tps = E_pad // (te * shards)                     # edge tiles per shard

    N8 = _round_up(max(N, 1), 8)
    tm = min(_round_up(tile_n, 8), N8)               # node tile (whole graph if small)
    N_pad = _round_up(N8, tm)
    n_n_tiles = N_pad // tm
    n_chunk = min(_round_up(scatter_chunk, 8), N_pad)
    if N_pad % n_chunk:
        n_chunk = tm                                  # tm always divides N_pad

    # ---- host-side prep: ssp(x), row gather, padding, casts (tiny XLA ops) ----
    src = edge_index[0].astype(jnp.int32)
    dst = edge_index[1].astype(jnp.int32)
    src_p = jnp.zeros((E_pad,), jnp.int32).at[:E].set(src)
    dst_row = jnp.full((1, E_pad), -1, jnp.int32).at[0, :E].set(dst)

    xa = _ssp(x.astype(f32))                          # activation of forward()
    x_j = jnp.take(xa, src_p, axis=0).astype(bf16)    # (E_pad, F) gathered sources
    rbf_p = jnp.zeros((E_pad, K), bf16).at[:E].set(rbf.astype(bf16))
    x_p = jnp.zeros((N_pad, F), f32).at[:N].set(x.astype(f32))

    # ---- pre-transpose / pack weights ONCE on the host: layout (in, out) ----
    w_diff_t = params["w_diff"].T.astype(bf16)                        # (F, F)
    b_diff = params["b_diff"].reshape(1, F).astype(f32)
    g_w_t = params["g_w"].T.astype(bf16)                              # (K, F)
    w_slab = jnp.concatenate(
        [params["w_same"].T[None],
         jnp.swapaxes(params["w_res"], 1, 2),
         params["w_last"].T[None]], axis=0).astype(bf16)              # (2n+2, F, F)
    b_slab = jnp.concatenate(
        [params["b_same"].reshape(1, F),
         params["b_res"].reshape(2 * n_res, F),
         params["b_last"].reshape(1, F),
         params["u"].reshape(1, F)], axis=0).astype(f32)              # (2n+3, F)

    # ---- VMEM budgets (working set + headroom), clamped to valid range ----
    edge_vmem = int(
        2 * N_pad * F * 4                              # accumulator block (buffers)
        + 2 * te * (2 * F + 2 * K + 4)                 # double-buffered edge streams
        + 2 * (F * F * 2 + K * F * 2 + F * 4)          # resident weights
        + 6 * te * F                                   # msg / gate intermediates
        + 2 * n_chunk * te                             # scatter mask chunk (bf16)
        + (8 << 20))
    node_vmem = int(
        2 * ((2 * n_res + 2) * F * F * 2 + (2 * n_res + 3) * F * 4)
        + 2 * 4 * tm * F * 4                           # double-buffered node tiles
        + 6 * tm * F * 4                               # activations / carries
        + (8 << 20))
    edge_vmem = min(max(edge_vmem, 32 << 20), 64 << 20)
    node_vmem = min(max(node_vmem, 32 << 20), 64 << 20)

    edge_cost = pl.CostEstimate(
        flops=int(2 * E_pad * F * (F + K) + 2 * E_pad * N_pad * F),
        transcendentals=int(2 * E_pad * F),
        bytes_accessed=int(E_pad * (2 * F + 2 * K + 4)
                           + 2 * (F * F + K * F) + 4 * F
                           + shards * N_pad * F * 4))
    node_cost = pl.CostEstimate(
        flops=int(2 * N_pad * F * F * (2 * n_res + 2)),
        transcendentals=int(2 * N_pad * F * (2 * n_res + 3)),
        bytes_accessed=int(4 * N_pad * F * 4
                           + (2 * n_res + 2) * F * F * 2
                           + (2 * n_res + 3) * F * 4))

    # ---- kernel 1: message + scatter-add (shard-parallel x edge-tile grid) ----
    aggr_parts = pl.pallas_call(
        functools.partial(edge_aggregate_kernel, n_chunk=n_chunk),
        out_shape=jax.ShapeDtypeStruct((shards, N_pad, F), f32),
        grid=(shards, tps),
        in_specs=[
            pl.BlockSpec((te, F), lambda s, e: (s * tps + e, 0)),    # x_j
            pl.BlockSpec((1, te), lambda s, e: (0, s * tps + e)),    # dst ids
            pl.BlockSpec((te, K), lambda s, e: (s * tps + e, 0)),    # rbf
            pl.BlockSpec((F, F), lambda s, e: (0, 0)),               # W_diff^T
            pl.BlockSpec((1, F), lambda s, e: (0, 0)),               # b_diff
            pl.BlockSpec((K, F), lambda s, e: (0, 0)),               # G^T
        ],
        out_specs=pl.BlockSpec((1, N_pad, F), lambda s, e: (s, 0, 0)),
        compiler_params=pltpu.CompilerParams(
            dimension_semantics=("parallel", "arbitrary"),
            vmem_limit_bytes=edge_vmem),
        cost_estimate=edge_cost,
    )(x_j, dst_row, rbf_p, w_diff_t, b_diff, g_w_t)

    aggr = aggr_parts[0] if shards == 1 else jnp.sum(aggr_parts, axis=0)

    # ---- kernel 2: node update + residuals + output head (parallel tiles) ----
    out_p, msged_p = pl.pallas_call(
        functools.partial(node_update_kernel, n_res=n_res),
        out_shape=(jax.ShapeDtypeStruct((N_pad, F), dtype),
                   jax.ShapeDtypeStruct((N_pad, F), dtype)),
        grid=(n_n_tiles,),
        in_specs=[
            pl.BlockSpec((tm, F), lambda i: (i, 0)),                   # x
            pl.BlockSpec((tm, F), lambda i: (i, 0)),                   # aggr
            pl.BlockSpec((2 * n_res + 2, F, F), lambda i: (0, 0, 0)),  # W slab
            pl.BlockSpec((2 * n_res + 3, F), lambda i: (0, 0)),        # b slab
        ],
        out_specs=(pl.BlockSpec((tm, F), lambda i: (i, 0)),
                   pl.BlockSpec((tm, F), lambda i: (i, 0))),
        compiler_params=pltpu.CompilerParams(
            dimension_semantics=("parallel",),
            vmem_limit_bytes=node_vmem),
        cost_estimate=node_cost,
    )(x_p, aggr, w_slab, b_slab)

    return out_p[:N], msged_p[:N]


# --------------------------------------------------------------------------
# Pure-JAX reference mirroring the PyTorch semantics (f32)
# --------------------------------------------------------------------------
def reference_forward(x, edge_index, rbf, p, n_res):
    xa = _ssp(x)
    x_j = xa[edge_index[0]]                                   # gather sources
    msg = _ssp(x_j @ p["w_diff"].T + p["b_diff"]) * (rbf @ p["g_w"].T)
    aggr = jnp.zeros_like(x).at[edge_index[1]].add(msg)       # scatter-add to targets
    a = _ssp(xa @ p["w_same"].T + p["b_same"])
    msged = a + aggr
    t = msged
    for i in range(n_res):
        y = _ssp(t) @ p["w_res"][2 * i].T + p["b_res"][2 * i]
        y = _ssp(y) @ p["w_res"][2 * i + 1].T + p["b_res"][2 * i + 1]
        t = t + y
    v = _ssp(t) @ p["w_last"].T + p["b_last"]
    return v + x * p["u"], msged


def make_params(key, F, K, n_res):
    """Deterministic synthetic weights matching the torch module's shapes
    (torch layout: out x in).  Glorot-scale random instead of
    semi_orthogonal_glorot / zero-init so the kernel exercises real compute."""
    ks = jax.random.split(key, 8)

    def glorot(k, shape):
        fan_in, fan_out = shape[-1], shape[-2]
        s = math.sqrt(2.0 / (fan_in + fan_out))
        return (s * jax.random.normal(k, shape)).astype(jnp.float32)

    return {
        "w_diff": glorot(ks[0], (F, F)),                # lin_for_diff.weight
        "b_diff": jnp.zeros((F,), jnp.float32),
        "w_same": glorot(ks[1], (F, F)),                # lin_for_same.weight
        "b_same": jnp.zeros((F,), jnp.float32),
        "g_w":    glorot(ks[2], (F, K)),                # G.weight (Linear(K, F), no bias)
        "w_res":  glorot(ks[3], (2 * n_res, F, F)),     # residual lin1/lin2 weights
        "b_res":  jnp.zeros((2 * n_res, F), jnp.float32),
        "w_last": glorot(ks[4], (F, F)),                # lin_last.weight
        "b_last": jnp.zeros((F,), jnp.float32),
        "u":      jnp.ones((1, F), jnp.float32),        # the 'u' gate (init 1.0)
    }


if __name__ == "__main__":
    # Small lane-dense synthetic graph: N nodes, E edges, F features, K rbf.
    N, F, K, E, N_RES = 64, 128, 16, 200, 2

    key = jax.random.PRNGKey(0)
    kx, ke, kr, kp = jax.random.split(key, 4)

    x = jax.random.normal(kx, (N, F), dtype=jnp.float32)
    edge_index = jax.random.randint(ke, (2, E), 0, N, dtype=jnp.int32)
    rbf = jax.random.uniform(kr, (E, K), dtype=jnp.float32)
    params = make_params(kp, F, K, N_RES)

    fwd = jax.jit(functools.partial(interaction_forward, n_res=N_RES))
    out, msged_x = fwd(x, edge_index, rbf, params)
    out = jax.block_until_ready(out)
    msged_x = jax.block_until_ready(msged_x)

    ref_out, ref_msged = reference_forward(x, edge_index, rbf, params, N_RES)
    err_out = float(jnp.max(jnp.abs(out - ref_out)))
    err_msg = float(jnp.max(jnp.abs(msged_x - ref_msged)))
    assert bool(jnp.all(jnp.isfinite(out))) and err_out < 5e-2, err_out
    assert bool(jnp.all(jnp.isfinite(msged_x))) and err_msg < 5e-2, err_msg

    print("KERNEL_OK")
</pallas_src>

<mosaic_0001>
module attributes {stable_mosaic.version = 11 : i64} {
  func.func @edge_aggregate_kernel(%arg0: i32, %arg1: i32, %arg2: memref<512x128xbf16, #tpu.memory_space<vmem>>, %arg3: memref<1x512xi32, #tpu.memory_space<vmem>>, %arg4: memref<512x16xbf16, #tpu.memory_space<vmem>>, %arg5: memref<128x128xbf16, #tpu.memory_space<vmem>>, %arg6: memref<1x128xf32, #tpu.memory_space<vmem>>, %arg7: memref<16x128xbf16, #tpu.memory_space<vmem>>, %arg8: memref<1x64x128xf32, #tpu.memory_space<vmem>>) attributes {dimension_semantics = [#tpu.dimension_semantics<parallel>, #tpu.dimension_semantics<arbitrary>], iteration_bounds = array<i64: 1, 1>, scalar_prefetch = 0 : i64, scratch_operands = 0 : i64, tpu.core_type = #tpu.core_type<tc>, window_params = [{transform_indices = @transform_0, window_bounds = array<i64: 512, 128>}, {transform_indices = @transform_1, window_bounds = array<i64: 1, 512>}, {transform_indices = @transform_2, window_bounds = array<i64: 512, 16>}, {pipeline_mode = #tpu.pipeline_mode<synchronous>, transform_indices = @transform_3, window_bounds = array<i64: 128, 128>}, {pipeline_mode = #tpu.pipeline_mode<synchronous>, transform_indices = @transform_4, window_bounds = array<i64: 1, 128>}, {pipeline_mode = #tpu.pipeline_mode<synchronous>, transform_indices = @transform_5, window_bounds = array<i64: 16, 128>}, {transform_indices = @transform_6, window_bounds = array<i64: 1, 64, 128>}]} {
    %c0_i32 = arith.constant 0 : i32
    %0 = arith.cmpi eq, %arg1, %c0_i32 : i32
    %1 = arith.extui %0 : i1 to i32
    %c0_i32_0 = arith.constant 0 : i32
    %2 = arith.cmpi ne, %1, %c0_i32_0 : i32
    scf.if %2 {
      %cst_24 = arith.constant 0.000000e+00 : f32
      %46 = vector.broadcast %cst_24 : f32 to vector<1x64x128xf32>
      %c0_25 = arith.constant 0 : index
      %c0_26 = arith.constant 0 : index
      %c0_27 = arith.constant 0 : index
      %47 = vector.load %arg8[%c0_25, %c0_26, %c0_27] : memref<1x64x128xf32, #tpu.memory_space<vmem>>, vector<1x64x128xf32>
      tpu.vector_store %arg8[%c0_25, %c0_26, %c0_27], %46 {strides = array<i32>} : memref<1x64x128xf32, #tpu.memory_space<vmem>>, vector<1x64x128xf32>,
    } else {
    }
    %c0 = arith.constant 0 : index
    %c0_1 = arith.constant 0 : index
    %3 = vector.load %arg2[%c0, %c0_1] : memref<512x128xbf16, #tpu.memory_space<vmem>>, vector<512x128xbf16>
    %c0_2 = arith.constant 0 : index
    %c0_3 = arith.constant 0 : index
    %4 = vector.load %arg5[%c0_2, %c0_3] : memref<128x128xbf16, #tpu.memory_space<vmem>>, vector<128x128xbf16>
    %cst = arith.constant dense<0.000000e+00> : vector<512x128xf32>
    %5 = tpu.matmul %3, %4, %cst {dimension_numbers = #tpu.dot_dimension_numbers<[1], [0], [0], [1], [0, 0, 1, 1], [], []>} : vector<512x128xbf16>, vector<128x128xbf16>, vector<512x128xf32> -> vector<512x128xf32>
    %c0_4 = arith.constant 0 : index
    %c0_5 = arith.constant 0 : index
    %6 = vector.load %arg6[%c0_4, %c0_5] : memref<1x128xf32, #tpu.memory_space<vmem>>, vector<1x128xf32>
    %7 = vector.broadcast %6 : vector<1x128xf32> to vector<512x128xf32>
    %8 = arith.addf %5, %7 : vector<512x128xf32>
    %cst_6 = arith.constant 0.000000e+00 : f32
    %9 = vector.broadcast %cst_6 : f32 to vector<512x128xf32>
    %10 = arith.maximumf %8, %9 : vector<512x128xf32>
    %11 = vector.broadcast %cst_6 : f32 to vector<512x128xf32>
    %12 = arith.subf %8, %11 : vector<512x128xf32>
    %13 = arith.cmpf one, %12, %12 : vector<512x128xf32>
    %14 = vector.broadcast %cst_6 : f32 to vector<512x128xf32>
    %15 = arith.addf %8, %14 : vector<512x128xf32>
    %16 = math.absf %12 : vector<512x128xf32>
    %cst_7 = arith.constant 0.000000e+00 : f32
    %17 = vector.broadcast %cst_7 : f32 to vector<512x128xf32>
    %18 = arith.subf %17, %16 : vector<512x128xf32>
    %19 = math.exp %18 : vector<512x128xf32>
    %20 = math.log1p %19 : vector<512x128xf32>
    %21 = arith.addf %10, %20 : vector<512x128xf32>
    %22 = arith.select %13, %15, %21 : vector<512x128xi1>, vector<512x128xf32>
    %cst_8 = arith.constant 0.693147182 : f32
    %23 = vector.broadcast %cst_8 : f32 to vector<512x128xf32>
    %24 = arith.subf %22, %23 : vector<512x128xf32>
    %c0_9 = arith.constant 0 : index
    %c0_10 = arith.constant 0 : index
    %25 = vector.load %arg4[%c0_9, %c0_10] : memref<512x16xbf16, #tpu.memory_space<vmem>>, vector<512x16xbf16>
    %c0_11 = arith.constant 0 : index
    %c0_12 = arith.constant 0 : index
    %26 = vector.load %arg7[%c0_11, %c0_12] : memref<16x128xbf16, #tpu.memory_space<vmem>>, vector<16x128xbf16>
    %cst_13 = arith.constant dense<0.000000e+00> : vector<512x128xf32>
    %27 = tpu.matmul %25, %26, %cst_13 {dimension_numbers = #tpu.dot_dimension_numbers<[1], [0], [0], [1], [0, 0, 1, 1], [], []>} : vector<512x16xbf16>, vector<16x128xbf16>, vector<512x128xf32> -> vector<512x128xf32>
    %28 = arith.mulf %24, %27 : vector<512x128xf32>
    %29 = arith.truncf %28 : vector<512x128xf32> to vector<512x128xbf16>
    %c0_14 = arith.constant 0 : index
    %c0_15 = arith.constant 0 : index
    %30 = vector.load %arg3[%c0_14, %c0_15] : memref<1x512xi32, #tpu.memory_space<vmem>>, vector<1x512xi32>
    %31 = tpu.iota {dimensions = array<i32: 0>} : vector<64x512xi32>
    %c0_i32_16 = arith.constant 0 : i32
    %32 = vector.broadcast %c0_i32_16 : i32 to vector<64x512xi32>
    %33 = arith.addi %31, %32 : vector<64x512xi32>
    %34 = vector.broadcast %30 : vector<1x512xi32> to vector<64x512xi32>
    %35 = arith.cmpi eq, %33, %34 : vector<64x512xi32>
    %36 = arith.extui %35 : vector<64x512xi1> to vector<64x512xi32>
    %37 = arith.sitofp %36 : vector<64x512xi32> to vector<64x512xf32>
    %38 = arith.truncf %37 : vector<64x512xf32> to vector<64x512xbf16>
    %c0_17 = arith.constant 0 : index
    %c0_18 = arith.constant 0 : index
    %c0_19 = arith.constant 0 : index
    %39 = vector.load %arg8[%c0_17, %c0_18, %c0_19] : memref<1x64x128xf32, #tpu.memory_space<vmem>>, vector<1x64x128xf32>
    %40 = vector.shape_cast %39 : vector<1x64x128xf32> to vector<64x128xf32>
    %cst_20 = arith.constant dense<0.000000e+00> : vector<64x128xf32>
    %41 = tpu.matmul %38, %29, %cst_20 {dimension_numbers = #tpu.dot_dimension_numbers<[1], [0], [0], [1], [0, 0, 1, 1], [], []>} : vector<64x512xbf16>, vector<512x128xbf16>, vector<64x128xf32> -> vector<64x128xf32>
    %42 = arith.addf %40, %41 : vector<64x128xf32>
    %c0_21 = arith.constant 0 : index
    %c0_22 = arith.constant 0 : index
    %c0_23 = arith.constant 0 : index
    %43 = vector.load %arg8[%c0_21, %c0_22, %c0_23] : memref<1x64x128xf32, #tpu.memory_space<vmem>>, vector<1x64x128xf32>
    %44 = vector.shape_cast %43 : vector<1x64x128xf32> to vector<64x128xf32>
    %45 = vector.shape_cast %42 : vector<64x128xf32> to vector<1x64x128xf32>
    tpu.vector_store %arg8[%c0_21, %c0_22, %c0_23], %45 {strides = array<i32>} : memref<1x64x128xf32, #tpu.memory_space<vmem>>, vector<1x64x128xf32>,
    return
  }
  func.func @transform_0(%arg0: i32, %arg1: i32) -> (i32, i32) {
    %c1_i32 = arith.constant 1 : i32
    %0 = arith.muli %arg0, %c1_i32 : i32
    %1 = arith.addi %0, %arg1 : i32
    %c0_i32 = arith.constant 0 : i32
    %c0_i32_0 = arith.constant 0 : i32
    return %1, %c0_i32 : i32, i32
  }
  func.func @transform_1(%arg0: i32, %arg1: i32) -> (i32, i32) {
    %c1_i32 = arith.constant 1 : i32
    %0 = arith.muli %arg0, %c1_i32 : i32
    %1 = arith.addi %0, %arg1 : i32
    %c0_i32 = arith.constant 0 : i32
    %c0_i32_0 = arith.constant 0 : i32
    return %c0_i32, %1 : i32, i32
  }
  func.func @transform_2(%arg0: i32, %arg1: i32) -> (i32, i32) {
    %c1_i32 = arith.constant 1 : i32
    %0 = arith.muli %arg0, %c1_i32 : i32
    %1 = arith.addi %0, %arg1 : i32
    %c0_i32 = arith.constant 0 : i32
    %c0_i32_0 = arith.constant 0 : i32
    return %1, %c0_i32 : i32, i32
  }
  func.func @transform_3(%arg0: i32, %arg1: i32) -> (i32, i32) {
    %c0_i32 = arith.constant 0 : i32
    %c0_i32_0 = arith.constant 0 : i32
    %c0_i32_1 = arith.constant 0 : i32
    return %c0_i32, %c0_i32_0 : i32, i32
  }
  func.func @transform_4(%arg0: i32, %arg1: i32) -> (i32, i32) {
    %c0_i32 = arith.constant 0 : i32
    %c0_i32_0 = arith.constant 0 : i32
    %c0_i32_1 = arith.constant 0 : i32
    return %c0_i32, %c0_i32_0 : i32, i32
  }
  func.func @transform_5(%arg0: i32, %arg1: i32) -> (i32, i32) {
    %c0_i32 = arith.constant 0 : i32
    %c0_i32_0 = arith.constant 0 : i32
    %c0_i32_1 = arith.constant 0 : i32
    return %c0_i32, %c0_i32_0 : i32, i32
  }
  func.func @transform_6(%arg0: i32, %arg1: i32) -> (i32, i32, i32) {
    %c0_i32 = arith.constant 0 : i32
    %c0_i32_0 = arith.constant 0 : i32
    %c0_i32_1 = arith.constant 0 : i32
    return %arg0, %c0_i32, %c0_i32_0 : i32, i32, i32
  }
}

module attributes {stable_mosaic.version = 11 : i64} {
  func.func @node_update_kernel(%arg0: i32, %arg1: memref<64x128xf32, #tpu.memory_space<vmem>>, %arg2: memref<64x128xf32, #tpu.memory_space<vmem>>, %arg3: memref<6x128x128xbf16, #tpu.memory_space<vmem>>, %arg4: memref<7x128xf32, #tpu.memory_space<vmem>>, %arg5: memref<64x128xf32, #tpu.memory_space<vmem>>, %arg6: memref<64x128xf32, #tpu.memory_space<vmem>>) attributes {dimension_semantics = [#tpu.dimension_semantics<parallel>], iteration_bounds = array<i64: 1>, scalar_prefetch = 0 : i64, scratch_operands = 0 : i64, tpu.core_type = #tpu.core_type<tc>, window_params = [{transform_indices = @transform_0, window_bounds = array<i64: 64, 128>}, {transform_indices = @transform_1, window_bounds = array<i64: 64, 128>}, {pipeline_mode = #tpu.pipeline_mode<synchronous>, transform_indices = @transform_2, window_bounds = array<i64: 6, 128, 128>}, {pipeline_mode = #tpu.pipeline_mode<synchronous>, transform_indices = @transform_3, window_bounds = array<i64: 7, 128>}, {transform_indices = @transform_4, window_bounds = array<i64: 64, 128>}, {transform_indices = @transform_5, window_bounds = array<i64: 64, 128>}]} {
    %c0 = arith.constant 0 : index
    %c0_0 = arith.constant 0 : index
    %0 = vector.load %arg1[%c0, %c0_0] : memref<64x128xf32, #tpu.memory_space<vmem>>, vector<64x128xf32>
    %cst = arith.constant 0.000000e+00 : f32
    %1 = vector.broadcast %cst : f32 to vector<64x128xf32>
    %2 = arith.maximumf %0, %1 : vector<64x128xf32>
    %3 = vector.broadcast %cst : f32 to vector<64x128xf32>
    %4 = arith.subf %0, %3 : vector<64x128xf32>
    %5 = arith.cmpf one, %4, %4 : vector<64x128xf32>
    %6 = vector.broadcast %cst : f32 to vector<64x128xf32>
    %7 = arith.addf %0, %6 : vector<64x128xf32>
    %8 = math.absf %4 : vector<64x128xf32>
    %cst_1 = arith.constant 0.000000e+00 : f32
    %9 = vector.broadcast %cst_1 : f32 to vector<64x128xf32>
    %10 = arith.subf %9, %8 : vector<64x128xf32>
    %11 = math.exp %10 : vector<64x128xf32>
    %12 = math.log1p %11 : vector<64x128xf32>
    %13 = arith.addf %2, %12 : vector<64x128xf32>
    %14 = arith.select %5, %7, %13 : vector<64x128xi1>, vector<64x128xf32>
    %cst_2 = arith.constant 0.693147182 : f32
    %15 = vector.broadcast %cst_2 : f32 to vector<64x128xf32>
    %16 = arith.subf %14, %15 : vector<64x128xf32>
    %17 = arith.truncf %16 : vector<64x128xf32> to vector<64x128xbf16>
    %c0_3 = arith.constant 0 : index
    %c0_4 = arith.constant 0 : index
    %c0_5 = arith.constant 0 : index
    %18 = vector.load %arg3[%c0_3, %c0_4, %c0_5] : memref<6x128x128xbf16, #tpu.memory_space<vmem>>, vector<1x128x128xbf16>
    %19 = vector.shape_cast %18 : vector<1x128x128xbf16> to vector<128x128xbf16>
    %cst_6 = arith.constant dense<0.000000e+00> : vector<64x128xf32>
    %20 = tpu.matmul %17, %19, %cst_6 {dimension_numbers = #tpu.dot_dimension_numbers<[1], [0], [0], [1], [0, 0, 1, 1], [], []>} : vector<64x128xbf16>, vector<128x128xbf16>, vector<64x128xf32> -> vector<64x128xf32>
    %c0_7 = arith.constant 0 : index
    %c0_8 = arith.constant 0 : index
    %21 = vector.load %arg4[%c0_7, %c0_8] : memref<7x128xf32, #tpu.memory_space<vmem>>, vector<1x128xf32>
    %22 = vector.shape_cast %21 : vector<1x128xf32> to vector<128xf32>
    %23 = vector.shape_cast %22 : vector<128xf32> to vector<1x128xf32>
    %24 = vector.broadcast %23 : vector<1x128xf32> to vector<64x128xf32>
    %25 = arith.addf %20, %24 : vector<64x128xf32>
    %cst_9 = arith.constant 0.000000e+00 : f32
    %26 = vector.broadcast %cst_9 : f32 to vector<64x128xf32>
    %27 = arith.maximumf %25, %26 : vector<64x128xf32>
    %28 = vector.broadcast %cst_9 : f32 to vector<64x128xf32>
    %29 = arith.subf %25, %28 : vector<64x128xf32>
    %30 = arith.cmpf one, %29, %29 : vector<64x128xf32>
    %31 = vector.broadcast %cst_9 : f32 to vector<64x128xf32>
    %32 = arith.addf %25, %31 : vector<64x128xf32>
    %33 = math.absf %29 : vector<64x128xf32>
    %cst_10 = arith.constant 0.000000e+00 : f32
    %34 = vector.broadcast %cst_10 : f32 to vector<64x128xf32>
    %35 = arith.subf %34, %33 : vector<64x128xf32>
    %36 = math.exp %35 : vector<64x128xf32>
    %37 = math.log1p %36 : vector<64x128xf32>
    %38 = arith.addf %27, %37 : vector<64x128xf32>
    %39 = arith.select %30, %32, %38 : vector<64x128xi1>, vector<64x128xf32>
    %cst_11 = arith.constant 0.693147182 : f32
    %40 = vector.broadcast %cst_11 : f32 to vector<64x128xf32>
    %41 = arith.subf %39, %40 : vector<64x128xf32>
    %c0_12 = arith.constant 0 : index
    %c0_13 = arith.constant 0 : index
    %42 = vector.load %arg2[%c0_12, %c0_13] : memref<64x128xf32, #tpu.memory_space<vmem>>, vector<64x128xf32>
    %43 = arith.addf %41, %42 : vector<64x128xf32>
    %cst_14 = arith.constant 0.000000e+00 : f32
    %44 = vector.broadcast %cst_14 : f32 to vector<64x128xf32>
    %45 = arith.maximumf %43, %44 : vector<64x128xf32>
    %46 = vector.broadcast %cst_14 : f32 to vector<64x128xf32>
    %47 = arith.subf %43, %46 : vector<64x128xf32>
    %48 = arith.cmpf one, %47, %47 : vector<64x128xf32>
    %49 = vector.broadcast %cst_14 : f32 to vector<64x128xf32>
    %50 = arith.addf %43, %49 : vector<64x128xf32>
    %51 = math.absf %47 : vector<64x128xf32>
    %cst_15 = arith.constant 0.000000e+00 : f32
    %52 = vector.broadcast %cst_15 : f32 to vector<64x128xf32>
    %53 = arith.subf %52, %51 : vector<64x128xf32>
    %54 = math.exp %53 : vector<64x128xf32>
    %55 = math.log1p %54 : vector<64x128xf32>
    %56 = arith.addf %45, %55 : vector<64x128xf32>
    %57 = arith.select %48, %50, %56 : vector<64x128xi1>, vector<64x128xf32>
    %cst_16 = arith.constant 0.693147182 : f32
    %58 = vector.broadcast %cst_16 : f32 to vector<64x128xf32>
    %59 = arith.subf %57, %58 : vector<64x128xf32>
    %60 = arith.truncf %59 : vector<64x128xf32> to vector<64x128xbf16>
    %c1 = arith.constant 1 : index
    %c0_17 = arith.constant 0 : index
    %c0_18 = arith.constant 0 : index
    %61 = vector.load %arg3[%c1, %c0_17, %c0_18] : memref<6x128x128xbf16, #tpu.memory_space<vmem>>, vector<1x128x128xbf16>
    %62 = vector.shape_cast %61 : vector<1x128x128xbf16> to vector<128x128xbf16>
    %cst_19 = arith.constant dense<0.000000e+00> : vector<64x128xf32>
    %63 = tpu.matmul %60, %62, %cst_19 {dimension_numbers = #tpu.dot_dimension_numbers<[1], [0], [0], [1], [0, 0, 1, 1], [], []>} : vector<64x128xbf16>, vector<128x128xbf16>, vector<64x128xf32> -> vector<64x128xf32>
    %c1_20 = arith.constant 1 : index
    %c0_21 = arith.constant 0 : index
    %64 = vector.load %arg4[%c1_20, %c0_21] : memref<7x128xf32, #tpu.memory_space<vmem>>, vector<1x128xf32>
    %65 = vector.shape_cast %64 : vector<1x128xf32> to vector<128xf32>
    %66 = vector.shape_cast %65 : vector<128xf32> to vector<1x128xf32>
    %67 = vector.broadcast %66 : vector<1x128xf32> to vector<64x128xf32>
    %68 = arith.addf %63, %67 : vector<64x128xf32>
    %cst_22 = arith.constant 0.000000e+00 : f32
    %69 = vector.broadcast %cst_22 : f32 to vector<64x128xf32>
    %70 = arith.maximumf %68, %69 : vector<64x128xf32>
    %71 = vector.broadcast %cst_22 : f32 to vector<64x128xf32>
    %72 = arith.subf %68, %71 : vector<64x128xf32>
    %73 = arith.cmpf one, %72, %72 : vector<64x128xf32>
    %74 = vector.broadcast %cst_22 : f32 to vector<64x128xf32>
    %75 = arith.addf %68, %74 : vector<64x128xf32>
    %76 = math.absf %72 : vector<64x128xf32>
    %cst_23 = arith.constant 0.000000e+00 : f32
    %77 = vector.broadcast %cst_23 : f32 to vector<64x128xf32>
    %78 = arith.subf %77, %76 : vector<64x128xf32>
    %79 = math.exp %78 : vector<64x128xf32>
    %80 = math.log1p %79 : vector<64x128xf32>
    %81 = arith.addf %70, %80 : vector<64x128xf32>
    %82 = arith.select %73, %75, %81 : vector<64x128xi1>, vector<64x128xf32>
    %cst_24 = arith.constant 0.693147182 : f32
    %83 = vector.broadcast %cst_24 : f32 to vector<64x128xf32>
    %84 = arith.subf %82, %83 : vector<64x128xf32>
    %85 = arith.truncf %84 : vector<64x128xf32> to vector<64x128xbf16>
    %c2 = arith.constant 2 : index
    %c0_25 = arith.constant 0 : index
    %c0_26 = arith.constant 0 : index
    %86 = vector.load %arg3[%c2, %c0_25, %c0_26] : memref<6x128x128xbf16, #tpu.memory_space<vmem>>, vector<1x128x128xbf16>
    %87 = vector.shape_cast %86 : vector<1x128x128xbf16> to vector<128x128xbf16>
    %cst_27 = arith.constant dense<0.000000e+00> : vector<64x128xf32>
    %88 = tpu.matmul %85, %87, %cst_27 {dimension_numbers = #tpu.dot_dimension_numbers<[1], [0], [0], [1], [0, 0, 1, 1], [], []>} : vector<64x128xbf16>, vector<128x128xbf16>, vector<64x128xf32> -> vector<64x128xf32>
    %c2_28 = arith.constant 2 : index
    %c0_29 = arith.constant 0 : index
    %89 = vector.load %arg4[%c2_28, %c0_29] : memref<7x128xf32, #tpu.memory_space<vmem>>, vector<1x128xf32>
    %90 = vector.shape_cast %89 : vector<1x128xf32> to vector<128xf32>
    %91 = vector.shape_cast %90 : vector<128xf32> to vector<1x128xf32>
    %92 = vector.broadcast %91 : vector<1x128xf32> to vector<64x128xf32>
    %93 = arith.addf %88, %92 : vector<64x128xf32>
    %94 = arith.addf %43, %93 : vector<64x128xf32>
    %cst_30 = arith.constant 0.000000e+00 : f32
    %95 = vector.broadcast %cst_30 : f32 to vector<64x128xf32>
    %96 = arith.maximumf %94, %95 : vector<64x128xf32>
    %97 = vector.broadcast %cst_30 : f32 to vector<64x128xf32>
    %98 = arith.subf %94, %97 : vector<64x128xf32>
    %99 = arith.cmpf one, %98, %98 : vector<64x128xf32>
    %100 = vector.broadcast %cst_30 : f32 to vector<64x128xf32>
    %101 = arith.addf %94, %100 : vector<64x128xf32>
    %102 = math.absf %98 : vector<64x128xf32>
    %cst_31 = arith.constant 0.000000e+00 : f32
    %103 = vector.broadcast %cst_31 : f32 to vector<64x128xf32>
    %104 = arith.subf %103, %102 : vector<64x128xf32>
    %105 = math.exp %104 : vector<64x128xf32>
    %106 = math.log1p %105 : vector<64x128xf32>
    %107 = arith.addf %96, %106 : vector<64x128xf32>
    %108 = arith.select %99, %101, %107 : vector<64x128xi1>, vector<64x128xf32>
    %cst_32 = arith.constant 0.693147182 : f32
    %109 = vector.broadcast %cst_32 : f32 to vector<64x128xf32>
    %110 = arith.subf %108, %109 : vector<64x128xf32>
    %111 = arith.truncf %110 : vector<64x128xf32> to vector<64x128xbf16>
    %c3 = arith.constant 3 : index
    %c0_33 = arith.constant 0 : index
    %c0_34 = arith.constant 0 : index
    %112 = vector.load %arg3[%c3, %c0_33, %c0_34] : memref<6x128x128xbf16, #tpu.memory_space<vmem>>, vector<1x128x128xbf16>
    %113 = vector.shape_cast %112 : vector<1x128x128xbf16> to vector<128x128xbf16>
    %cst_35 = arith.constant dense<0.000000e+00> : vector<64x128xf32>
    %114 = tpu.matmul %111, %113, %cst_35 {dimension_numbers = #tpu.dot_dimension_numbers<[1], [0], [0], [1], [0, 0, 1, 1], [], []>} : vector<64x128xbf16>, vector<128x128xbf16>, vector<64x128xf32> -> vector<64x128xf32>
    %c3_36 = arith.constant 3 : index
    %c0_37 = arith.constant 0 : index
    %115 = vector.load %arg4[%c3_36, %c0_37] : memref<7x128xf32, #tpu.memory_space<vmem>>, vector<1x128xf32>
    %116 = vector.shape_cast %115 : vector<1x128xf32> to vector<128xf32>
    %117 = vector.shape_cast %116 : vector<128xf32> to vector<1x128xf32>
    %118 = vector.broadcast %117 : vector<1x128xf32> to vector<64x128xf32>
    %119 = arith.addf %114, %118 : vector<64x128xf32>
    %cst_38 = arith.constant 0.000000e+00 : f32
    %120 = vector.broadcast %cst_38 : f32 to vector<64x128xf32>
    %121 = arith.maximumf %119, %120 : vector<64x128xf32>
    %122 = vector.broadcast %cst_38 : f32 to vector<64x128xf32>
    %123 = arith.subf %119, %122 : vector<64x128xf32>
    %124 = arith.cmpf one, %123, %123 : vector<64x128xf32>
    %125 = vector.broadcast %cst_38 : f32 to vector<64x128xf32>
    %126 = arith.addf %119, %125 : vector<64x128xf32>
    %127 = math.absf %123 : vector<64x128xf32>
    %cst_39 = arith.constant 0.000000e+00 : f32
    %128 = vector.broadcast %cst_39 : f32 to vector<64x128xf32>
    %129 = arith.subf %128, %127 : vector<64x128xf32>
    %130 = math.exp %129 : vector<64x128xf32>
    %131 = math.log1p %130 : vector<64x128xf32>
    %132 = arith.addf %121, %131 : vector<64x128xf32>
    %133 = arith.select %124, %126, %132 : vector<64x128xi1>, vector<64x128xf32>
    %cst_40 = arith.constant 0.693147182 : f32
    %134 = vector.broadcast %cst_40 : f32 to vector<64x128xf32>
    %135 = arith.subf %133, %134 : vector<64x128xf32>
    %136 = arith.truncf %135 : vector<64x128xf32> to vector<64x128xbf16>
    %c4 = arith.constant 4 : index
    %c0_41 = arith.constant 0 : index
    %c0_42 = arith.constant 0 : index
    %137 = vector.load %arg3[%c4, %c0_41, %c0_42] : memref<6x128x128xbf16, #tpu.memory_space<vmem>>, vector<1x128x128xbf16>
    %138 = vector.shape_cast %137 : vector<1x128x128xbf16> to vector<128x128xbf16>
    %cst_43 = arith.constant dense<0.000000e+00> : vector<64x128xf32>
    %139 = tpu.matmul %136, %138, %cst_43 {dimension_numbers = #tpu.dot_dimension_numbers<[1], [0], [0], [1], [0, 0, 1, 1], [], []>} : vector<64x128xbf16>, vector<128x128xbf16>, vector<64x128xf32> -> vector<64x128xf32>
    %c4_44 = arith.constant 4 : index
    %c0_45 = arith.constant 0 : index
    %140 = vector.load %arg4[%c4_44, %c0_45] : memref<7x128xf32, #tpu.memory_space<vmem>>, vector<1x128xf32>
    %141 = vector.shape_cast %140 : vector<1x128xf32> to vector<128xf32>
    %142 = vector.shape_cast %141 : vector<128xf32> to vector<1x128xf32>
    %143 = vector.broadcast %142 : vector<1x128xf32> to vector<64x128xf32>
    %144 = arith.addf %139, %143 : vector<64x128xf32>
    %145 = arith.addf %94, %144 : vector<64x128xf32>
    %cst_46 = arith.constant 0.000000e+00 : f32
    %146 = vector.broadcast %cst_46 : f32 to vector<64x128xf32>
    %147 = arith.maximumf %145, %146 : vector<64x128xf32>
    %148 = vector.broadcast %cst_46 : f32 to vector<64x128xf32>
    %149 = arith.subf %145, %148 : vector<64x128xf32>
    %150 = arith.cmpf one, %149, %149 : vector<64x128xf32>
    %151 = vector.broadcast %cst_46 : f32 to vector<64x128xf32>
    %152 = arith.addf %145, %151 : vector<64x128xf32>
    %153 = math.absf %149 : vector<64x128xf32>
    %cst_47 = arith.constant 0.000000e+00 : f32
    %154 = vector.broadcast %cst_47 : f32 to vector<64x128xf32>
    %155 = arith.subf %154, %153 : vector<64x128xf32>
    %156 = math.exp %155 : vector<64x128xf32>
    %157 = math.log1p %156 : vector<64x128xf32>
    %158 = arith.addf %147, %157 : vector<64x128xf32>
    %159 = arith.select %150, %152, %158 : vector<64x128xi1>, vector<64x128xf32>
    %cst_48 = arith.constant 0.693147182 : f32
    %160 = vector.broadcast %cst_48 : f32 to vector<64x128xf32>
    %161 = arith.subf %159, %160 : vector<64x128xf32>
    %162 = arith.truncf %161 : vector<64x128xf32> to vector<64x128xbf16>
    %c5 = arith.constant 5 : index
    %c0_49 = arith.constant 0 : index
    %c0_50 = arith.constant 0 : index
    %163 = vector.load %arg3[%c5, %c0_49, %c0_50] : memref<6x128x128xbf16, #tpu.memory_space<vmem>>, vector<1x128x128xbf16>
    %164 = vector.shape_cast %163 : vector<1x128x128xbf16> to vector<128x128xbf16>
    %cst_51 = arith.constant dense<0.000000e+00> : vector<64x128xf32>
    %165 = tpu.matmul %162, %164, %cst_51 {dimension_numbers = #tpu.dot_dimension_numbers<[1], [0], [0], [1], [0, 0, 1, 1], [], []>} : vector<64x128xbf16>, vector<128x128xbf16>, vector<64x128xf32> -> vector<64x128xf32>
    %c5_52 = arith.constant 5 : index
    %c0_53 = arith.constant 0 : index
    %166 = vector.load %arg4[%c5_52, %c0_53] : memref<7x128xf32, #tpu.memory_space<vmem>>, vector<1x128xf32>
    %167 = vector.shape_cast %166 : vector<1x128xf32> to vector<128xf32>
    %168 = vector.shape_cast %167 : vector<128xf32> to vector<1x128xf32>
    %169 = vector.broadcast %168 : vector<1x128xf32> to vector<64x128xf32>
    %170 = arith.addf %165, %169 : vector<64x128xf32>
    %c6 = arith.constant 6 : index
    %c0_54 = arith.constant 0 : index
    %171 = vector.load %arg4[%c6, %c0_54] : memref<7x128xf32, #tpu.memory_space<vmem>>, vector<1x128xf32>
    %172 = vector.shape_cast %171 : vector<1x128xf32> to vector<128xf32>
    %173 = vector.shape_cast %172 : vector<128xf32> to vector<1x128xf32>
    %174 = vector.broadcast %173 : vector<1x128xf32> to vector<64x128xf32>
    %175 = arith.mulf %0, %174 : vector<64x128xf32>
    %176 = arith.addf %170, %175 : vector<64x128xf32>
    %c0_55 = arith.constant 0 : index
    %c0_56 = arith.constant 0 : index
    %177 = vector.load %arg5[%c0_55, %c0_56] : memref<64x128xf32, #tpu.memory_space<vmem>>, vector<64x128xf32>
    tpu.vector_store %arg5[%c0_55, %c0_56], %176 {strides = array<i32>} : memref<64x128xf32, #tpu.memory_space<vmem>>, vector<64x128xf32>,
    %c0_57 = arith.constant 0 : index
    %c0_58 = arith.constant 0 : index
    %178 = vector.load %arg6[%c0_57, %c0_58] : memref<64x128xf32, #tpu.memory_space<vmem>>, vector<64x128xf32>
    tpu.vector_store %arg6[%c0_57, %c0_58], %43 {strides = array<i32>} : memref<64x128xf32, #tpu.memory_space<vmem>>, vector<64x128xf32>,
    return
  }
  func.func @transform_0(%arg0: i32) -> (i32, i32) {
    %c0_i32 = arith.constant 0 : i32
    %c0_i32_0 = arith.constant 0 : i32
    return %arg0, %c0_i32 : i32, i32
  }
  func.func @transform_1(%arg0: i32) -> (i32, i32) {
    %c0_i32 = arith.constant 0 : i32
    %c0_i32_0 = arith.constant 0 : i32
    return %arg0, %c0_i32 : i32, i32
  }
  func.func @transform_2(%arg0: i32) -> (i32, i32, i32) {
    %c0_i32 = arith.constant 0 : i32
    %c0_i32_0 = arith.constant 0 : i32
    %c0_i32_1 = arith.constant 0 : i32
    %c0_i32_2 = arith.constant 0 : i32
    return %c0_i32, %c0_i32_0, %c0_i32_1 : i32, i32, i32
  }
  func.func @transform_3(%arg0: i32) -> (i32, i32) {
    %c0_i32 = arith.constant 0 : i32
    %c0_i32_0 = arith.constant 0 : i32
    %c0_i32_1 = arith.constant 0 : i32
    return %c0_i32, %c0_i32_0 : i32, i32
  }
  func.func @transform_4(%arg0: i32) -> (i32, i32) {
    %c0_i32 = arith.constant 0 : i32
    %c0_i32_0 = arith.constant 0 : i32
    return %arg0, %c0_i32 : i32, i32
  }
  func.func @transform_5(%arg0: i32) -> (i32, i32) {
    %c0_i32 = arith.constant 0 : i32
    %c0_i32_0 = arith.constant 0 : i32
    return %arg0, %c0_i32 : i32, i32
  }
}

</mosaic_0001>

<bundles_post_ra>
// kernel: interaction_forward.2
= control target key start
LH: loop header
LB: loop body
LE: loop exit
PB: predicated region body
PF: predicated region fallthrough
CT: control target
= control target key end

     0   :  { %vm2163_vm0 = vcmask 130048   ;;  %s6026_s3 = inlined_call_operand.vmem [shape: bf16[128,128], index: 3, kind: input, shape index: {}]   ;;  %s6027_s0 = inlined_call_operand.vmem [shape: bf16[512,128], index: 0, kind: input, shape index: {}]   ;;  %s6028_s5 = inlined_call_operand.vmem [shape: bf16[16,128], index: 5, kind: input, shape index: {}]   ;;  %s6029_s2 = inlined_call_operand.vmem [shape: bf16[512,16], index: 2, kind: input, shape index: {}]   ;;  %s6030_s4 = inlined_call_operand.vmem [shape: f32[1,128], index: 4, kind: input, shape index: {}]   ;;  %s6031_s1 = inlined_call_operand.vmem [shape: s32[1,512], index: 1, kind: input, shape index: {}]   ;;  %s6032_s6 = inlined_call_operand.vmem [shape: f32[1,64,128], index: 6, kind: output, shape index: {}]  }
   0x1   :  { %v3507_v0 = vld [vmem:[%s6026_s3] sm:$0xff]   ;;  %v3508_v1 = vld [vmem:[%s6026_s3 + $0x8] sm:$0xff]   ;;  %v3509_v2 = vld [vmem:[%s6026_s3 + $0x10] sm:$0xff]  }
   0x2   :  { %3343 = vmatprep.subr.bf16.mxu0 %v3507_v0  ;;  %v3510_v3 = vld [vmem:[%s6026_s3 + $0x18] sm:$0xff]   ;;  %v3515_v4 = vld [vmem:[%s6027_s0] sm:$0xff]   ;;  %v3512_v6 = vld [vmem:[%s6026_s3 + $0x28] sm:$0xff]  }
   0x3   :  { %3344 = vmatpush3.bf16.msra.mxu0 %v3507_v0  ;;  %3359 = vmatprep.mubr.bf16.mxu0 %v3515_v4  ;;  %v3511_v5 = vld [vmem:[%s6026_s3 + $0x20] sm:$0xff]   ;;  %v3513_v7 = vld [vmem:[%s6026_s3 + $0x30] sm:$0xff]   ;;  %v3527_v10 = vld [vmem:[%s6029_s2 + $0x8] sm:$0xff]  }
   0x4   :  { %3345 = vmatprep.subr.bf16.mxu0 %v3508_v1  ;;  %v3525_v8 = vld [vmem:[%s6028_s5] sm:$0xff]   ;;  %v3530_v11 = vld [vmem:[%s6029_s2 + $0x10] sm:$0xff]   ;;  %v3514_v12 = vld [vmem:[%s6026_s3 + $0x38] sm:$0xff]  }
   0x5   :  { %v3526_v9 = vld [vmem:[%s6029_s2] sm:$0xff]   ;;  %3423 = vmatprep.subr.bf16.mxu1 %v3525_v8  ;;  %v3531_v13 = vld [vmem:[%s6029_s2 + $0x18] sm:$0xff]   ;;  %v3516_v15 = vld [vmem:[%s6027_s0 + $0x8] sm:$0xff]  }
   0x6   :  { %3424 = vmatpush3.bf16.msra.mxu1 %v3525_v8  ;;  %3425 = vmatprep.mubr.msk.bf16.mxu1 %vm2163_vm0, %v3526_v9  ;;  %v3534_v14 = vld [vmem:[%s6029_s2 + $0x20] sm:$0xff]   ;;  %v3517_v16 = vld [vmem:[%s6027_s0 + $0x10] sm:$0xff]   ;;  %v3535_v17 = vld [vmem:[%s6029_s2 + $0x28] sm:$0xff]  }
   0x7   :  { %3346 = vmatpush3.bf16.msra.mxu0 %v3508_v1  ;;  %v3538_v18 = vld [vmem:[%s6029_s2 + $0x30] sm:$0xff]   ;;  %v3518_v19 = vld [vmem:[%s6027_s0 + $0x18] sm:$0xff]   ;;  %v3519_v20 = vld [vmem:[%s6027_s0 + $0x20] sm:$0xff]  }
   0x8   :  { %3347 = vmatprep.subr.bf16.mxu0 %v3509_v2  ;;  %v3539_v21 = vld [vmem:[%s6029_s2 + $0x38] sm:$0xff]   ;;  %v3542_v22 = vld [vmem:[%s6029_s2 + $0x40] sm:$0xff]   ;;  %v3520_v23 = vld [vmem:[%s6027_s0 + $0x28] sm:$0xff]  }
   0x9   :  { %3426 = vmatmul.mubr.msk.bf16.vlgmr.msra.gmra.mrb[0].mxu1 %vm2163_vm0, %v3527_v10  ;;  %v3521_v24 = vld [vmem:[%s6027_s0 + $0x30] sm:$0xff]   ;;  %v3543_v25 = vld [vmem:[%s6029_s2 + $0x48] sm:$0xff]   ;;  %v3522_v27 = vld [vmem:[%s6027_s0 + $0x38] sm:$0xff]  }
   0xa   :  { %3429 = vmatprep.mubr.msk.bf16.mxu1 %vm2163_vm0, %v3530_v11  ;;  %v3546_v26 = vld [vmem:[%s6029_s2 + $0x50] sm:$0xff]   ;;  %v3523_v28 = vld [vmem:[%s6027_s0 + $0x40] sm:$0xff]   ;;  %v3547_v29 = vld [vmem:[%s6029_s2 + $0x58] sm:$0xff]  }
   0xb   :  { %3348 = vmatpush3.bf16.msra.mxu0 %v3509_v2  ;;  %v3550_v30 = vld [vmem:[%s6029_s2 + $0x60] sm:$0xff]   ;;  %v3524_v31 = vld [vmem:[%s6027_s0 + $0x48] sm:$0xff]   ;;  %v3528_v32 = vld [vmem:[%s6027_s0 + $0x50] sm:$0xff]  }
   0xc   :  { %3349 = vmatprep.subr.bf16.mxu0 %v3510_v3  ;;  %v3551_v33 = vld [vmem:[%s6029_s2 + $0x68] sm:$0xff]   ;;  %v3554_v34 = vld [vmem:[%s6029_s2 + $0x70] sm:$0xff]   ;;  %v3529_v35 = vld [vmem:[%s6027_s0 + $0x58] sm:$0xff]  }
   0xd   :  { %v3532_v36 = vld [vmem:[%s6027_s0 + $0x60] sm:$0xff]   ;;  %v3555_v37 = vld [vmem:[%s6029_s2 + $0x78] sm:$0xff]   ;;  %v3533_v39 = vld [vmem:[%s6027_s0 + $0x68] sm:$0xff]  }
   0xe   :  { %v3558_v38 = vld [vmem:[%s6029_s2 + $0x80] sm:$0xff]   ;;  %v3536_v40 = vld [vmem:[%s6027_s0 + $0x70] sm:$0xff]   ;;  %v3559_v41 = vld [vmem:[%s6029_s2 + $0x88] sm:$0xff]  }
   0xf   :  { %3350 = vmatpush3.bf16.msra.mxu0 %v3510_v3  ;;  %v3562_v42 = vld [vmem:[%s6029_s2 + $0x90] sm:$0xff]   ;;  %v3537_v43 = vld [vmem:[%s6027_s0 + $0x78] sm:$0xff]   ;;  %v3540_v44 = vld [vmem:[%s6027_s0 + $0x80] sm:$0xff]  }
  0x10   :  { %3351 = vmatprep.subr.bf16.mxu0 %v3511_v5  ;;  %v3563_v45 = vld [vmem:[%s6029_s2 + $0x98] sm:$0xff]   ;;  %v3566_v46 = vld [vmem:[%s6029_s2 + $0xa0] sm:$0xff]   ;;  %v3541_v47 = vld [vmem:[%s6027_s0 + $0x88] sm:$0xff]  }
  0x11   :  { %3430 = vmatmul.mubr.msk.bf16.gmra.mrb[4].mxu1 %vm2163_vm0, %v3531_v13  ;;  %v3544_v48 = vld [vmem:[%s6027_s0 + $0x90] sm:$0xff]   ;;  %v3567_v49 = vld [vmem:[%s6029_s2 + $0xa8] sm:$0xff]   ;;  %v3545_v51 = vld [vmem:[%s6027_s0 + $0x98] sm:$0xff]  }
  0x12   :  { %3433 = vmatprep.mubr.msk.bf16.mxu1 %vm2163_vm0, %v3534_v14  ;;  %v3570_v50 = vld [vmem:[%s6029_s2 + $0xb0] sm:$0xff]   ;;  %v3548_v52 = vld [vmem:[%s6027_s0 + $0xa0] sm:$0xff]   ;;  %v3571_v53 = vld [vmem:[%s6029_s2 + $0xb8] sm:$0xff]  }
  0x13   :  { %3352 = vmatpush3.bf16.msra.mxu0 %v3511_v5  ;;  %v3572_v54 = vld [vmem:[%s6029_s2 + $0xc0] sm:$0xff]   ;;  %v3549_v55 = vld [vmem:[%s6027_s0 + $0xa8] sm:$0xff]   ;;  %v3552_v56 = vld [vmem:[%s6027_s0 + $0xb0] sm:$0xff]  }
  0x14   :  { %3353 = vmatprep.subr.bf16.mxu0 %v3512_v6  ;;  %v3573_v57 = vld [vmem:[%s6029_s2 + $0xc8] sm:$0xff]   ;;  %v3574_v58 = vld [vmem:[%s6029_s2 + $0xd0] sm:$0xff]   ;;  %v3553_v59 = vld [vmem:[%s6027_s0 + $0xb8] sm:$0xff]  }
  0x15   :  { %v3556_v60 = vld [vmem:[%s6027_s0 + $0xc0] sm:$0xff]   ;;  %v3575_v61 = vld [vmem:[%s6029_s2 + $0xd8] sm:$0xff]   ;;  %v3557_v63 = vld [vmem:[%s6027_s0 + $0xc8] sm:$0xff]  }
  0x16   :  { %v3576_v62 = vld [vmem:[%s6029_s2 + $0xe0] sm:$0xff]   ;;  %v3560_v0 = vld [vmem:[%s6027_s0 + $0xd0] sm:$0xff]   ;;  %v3577_v1 = vld [vmem:[%s6029_s2 + $0xe8] sm:$0xff]  }
  0x17   :  { %3354 = vmatpush3.bf16.msra.mxu0 %v3512_v6  ;;  %v3578_v2 = vld [vmem:[%s6029_s2 + $0xf0] sm:$0xff]   ;;  %v3561_v3 = vld [vmem:[%s6027_s0 + $0xd8] sm:$0xff]   ;;  %v3564_v4 = vld [vmem:[%s6027_s0 + $0xe0] sm:$0xff]  }
  0x18   :  { %3355 = vmatprep.subr.bf16.mxu0 %v3513_v7  ;;  %v3579_v5 = vld [vmem:[%s6029_s2 + $0xf8] sm:$0xff]   ;;  %v3565_v6 = vld [vmem:[%s6027_s0 + $0xe8] sm:$0xff]   ;;  %v4136_v13 = vld [vmem:[%s6030_s4] ss:$0 sm:$0xff] }
  0x19   :  { %3434 = vmatmul.mubr.msk.bf16.gmra.mrb[8].mxu1 %vm2163_vm0, %v3535_v17  ;;  %v3569_v8 = vld [vmem:[%s6027_s0 + $0xf8] sm:$0xff]  }
  0x1a   :  { %3437 = vmatprep.mubr.msk.bf16.mxu1 %vm2163_vm0, %v3538_v18 }
  0x1b   :  { %3356 = vmatpush3.bf16.msra.mxu0 %v3513_v7  ;;  %v3568_v7 = vld [vmem:[%s6027_s0 + $0xf0] sm:$0xff]  }
  0x1c   :  { %3357 = vmatprep.subr.bf16.mxu0 %v3514_v12 }
  0x1f   :  { %3358 = vmatpush3.bf16.msra.mxu0 %v3514_v12 }
  0x21   :  { %3438 = vmatmul.mubr.msk.bf16.gmra.mrb[12].mxu1 %vm2163_vm0, %v3539_v21 }
  0x22   :  { %3360 = vmatmul.mubr.bf16.vlgmr.msra.gmra.mrb[0].mxu0 %v3516_v15  ;;  %3441 = vmatprep.mubr.msk.bf16.mxu1 %vm2163_vm0, %v3542_v22 }
  0x23   :  { %3363 = vmatprep.mubr.bf16.mxu0 %v3517_v16 }
  0x29   :  { %3442 = vmatmul.mubr.msk.bf16.gmra.mrb[16].mxu1 %vm2163_vm0, %v3543_v25 }
  0x2a   :  { %3364 = vmatmul.mubr.bf16.gmra.mrb[4].mxu0 %v3518_v19  ;;  %3445 = vmatprep.mubr.msk.bf16.mxu1 %vm2163_vm0, %v3546_v26 }
  0x2b   :  { %3367 = vmatprep.mubr.bf16.mxu0 %v3519_v20 }
  0x31   :  { %3446 = vmatmul.mubr.msk.bf16.gmra.mrb[20].mxu1 %vm2163_vm0, %v3547_v29 }
  0x32   :  { %3368 = vmatmul.mubr.bf16.gmra.mrb[8].mxu0 %v3520_v23  ;;  %3449 = vmatprep.mubr.msk.bf16.mxu1 %vm2163_vm0, %v3550_v30 }
  0x33   :  { %3371 = vmatprep.mubr.bf16.mxu0 %v3521_v24 }
  0x39   :  { %3450 = vmatmul.mubr.msk.bf16.gmra.mrb[24].mxu1 %vm2163_vm0, %v3551_v33 }
  0x3a   :  { %3372 = vmatmul.mubr.bf16.gmra.mrb[12].mxu0 %v3522_v27  ;;  %3453 = vmatprep.mubr.msk.bf16.mxu1 %vm2163_vm0, %v3554_v34 }
  0x3b   :  { %3375 = vmatprep.mubr.bf16.mxu0 %v3523_v28 }
  0x41   :  { %3454 = vmatmul.mubr.msk.bf16.gmra.mrb[28].mxu1 %vm2163_vm0, %v3555_v37 }
  0x42   :  { %3376 = vmatmul.mubr.bf16.gmra.mrb[16].mxu0 %v3524_v31  ;;  %3457 = vmatprep.mubr.msk.bf16.mxu1 %vm2163_vm0, %v3558_v38 }
  0x43   :  { %3379 = vmatprep.mubr.bf16.mxu0 %v3528_v32 }
  0x49   :  { %3458 = vmatmul.mubr.msk.bf16.gmra.mrb[32].mxu1 %vm2163_vm0, %v3559_v41 }
  0x4a   :  { %3380 = vmatmul.mubr.bf16.gmra.mrb[20].mxu0 %v3529_v35  ;;  %3461 = vmatprep.mubr.msk.bf16.mxu1 %vm2163_vm0, %v3562_v42 }
  0x4b   :  { %3383 = vmatprep.mubr.bf16.mxu0 %v3532_v36 }
  0x51   :  { %3462 = vmatmul.mubr.msk.bf16.gmra.mrb[36].mxu1 %vm2163_vm0, %v3563_v45 }
  0x52   :  { %3384 = vmatmul.mubr.bf16.gmra.mrb[24].mxu0 %v3533_v39  ;;  %3465 = vmatprep.mubr.msk.bf16.mxu1 %vm2163_vm0, %v3566_v46 }
  0x53   :  { %3387 = vmatprep.mubr.bf16.mxu0 %v3536_v40 }
  0x59   :  { %3466 = vmatmul.mubr.msk.bf16.gmra.mrb[40].mxu1 %vm2163_vm0, %v3567_v49 }
  0x5a   :  { %3388 = vmatmul.mubr.bf16.gmra.mrb[28].mxu0 %v3537_v43  ;;  %3469 = vmatprep.mubr.msk.bf16.mxu1 %vm2163_vm0, %v3570_v50 }
  0x5b   :  { %3391 = vmatprep.mubr.bf16.mxu0 %v3540_v44 }
  0x61   :  { %3470 = vmatmul.mubr.msk.bf16.gmra.mrb[44].mxu1 %vm2163_vm0, %v3571_v53 }
  0x62   :  { %3392 = vmatmul.mubr.bf16.gmra.mrb[32].mxu0 %v3541_v47  ;;  %3473 = vmatprep.mubr.msk.bf16.mxu1 %vm2163_vm0, %v3572_v54 }
  0x63   :  { %3395 = vmatprep.mubr.bf16.mxu0 %v3544_v48 }
  0x69   :  { %3474 = vmatmul.mubr.msk.bf16.gmra.mrb[48].mxu1 %vm2163_vm0, %v3573_v57 }
  0x6a   :  { %3396 = vmatmul.mubr.bf16.gmra.mrb[36].mxu0 %v3545_v51  ;;  %3477 = vmatprep.mubr.msk.bf16.mxu1 %vm2163_vm0, %v3574_v58 }
  0x6b   :  { %3399 = vmatprep.mubr.bf16.mxu0 %v3548_v52 }
  0x71   :  { %3478 = vmatmul.mubr.msk.bf16.gmra.mrb[52].mxu1 %vm2163_vm0, %v3575_v61 }
  0x72   :  { %3400 = vmatmul.mubr.bf16.gmra.mrb[40].mxu0 %v3549_v55  ;;  %3481 = vmatprep.mubr.msk.bf16.mxu1 %vm2163_vm0, %v3576_v62 }
  0x73   :  { %3403 = vmatprep.mubr.bf16.mxu0 %v3552_v56 }
  0x79   :  { %3482 = vmatmul.mubr.msk.bf16.gmra.mrb[56].mxu1 %vm2163_vm0, %v3577_v1 }
  0x7a   :  { %3404 = vmatmul.mubr.bf16.gmra.mrb[44].mxu0 %v3553_v59  ;;  %3485 = vmatprep.mubr.msk.bf16.mxu1 %vm2163_vm0, %v3578_v2 }
  0x7b   :  { %3407 = vmatprep.mubr.bf16.mxu0 %v3556_v60 }
  0x81   :  { %3486 = vmatmul.mubr.msk.bf16.gmra.mrb[60].mxu1 %vm2163_vm0, %v3579_v5 }
  0x82   :  { %3408 = vmatmul.mubr.bf16.gmra.mrb[48].mxu0 %v3557_v63 }
  0x83   :  { %3411 = vmatprep.mubr.bf16.mxu0 %v3560_v0 }
  0x8a   :  { %3412 = vmatmul.mubr.bf16.gmra.mrb[52].mxu0 %v3561_v3 }
  0x8b   :  { %3415 = vmatprep.mubr.bf16.mxu0 %v3564_v4 }
  0x92   :  { %3416 = vmatmul.mubr.bf16.gmra.mrb[56].mxu0 %v3565_v6 }
  0x93   :  { %3419 = vmatprep.mubr.bf16.mxu0 %v3568_v7 }
  0x9a   :  { %3420 = vmatmul.mubr.bf16.gmra.mrb[60].mxu0 %v3569_v8 }
  0xdc   :  { %v4125_v9 = vpop.f32.mrb[0].mxu1 }
  0xdd   :  { %v4127_v10 = vpop.f32.mrb[1].mxu1 }
  0xde   :  { %v4129_v11 = vpop.f32.mrb[2].mxu1 }
  0xdf   :  { %v4131_v12 = vpop.f32.mrb[3].mxu1 }
  0xe4   :  { %v4138_v14 = vpop.f32.mrb[4].mxu1 }
  0xe5   :  { %v4140_v15 = vpop.f32.mrb[5].mxu1 }
  0xe6   :  { %v4142_v17 = vpop.f32.mrb[6].mxu1 }
  0xe7   :  { %v4147_v20 = vpop.f32.mrb[7].mxu1 }
  0xec   :  { %v4157_v29 = vpop.f32.mrb[8].mxu1 }
  0xed   :  { %v4159_v31 = vpop.f32.mrb[9].mxu1 }
  0xee   :  { %v4164_v35 = vpop.f32.mrb[10].mxu1 }
  0xef   :  { %v4169_v38 = vpop.f32.mrb[11].mxu1 }
  0xf0   :  { %6088 = vst [vmem:[#allocation2_spill] sm:$0xff] %v4169_v38 }
  0xf4   :  { %v4181_v48 = vpop.f32.mrb[12].mxu1 }
  0xf5   :  { %v3361_v16 = vpop.f32.mrb[0].mxu0  ;;  %6089 = vst [vmem:[#allocation3_spill] sm:$0xff] %v4181_v48  ;;  %v4186_v50 = vpop.f32.mrb[13].mxu1 }
  0xf6   :  { %v4145_v18 = vadd.f32 %v3361_v16, %v4136_v13  ;;  %v460_v19 = vpop.f32.mrb[1].mxu0  ;;  %6090 = vst [vmem:[#allocation4_spill] sm:$0xff] %v4186_v50  ;;  %v4189_v54 = vpop.f32.mrb[14].mxu1 }
  0xf7   :  { %v4150_v21 = vadd.f32 %v4136_v13, %v460_v19  ;;  %v3362_v22 = vpop.f32.mrb[2].mxu0  ;;  %6091 = vst [vmem:[#allocation5_spill] sm:$0xff] %v4189_v54  ;;  %v4194_v58 = vpop.f32.mrb[15].mxu1 }
  0xf8   :  { %v909_v23 = vand.u32 2147483647, %v4145_v18  ;;  %v463_v24 = vpop.f32.mrb[3].mxu0  ;;  %v4155_v28 = vadd.f32 %v3362_v22, %v4136_v13  ;;  %6092 = vst [vmem:[#allocation6_spill] sm:$0xff] %v4194_v58  ;;  %vm781_vm1 = vcmp.ne.f32.partialorder %v4145_v18, %v4145_v18 }
  0xf9   :  { %v907_v25 = vand.u32 2147483647, %v4150_v21  ;;  %v4162_v33 = vadd.f32 %v4136_v13, %v463_v24  ;;  %vm779_vm3 = vcmp.ne.f32.partialorder %v4150_v21, %v4150_v21 }
  0xfa   :  { %v973_v26 = vsub.f32 0.0, %v909_v23  ;;  %v910_v39 = vand.u32 2147483647, %v4155_v28  ;;  %vm782_vm5 = vcmp.ne.f32.partialorder %v4155_v28, %v4155_v28 }
  0xfb   :  { %v971_v27 = vsub.f32 0.0, %v907_v25  ;;  %v908_v43 = vand.u32 2147483647, %v4162_v33  ;;  %vm780_vm7 = vcmp.ne.f32.partialorder %v4162_v33, %v4162_v33 }
  0xfc   :  { %v1039_v30 = vmul.f32 1.442695, %v973_v26  ;;  %v974_v46 = vsub.f32 0.0, %v910_v39 }
  0xfd   :  { %v1035_v32 = vmul.f32 1.442695, %v971_v27  ;;  %v3365_v34 = vpop.f32.mrb[4].mxu0  ;;  %v972_v51 = vsub.f32 0.0, %v908_v43  ;;  %v4217_v27 = vpop.f32.mrb[16].mxu1 }
  0xfe   :  { %3580 = vpow2.f32 %v1039_v30  ;;  %v4167_v36 = vadd.f32 %v3365_v34, %v4136_v13  ;;  %v476_v37 = vpop.f32.mrb[5].mxu0  ;;  %v1041_v59 = vmul.f32 1.442695, %v974_v46  ;;  %6093 = vst [vmem:[#allocation7_spill] sm:$0xff] %v4217_v27 }
  0xff   :  { %v4173_v40 = vadd.f32 %v4136_v13, %v476_v37  ;;  %v3366_v41 = vpop.f32.mrb[6].mxu0  ;;  %3582 = vpow2.f32 %v1035_v32  ;;  %v1037_v5 = vmul.f32 1.442695, %v972_v51  ;;  %v4221_v37 = vpop.f32.mrb[17].mxu1 }
 0x100   :  { %v479_v42 = vpop.f32.mrb[7].mxu0  ;;  %v4177_v44 = vadd.f32 %v3366_v41, %v4136_v13  ;;  %v913_v45 = vand.u32 2147483647, %v4167_v36  ;;  %3584 = vpow2.f32 %v1041_v59  ;;  %6094 = vst [vmem:[#allocation8_spill] sm:$0xff] %v4221_v37  ;;  %vm785_vm9 = vcmp.ne.f32.partialorder %v4167_v36, %v4167_v36 }
 0x101   :  { %v911_v47 = vand.u32 2147483647, %v4173_v40  ;;  %v4184_v49 = vadd.f32 %v4136_v13, %v479_v42  ;;  %vm783_vm11 = vcmp.ne.f32.partialorder %v4173_v40, %v4173_v40 }
 0x102   :  { %v914_v52 = vand.u32 2147483647, %v4177_v44  ;;  %v977_v55 = vsub.f32 0.0, %v913_v45  ;;  %vm786_vm12 = vcmp.ne.f32.partialorder %v4177_v44, %v4177_v44 }
 0x103   :  { %v975_v60 = vsub.f32 0.0, %v911_v47  ;;  %v912_v1 = vand.u32 2147483647, %v4184_v49  ;;  %vm784_vm14 = vcmp.ne.f32.partialorder %v4184_v49, %v4184_v49 }
 0x104   :  { %v978_v6 = vsub.f32 0.0, %v914_v52  ;;  %v1047_v16 = vmul.f32 1.442695, %v977_v55  ;;  %v4229_v52 = vpop.f32.mrb[18].mxu1 }
 0x105   :  { %v3369_v53 = vpop.f32.mrb[8].mxu0  ;;  %v1043_v25 = vmul.f32 1.442695, %v975_v60  ;;  %v976_v32 = vsub.f32 0.0, %v912_v1  ;;  %6095 = vst [vmem:[#allocation9_spill] sm:$0xff] %v4229_v52  ;;  %v4233_v60 = vpop.f32.mrb[19].mxu1 }
 0x106   :  { %v4192_v56 = vadd.f32 %v3369_v53, %v4136_v13  ;;  %v492_v57 = vpop.f32.mrb[9].mxu0  ;;  %v1049_v41 = vmul.f32 1.442695, %v978_v6  ;;  %6096 = vst [vmem:[#allocation10_spill] sm:$0xff] %v4233_v60 }
 0x107   :  { %v4197_v61 = vadd.f32 %v4136_v13, %v492_v57  ;;  %v3370_v62 = vpop.f32.mrb[10].mxu0 }
 0x108   :  { %v4199_v63 = vpop.eup %3580  ;;  %v4204_v2 = vadd.f32 %v3370_v62, %v4136_v13  ;;  %v495_v3 = vpop.f32.mrb[11].mxu0  ;;  %v917_v19 = vand.u32 2147483647, %v4192_v56  ;;  %v1045_v62 = vmul.f32 1.442695, %v976_v32 }
 0x109   :  { %v4208_v7 = vadd.f32 %v4136_v13, %v495_v3  ;;  %v1181_v22 = vadd.f32 1.0, %v4199_v63  ;;  %v4213_v23 = vpop.eup %3582  ;;  %v915_v26 = vand.u32 2147483647, %v4197_v61  ;;  %v1184_v6 = vmul.f32 -0.5, %v4199_v63 }
 0x10a   :  { %v918_v34 = vand.u32 2147483647, %v4204_v2  ;;  %v981_v45 = vsub.f32 0.0, %v917_v19  ;;  %v1163_v51 = vadd.f32 1.0, %v4213_v23 }
 0x10b   :  { %3586 = vlog2.f32 %v1181_v22  ;;  %v916_v42 = vand.u32 2147483647, %v4208_v7  ;;  %v979_v57 = vsub.f32 0.0, %v915_v26  ;;  %v1187_v22 = vand.u32 2147483647, %v4199_v63 }
 0x10c   :  { %3588 = vpow2.f32 %v1037_v5  ;;  %v982_v1 = vsub.f32 0.0, %v918_v34 }
 0x10d   :  { %v3373_v43 = vpop.f32.mrb[12].mxu0  ;;  %3590 = vpow2.f32 %v1047_v16  ;;  %v980_v19 = vsub.f32 0.0, %v916_v42  ;;  %v1051_v34 = vmul.f32 1.442695, %v979_v57  ;;  %vm4258_vm2 = vcmp.lt.f32.partialorder %v1187_v22, 0.0004427343 }
 0x10e   :  { %v4226_v46 = vadd.f32 %v3373_v43, %v4136_v13  ;;  %v508_v47 = vpop.f32.mrb[13].mxu0  ;;  %3592 = vpow2.f32 %v1043_v25  ;;  %v1055_v25 = vmul.f32 1.442695, %v981_v45  ;;  %v1057_v42 = vmul.f32 1.442695, %v982_v1 }
 0x10f   :  { %v3374_v59 = vpop.f32.mrb[14].mxu0  ;;  %v4236_v3 = vadd.f32 %v4136_v13, %v508_v47  ;;  %3594 = vpow2.f32 %v1049_v41  ;;  %v4250_v41 = vpop.f32.mrb[20].mxu1  ;;  %v1053_v57 = vmul.f32 1.442695, %v980_v19 }
 0x110   :  { %v511_v5 = vpop.f32.mrb[15].mxu0  ;;  %v921_v26 = vand.u32 2147483647, %v4226_v46  ;;  %v4243_v43 = vadd.f32 %v3374_v59, %v4136_v13  ;;  %3596 = vlog2.f32 %v1163_v51  ;;  %6100 = vst [vmem:[#allocation14_spill] sm:$0xff] %v4250_v41  ;;  %v1185_v59 = vadd.f32 1.0, %v1184_v6  ;;  %v4256_v51 = vpop.eup %3584 }
 0x111   :  { %6097 = vst [vmem:[#allocation11_spill] sm:$0xff] %v4236_v3  ;;  %v4248_v55 = vadd.f32 %v4136_v13, %v511_v5  ;;  %v919_v45 = vand.u32 2147483647, %v4236_v3  ;;  %3598 = vpow2.f32 %v1045_v62  ;;  %v1166_v5 = vmul.f32 -0.5, %v4213_v23  ;;  %v4267_v30 = vpop.f32.mrb[21].mxu1 }
 0x112   :  { %6098 = vst [vmem:[#allocation12_spill] sm:$0xff] %v4243_v43  ;;  %3600 = vpow2.f32 %v1055_v25  ;;  %v985_v16 = vsub.f32 0.0, %v921_v26  ;;  %v922_v53 = vand.u32 2147483647, %v4243_v43  ;;  %6104 = vst [vmem:[#allocation16_spill] sm:$0xff] %v4267_v30  ;;  %v4275_v25 = vpop.f32.mrb[22].mxu1  ;;  %v1186_v0 = vmul.f32 %v4199_v63, %v1185_v59 }
 0x113   :  { %6099 = vst [vmem:[#allocation13_spill] sm:$0xff] %v4248_v55  ;;  %3602 = vpow2.f32 %v1051_v34  ;;  %v920_v19 = vand.u32 2147483647, %v4248_v55  ;;  %6106 = vst [vmem:[#allocation18_spill] sm:$0xff] %v4275_v25  ;;  %v983_v4 = vsub.f32 0.0, %v919_v45  ;;  %v1190_v41 = vadd.f32 1.0, %v4256_v51 }
 0x114   :  { %v1169_v30 = vand.u32 2147483647, %v4213_v23  ;;  %v4282_v34 = vpop.f32.mrb[23].mxu1  ;;  %3604 = vpow2.f32 %v1057_v42  ;;  %v1167_v45 = vadd.f32 1.0, %v1166_v5  ;;  %v1063_v42 = vmul.f32 1.442695, %v985_v16 }
 0x115   :  { %v3377_v32 = vpop.f32.mrb[16].mxu0  ;;  %v3587_v1 = vpop.eup %3586  ;;  %6107 = vst [vmem:[#allocation19_spill] sm:$0xff] %v4282_v34  ;;  %3606 = vpow2.f32 %v1053_v57  ;;  %v986_v52 = vsub.f32 0.0, %v922_v53  ;;  %v1059_v5 = vmul.f32 1.442695, %v983_v4  ;;  %v984_v57 = vsub.f32 0.0, %v920_v19 }
 0x116   :  { %v4265_v39 = vadd.f32 %v3377_v32, %v4136_v13  ;;  %v524_v6 = vpop.f32.mrb[17].mxu0  ;;  %v4269_v62 = vpop.eup %3588  ;;  %v1183_v8 = vmul.f32 0.6931472, %v3587_v1  ;;  %vm4303_vm4 = vcmp.lt.f32.partialorder %v1169_v30, 0.0004427343  ;;  %3608 = vlog2.f32 %v1190_v41 }
 0x117   :  { %v4273_v22 = vadd.f32 %v4136_v13, %v524_v6  ;;  %v3378_v24 = vpop.f32.mrb[18].mxu0  ;;  %v4277_v26 = vpop.eup %3590  ;;  %v1168_v16 = vmul.f32 %v4213_v23, %v1167_v45  ;;  %3610 = vpow2.f32 %v1063_v42  ;;  %v1061_v58 = vmul.f32 1.442695, %v984_v57 }
 0x118   :  { %6103 = vst [vmem:[#allocation15_spill] sm:$0xff] %v4265_v39  ;;  %v527_v32 = vpop.f32.mrb[19].mxu0  ;;  %v4284_v60 = vpop.eup %3592  ;;  %v4288_v1 = vadd.f32 %v3378_v24, %v4136_v13  ;;  %v925_v63 = vand.u32 2147483647, %v4265_v39  ;;  %v1189_v34 = vsel %vm4258_vm2, %v1186_v0, %v1183_v8  ;;  %v6110_v24 = vmax.f32 %v4145_v18, 0.0 }
 0x119   :  { %6105 = vst [vmem:[#allocation17_spill] sm:$0xff] %v4273_v22  ;;  %v923_v59 = vand.u32 2147483647, %v4273_v22  ;;  %v4296_v25 = vpop.eup %3594  ;;  %v4299_v6 = vadd.f32 %v4136_v13, %v527_v32  ;;  %v4332_v48 = vpop.f32.mrb[24].mxu1  ;;  %3612 = vpow2.f32 %v1059_v5  ;;  %vm789_vm2 = vcmp.ne.f32.partialorder %v4192_v56, %v4192_v56 }
 0x11a   :  { %6108 = vst [vmem:[#allocation20_spill] sm:$0xff] %v4288_v1  ;;  %v1741_v37 = vadd.f32 %v1189_v34, %v6110_v24  ;;  %v3597_v27 = vpop.eup %3596  ;;  %v926_v0 = vand.u32 2147483647, %v4288_v1  ;;  %v989_v4 = vsub.f32 0.0, %v925_v63  ;;  %6115 = vst [vmem:[#allocation23_spill] sm:$0xff] %v4332_v48 }
 0x11b   :  { %6109 = vst [vmem:[#allocation21_spill] sm:$0xff] %v4299_v6  ;;  %v1165_v53 = vmul.f32 0.6931472, %v3597_v27  ;;  %v987_v19 = vsub.f32 0.0, %v923_v59  ;;  %v4314_v24 = vpop.eup %3598  ;;  %v924_v54 = vand.u32 2147483647, %v4299_v6 }
 0x11c   :  { %v1805_v8 = vsel %vm781_vm1, %v4145_v18, %v1741_v37  ;;  %v1193_v18 = vmul.f32 -0.5, %v4256_v51  ;;  %v4321_v23 = vpop.eup %3600  ;;  %v1065_v37 = vmul.f32 1.442695, %v986_v52  ;;  %v6114_v59 = vmax.f32 %v4150_v21, 0.0 }
 0x11d   :  { %v3381_v47 = vpop.f32.mrb[20].mxu0  ;;  %v2999_v30 = vadd.f32 -0.6931472, %v1805_v8  ;;  %v1171_v50 = vsel %vm4303_vm4, %v1168_v16, %v1165_v53  ;;  %v4329_v32 = vpop.eup %3602  ;;  %v990_v53 = vsub.f32 0.0, %v926_v0  ;;  %v1172_v16 = vadd.f32 1.0, %v4269_v62 }
 0x11e   :  { %v540_v34 = vpop.f32.mrb[21].mxu0  ;;  %v1739_v8 = vadd.f32 %v1171_v50, %v6114_v59  ;;  %v1071_v52 = vmul.f32 1.442695, %v989_v4  ;;  %v1067_v43 = vmul.f32 1.442695, %v987_v19  ;;  %v988_v50 = vsub.f32 0.0, %v924_v54 }
 0x11f   :  { %v3382_v27 = vpop.f32.mrb[22].mxu0  ;;  %v4325_v63 = vmul.f32 %v4125_v9, %v2999_v30  ;;  %v4338_v30 = vpop.eup %3604  ;;  %v1194_v42 = vadd.f32 1.0, %v1193_v18  ;;  %3614 = vlog2.f32 %v1172_v16  ;;  %v1196_v0 = vand.u32 2147483647, %v4256_v51 }
 0x120   :  { %v543_v41 = vpop.f32.mrb[23].mxu0  ;;  %v1803_v9 = vsel %vm779_vm3, %v4150_v21, %v1739_v8  ;;  %v4342_v57 = vpop.eup %3606  ;;  %3616 = vpow2.f32 %v1065_v37  ;;  %v4347_v4 = vadd.f32 %v3381_v47, %v4136_v13  ;;  %v1073_v21 = vmul.f32 1.442695, %v990_v53 }
 0x121   :  { %6113 = vst [vmem:[#allocation22_spill] sm:$0xff] %v4325_v63  ;;  %v2997_v59 = vadd.f32 -0.6931472, %v1803_v9  ;;  %3618 = vpow2.f32 %v1061_v58  ;;  %v4353_v19 = vadd.f32 %v4136_v13, %v540_v34  ;;  %v4357_v8 = vpop.f32.mrb[25].mxu1  ;;  %v3609_v37 = vpop.eup %3608  ;;  %v1175_v9 = vmul.f32 -0.5, %v4269_v62 }
 0x122   :  { %6116 = vst [vmem:[#allocation24_spill] sm:$0xff] %v4347_v4  ;;  %6119 = vst [vmem:[#allocation27_spill] sm:$0xff] %v4357_v8  ;;  %3620 = vpow2.f32 %v1071_v52  ;;  %v1217_v47 = vadd.f32 1.0, %v4277_v26  ;;  %v1192_v53 = vmul.f32 0.6931472, %v3609_v37  ;;  %v1195_v34 = vmul.f32 %v4256_v51, %v1194_v42  ;;  %v4385_v37 = vpop.eup %3610 }
 0x123   :  { %v4350_v54 = vmul.f32 %v2997_v59, %v4127_v10  ;;  %6118 = vst [vmem:[#allocation26_spill] sm:$0xff] %v4353_v19  ;;  %3622 = vpow2.f32 %v1067_v43  ;;  %v1069_v10 = vmul.f32 1.442695, %v988_v50  ;;  %vm1197_vm6 = vcmp.lt.f32.partialorder %v1196_v0, 0.0004427343  ;;  %v4373_v43 = vpop.f32.mrb[26].mxu1 }
 0x124   :  { %v929_v59 = vand.u32 2147483647, %v4347_v4  ;;  %v4367_v5 = vadd.f32 %v3382_v27, %v4136_v13  ;;  %3624 = vlog2.f32 %v1217_v47  ;;  %v1198_v16 = vsel %vm1197_vm6, %v1195_v34, %v1192_v53  ;;  %6121 = vst [vmem:[#allocation29_spill] sm:$0xff] %v4373_v43  ;;  %v4390_v34 = vpop.eup %3612  ;;  %v4401_v1 = vpop.f32.mrb[27].mxu1 }
 0x125   :  { %6117 = vst [vmem:[#allocation25_spill] sm:$0xff] %v4350_v54  ;;  %v4355_v18 = vpop.f32.mrb[24].mxu0  ;;  %3626 = vpow2.f32 %v1073_v21  ;;  %v927_v45 = vand.u32 2147483647, %v4353_v19  ;;  %v6122_v50 = vmax.f32 %v4155_v28, 0.0  ;;  %v1176_v42 = vadd.f32 1.0, %v1175_v9 }
 0x126   :  { %v4362_v58 = vpop.f32.mrb[25].mxu0  ;;  %6120 = vst [vmem:[#allocation28_spill] sm:$0xff] %v4367_v5  ;;  %v4380_v27 = vadd.f32 %v4136_v13, %v543_v41  ;;  %v1220_v0 = vmul.f32 -0.5, %v4277_v26  ;;  %3628 = vpow2.f32 %v1069_v10  ;;  %v1178_v53 = vand.u32 2147483647, %v4269_v62  ;;  %6124 = vst [vmem:[#allocation31_spill] sm:$0xff] %v4401_v1 }
 0x127   :  { %v4371_v8 = vpop.f32.mrb[26].mxu0  ;;  %v1742_v51 = vadd.f32 %v1198_v16, %v6122_v50  ;;  %v1199_v16 = vadd.f32 1.0, %v4284_v60  ;;  %v993_v50 = vsub.f32 0.0, %v929_v59  ;;  %v930_v52 = vand.u32 2147483647, %v4367_v5 }
 0x128   :  { %6123 = vst [vmem:[#allocation30_spill] sm:$0xff] %v4380_v27  ;;  %v4383_v21 = vpop.f32.mrb[27].mxu0  ;;  %v991_v47 = vsub.f32 0.0, %v927_v45  ;;  %v1226_v10 = vadd.f32 1.0, %v4296_v25  ;;  %v1221_v59 = vadd.f32 1.0, %v1220_v0  ;;  %v1208_v3 = vadd.f32 1.0, %v4314_v24 }
 0x129   :  { %v1806_v41 = vsel %vm782_vm5, %v4155_v28, %v1742_v51  ;;  %v3615_v43 = vpop.eup %3614  ;;  %3630 = vlog2.f32 %v1199_v16  ;;  %v1177_v28 = vmul.f32 %v4269_v62, %v1176_v42  ;;  %v928_v51 = vand.u32 2147483647, %v4380_v27 }
 0x12a   :  { %v3000_v48 = vadd.f32 -0.6931472, %v1806_v41  ;;  %v4403_v22 = vpop.eup %3616  ;;  %v1174_v39 = vmul.f32 0.6931472, %v3615_v43  ;;  %vm1179_vm8 = vcmp.lt.f32.partialorder %v1178_v53, 0.0004427343  ;;  %3632 = vlog2.f32 %v1226_v10 }
 0x12b   :  { %v4409_v4 = vpop.eup %3618  ;;  %v1202_v43 = vmul.f32 -0.5, %v4284_v60  ;;  %v1079_v42 = vmul.f32 1.442695, %v993_v50  ;;  %v1223_v1 = vand.u32 2147483647, %v4277_v26  ;;  %v6127_v53 = vmax.f32 %v4162_v33, 0.0 }
 0x12c   :  { %v4412_v45 = vmul.f32 %v4129_v11, %v3000_v48  ;;  %v4420_v62 = vpop.eup %3620  ;;  %v1180_v0 = vsel %vm1179_vm8, %v1177_v28, %v1174_v39  ;;  %v1075_v19 = vmul.f32 1.442695, %v991_v47  ;;  %v992_v50 = vsub.f32 0.0, %v928_v51  ;;  %v4440_v47 = vpop.f32.mrb[28].mxu1 }
 0x12d   :  { %v4399_v6 = vpop.f32.mrb[28].mxu0  ;;  %6126 = vst [vmem:[#allocation33_spill] sm:$0xff] %v4420_v62  ;;  %v4425_v11 = vpop.eup %3622  ;;  %v1740_v16 = vadd.f32 %v1180_v0, %v6127_v53  ;;  %v994_v62 = vsub.f32 0.0, %v930_v52  ;;  %v1222_v39 = vmul.f32 %v4277_v26, %v1221_v59  ;;  %v1229_v10 = vmul.f32 -0.5, %v4296_v25  ;;  %6128 = vst [vmem:[#allocation34_spill] sm:$0xff] %v4440_v47 }
 0x12e   :  { %v4407_v9 = vpop.f32.mrb[29].mxu0  ;;  %6125 = vst [vmem:[#allocation32_spill] sm:$0xff] %v4412_v45  ;;  %v3625_v38 = vpop.eup %3624  ;;  %v1203_v45 = vadd.f32 1.0, %v1202_v43  ;;  %3634 = vlog2.f32 %v1208_v3  ;;  %vm1224_vm10 = vcmp.lt.f32.partialorder %v1223_v1, 0.0004427343  ;;  %v4446_v26 = vadd.f32 %v4355_v18, %v4136_v13 }
 0x12f   :  { %v4418_v41 = vpop.f32.mrb[30].mxu0  ;;  %v4434_v28 = vpop.eup %3626  ;;  %v1804_v48 = vsel %vm780_vm7, %v4162_v33, %v1740_v16  ;;  %v1219_v63 = vmul.f32 0.6931472, %v3625_v38  ;;  %3636 = vpow2.f32 %v1079_v42  ;;  %v1205_v3 = vand.u32 2147483647, %v4284_v60 }
 0x130   :  { %v4423_v55 = vpop.f32.mrb[31].mxu0  ;;  %v2998_v0 = vadd.f32 -0.6931472, %v1804_v48  ;;  %v4448_v52 = vpop.eup %3628  ;;  %3638 = vpow2.f32 %v1075_v19  ;;  %v6129_v1 = vmax.f32 %v4167_v36, 0.0  ;;  %v1230_v43 = vadd.f32 1.0, %v1229_v10 }
 0x131   :  { %v1225_v38 = vsel %vm1224_vm10, %v1222_v39, %v1219_v63  ;;  %v1211_v18 = vmul.f32 -0.5, %v4314_v24  ;;  %v1081_v19 = vmul.f32 1.442695, %v994_v62  ;;  %v1077_v53 = vmul.f32 1.442695, %v992_v50 }
 0x132   :  { %v4455_v59 = vmul.f32 %v2998_v0, %v4131_v12  ;;  %v1745_v16 = vadd.f32 %v1225_v38, %v6129_v1  ;;  %v1204_v63 = vmul.f32 %v4284_v60, %v1203_v45  ;;  %v1232_v39 = vand.u32 2147483647, %v4296_v25 }
 0x133   :  { %v3631_v48 = vpop.eup %3630  ;;  %v933_v38 = vand.u32 2147483647, %v4446_v26  ;;  %vm1206_vm13 = vcmp.lt.f32.partialorder %v1205_v3, 0.0004427343  ;;  %v4477_v60 = vadd.f32 %v4136_v13, %v4362_v58  ;;  %v4481_v45 = vadd.f32 %v4371_v8, %v4136_v13 }
 0x134   :  { %v1809_v10 = vsel %vm785_vm9, %v4167_v36, %v1745_v16  ;;  %v1201_v0 = vmul.f32 0.6931472, %v3631_v48  ;;  %v3633_v33 = vpop.eup %3632  ;;  %v1231_v36 = vmul.f32 %v4296_v25, %v1230_v43  ;;  %v1212_v16 = vadd.f32 1.0, %v1211_v18  ;;  %v4489_v48 = vpop.f32.mrb[29].mxu1 }
 0x135   :  { %v4452_v51 = vpop.f32.mrb[32].mxu0  ;;  %v3003_v50 = vadd.f32 -0.6931472, %v1809_v10  ;;  %v1253_v3 = vadd.f32 1.0, %v4321_v23  ;;  %6130 = vst [vmem:[#allocation35_spill] sm:$0xff] %v4489_v48  ;;  %v6132_v8 = vmax.f32 %v4173_v40, 0.0  ;;  %v4499_v25 = vadd.f32 %v4136_v13, %v4383_v21 }
 0x136   :  { %v4460_v42 = vpop.f32.mrb[33].mxu0  ;;  %v1207_v12 = vsel %vm1206_vm13, %v1204_v63, %v1201_v0  ;;  %v1228_v47 = vmul.f32 0.6931472, %v3633_v33  ;;  %v1214_v5 = vand.u32 2147483647, %v4314_v24  ;;  %v997_v63 = vsub.f32 0.0, %v933_v38 }
 0x137   :  { %v4473_v62 = vpop.f32.mrb[34].mxu0  ;;  %v4492_v58 = vmul.f32 %v4138_v14, %v3003_v50  ;;  %v1743_v10 = vadd.f32 %v1207_v12, %v6132_v8  ;;  %vm1233_vm15 = vcmp.lt.f32.partialorder %v1232_v39, 0.0004427343  ;;  %6133 = vst [vmem:[#allocation37_spill] sm:$0xff] %v4499_v25  ;;  %3640 = vlog2.f32 %v1253_v3  ;;  %v4501_v43 = vpop.f32.mrb[30].mxu1 }
 0x138   :  { %v4483_v1 = vpop.f32.mrb[35].mxu0  ;;  %6134 = vst [vmem:[#allocation38_spill] sm:$0xff] %v4501_v43  ;;  %v3635_v18 = vpop.eup %3634  ;;  %v1234_v0 = vsel %vm1233_vm15, %v1231_v36, %v1228_v47  ;;  %v931_v33 = vand.u32 2147483647, %v4477_v60  ;;  %v934_v12 = vand.u32 2147483647, %v4481_v45  ;;  %v1213_v43 = vmul.f32 %v4314_v24, %v1212_v16 }
 0x139   :  { %6131 = vst [vmem:[#allocation36_spill] sm:$0xff] %v4492_v58  ;;  %v1807_v14 = vsel %vm783_vm11, %v4173_v40, %v1743_v10  ;;  %v4511_v38 = vpop.eup %3636  ;;  %v6135_v50 = vmax.f32 %v4177_v44, 0.0  ;;  %v1210_v8 = vmul.f32 0.6931472, %v3635_v18  ;;  %3642 = vpow2.f32 %v1081_v19  ;;  %v4537_v40 = vpop.f32.mrb[31].mxu1 }
 0x13a   :  { %v3001_v21 = vadd.f32 -0.6931472, %v1807_v14  ;;  %v4518_v54 = vpop.eup %3638  ;;  %vm1215_vm0 = vcmp.lt.f32.partialorder %v1214_v5, 0.0004427343  ;;  %v1256_v47 = vmul.f32 -0.5, %v4321_v23  ;;  %v1235_v18 = vadd.f32 1.0, %v4329_v32 }
 0x13b   :  { %v1746_v3 = vadd.f32 %v1234_v0, %v6135_v50  ;;  %v1216_v16 = vsel %vm1215_vm0, %v1213_v43, %v1210_v8  ;;  %3644 = vpow2.f32 %v1077_v53  ;;  %v6136_v5 = vmax.f32 %v4184_v49, 0.0  ;;  %6137 = vst [vmem:[#allocation39_spill] sm:$0xff] %v4537_v40 }
 0x13c   :  { %v4525_v10 = vmul.f32 %v3001_v21, %v4140_v15  ;;  %v932_v50 = vand.u32 2147483647, %v4499_v25  ;;  %v1087_v15 = vmul.f32 1.442695, %v997_v63  ;;  %v995_v21 = vsub.f32 0.0, %v931_v33 }
 0x13d   :  { %v4509_v39 = vpop.f32.mrb[36].mxu0  ;;  %v1810_v24 = vsel %vm786_vm12, %v4177_v44, %v1746_v3  ;;  %v1744_v0 = vadd.f32 %v1216_v16, %v6136_v5  ;;  %v998_v27 = vsub.f32 0.0, %v934_v12  ;;  %3646 = vlog2.f32 %v1235_v18 }
 0x13e   :  { %v4516_v48 = vpop.f32.mrb[37].mxu0  ;;  %v3004_v19 = vadd.f32 -0.6931472, %v1810_v24  ;;  %v1257_v43 = vadd.f32 1.0, %v1256_v47  ;;  %v1262_v3 = vadd.f32 1.0, %v4338_v30  ;;  %v1238_v12 = vmul.f32 -0.5, %v4329_v32 }
 0x13f   :  { %v4522_v36 = vpop.f32.mrb[38].mxu0  ;;  %v1808_v53 = vsel %vm784_vm14, %v4184_v49, %v1744_v0  ;;  %v1259_v63 = vand.u32 2147483647, %v4321_v23  ;;  %v1265_v5 = vmul.f32 -0.5, %v4338_v30  ;;  %v4561_v0 = vadd.f32 %v4399_v6, %v4136_v13  ;;  %v4574_v6 = vpop.f32.mrb[32].mxu1 }
 0x140   :  { %v4532_v14 = vpop.f32.mrb[39].mxu0  ;;  %v4540_v44 = vmul.f32 %v4142_v17, %v3004_v19  ;;  %v3002_v24 = vadd.f32 -0.6931472, %v1808_v53  ;;  %v996_v17 = vsub.f32 0.0, %v932_v50  ;;  %3648 = vlog2.f32 %v1262_v3  ;;  %6140 = vst [vmem:[#allocation42_spill] sm:$0xff] %v4574_v6 }
 0x141   :  { %v3641_v49 = vpop.eup %3640  ;;  %v1083_v19 = vmul.f32 1.442695, %v995_v21  ;;  %6139 = vst [vmem:[#allocation41_spill] sm:$0xff] %v4561_v0  ;;  %v1089_v33 = vmul.f32 1.442695, %v998_v27  ;;  %v1258_v3 = vmul.f32 %v4321_v23, %v1257_v43  ;;  %3650 = vpow2.f32 %v1087_v15 }
 0x142   :  { %6138 = vst [vmem:[#allocation40_spill] sm:$0xff] %v4540_v44  ;;  %v4556_v47 = vmul.f32 %v3002_v24, %v4147_v20  ;;  %v1255_v16 = vmul.f32 0.6931472, %v3641_v49  ;;  %vm1260_vm1 = vcmp.lt.f32.partialorder %v1259_v63, 0.0004427343  ;;  %v1244_v21 = vadd.f32 1.0, %v4342_v57 }
 0x143   :  { %v4576_v40 = vpop.eup %3642  ;;  %v1085_v50 = vmul.f32 1.442695, %v996_v17  ;;  %v1239_v49 = vadd.f32 1.0, %v1238_v12  ;;  %v1241_v23 = vand.u32 2147483647, %v4329_v32  ;;  %v6141_v43 = vmax.f32 %v4192_v56, 0.0 }
 0x144   :  { %v1261_v27 = vsel %vm1260_vm1, %v1258_v3, %v1255_v16  ;;  %v1266_v58 = vadd.f32 1.0, %v1265_v5  ;;  %v937_v20 = vand.u32 2147483647, %v4561_v0  ;;  %3652 = vlog2.f32 %v1244_v21  ;;  %v4602_v44 = vpop.f32.mrb[33].mxu1 }
 0x145   :  { %v4553_v18 = vpop.f32.mrb[40].mxu0  ;;  %v1749_v15 = vadd.f32 %v1261_v27, %v6141_v43  ;;  %v4582_v63 = vpop.eup %3644  ;;  %3654 = vpow2.f32 %v1083_v19  ;;  %v1247_v16 = vmul.f32 -0.5, %v4342_v57  ;;  %v1268_v3 = vand.u32 2147483647, %v4338_v30  ;;  %6143 = vst [vmem:[#allocation44_spill] sm:$0xff] %v4602_v44 }
 0x146   :  { %v4563_v53 = vpop.f32.mrb[41].mxu0  ;;  %3656 = vpow2.f32 %v1089_v33  ;;  %v4592_v5 = vadd.f32 %v4136_v13, %v4407_v9  ;;  %vm787_vm3 = vcmp.ne.f32.partialorder %v4197_v61, %v4197_v61  ;;  %v1240_v27 = vmul.f32 %v4329_v32, %v1239_v49 }
 0x147   :  { %v4567_v8 = vpop.f32.mrb[42].mxu0  ;;  %v3647_v17 = vpop.eup %3646  ;;  %v1813_v12 = vsel %vm789_vm2, %v4192_v56, %v1749_v15  ;;  %3658 = vpow2.f32 %v1085_v50  ;;  %vm1242_vm4 = vcmp.lt.f32.partialorder %v1241_v23, 0.0004427343  ;;  %v1267_v33 = vmul.f32 %v4338_v30, %v1266_v58 }
 0x148   :  { %v4572_v24 = vpop.f32.mrb[43].mxu0  ;;  %6142 = vst [vmem:[#allocation43_spill] sm:$0xff] %v4592_v5  ;;  %v3007_v21 = vadd.f32 -0.6931472, %v1813_v12  ;;  %v1237_v19 = vmul.f32 0.6931472, %v3647_v17  ;;  %v4615_v58 = vadd.f32 %v4418_v41, %v4136_v13  ;;  %vm790_vm5 = vcmp.ne.f32.partialorder %v4204_v2, %v4204_v2 }
 0x149   :  { %v1001_v56 = vsub.f32 0.0, %v937_v20  ;;  %v1248_v25 = vadd.f32 1.0, %v1247_v16  ;;  %v1289_v17 = vadd.f32 1.0, %v4385_v37  ;;  %v6145_v50 = vmax.f32 %v4197_v61, 0.0  ;;  %v4624_v16 = vpop.f32.mrb[34].mxu1 }
 0x14a   :  { %v3649_v9 = vpop.eup %3648  ;;  %v4605_v12 = vmul.f32 %v4157_v29, %v3007_v21  ;;  %v1243_v6 = vsel %vm1242_vm4, %v1240_v27, %v1237_v19  ;;  %v935_v30 = vand.u32 2147483647, %v4592_v5  ;;  %6146 = vst [vmem:[#allocation46_spill] sm:$0xff] %v4615_v58  ;;  %vm1269_vm6 = vcmp.lt.f32.partialorder %v1268_v3, 0.0004427343  ;;  %6148 = vst [vmem:[#allocation48_spill] sm:$0xff] %v4624_v16 }
 0x14b   :  { %v1747_v49 = vadd.f32 %v1243_v6, %v6145_v50  ;;  %v1264_v23 = vmul.f32 0.6931472, %v3649_v9  ;;  %vm788_vm7 = vcmp.ne.f32.partialorder %v4208_v7, %v4208_v7  ;;  %v4626_v6 = vpop.eup %3650  ;;  %v1095_v19 = vmul.f32 1.442695, %v1001_v56 }
 0x14c   :  { %6144 = vst [vmem:[#allocation45_spill] sm:$0xff] %v4605_v12  ;;  %v1250_v3 = vand.u32 2147483647, %v4342_v57  ;;  %v6149_v9 = vmax.f32 %v4204_v2, 0.0  ;;  %v1249_v29 = vmul.f32 %v4342_v57, %v1248_v25  ;;  %3660 = vlog2.f32 %v1289_v17 }
 0x14d   :  { %v4597_v43 = vpop.f32.mrb[44].mxu0  ;;  %v1811_v41 = vsel %vm787_vm3, %v4197_v61, %v1747_v49  ;;  %v1270_v21 = vsel %vm1269_vm6, %v1267_v33, %v1264_v23  ;;  %v999_v16 = vsub.f32 0.0, %v935_v30  ;;  %v938_v0 = vand.u32 2147483647, %v4615_v58  ;;  %v4654_v23 = vpop.f32.mrb[35].mxu1 }
 0x14e   :  { %v4600_v15 = vpop.f32.mrb[45].mxu0  ;;  %v3005_v27 = vadd.f32 -0.6931472, %v1811_v41  ;;  %v1750_v50 = vadd.f32 %v1270_v21, %v6149_v9  ;;  %v3653_v44 = vpop.eup %3652  ;;  %v1271_v61 = vadd.f32 1.0, %v4390_v34  ;;  %v1292_v17 = vmul.f32 -0.5, %v4385_v37  ;;  %6152 = vst [vmem:[#allocation51_spill] sm:$0xff] %v4654_v23 }
 0x14f   :  { %v4608_v32 = vpop.f32.mrb[46].mxu0  ;;  %v4642_v33 = vpop.eup %3654  ;;  %v1246_v25 = vmul.f32 0.6931472, %v3653_v44  ;;  %3662 = vpow2.f32 %v1095_v19  ;;  %vm1251_vm8 = vcmp.lt.f32.partialorder %v1250_v3, 0.0004427343  ;;  %v6156_v19 = vmax.f32 %v4208_v7, 0.0 }
 0x150   :  { %v4622_v20 = vpop.f32.mrb[47].mxu0  ;;  %v4645_v56 = vmul.f32 %v3005_v27, %v4159_v31  ;;  %v1814_v57 = vsel %vm790_vm5, %v4204_v2, %v1750_v50  ;;  %3664 = vlog2.f32 %v1271_v61  ;;  %v1298_v2 = vadd.f32 1.0, %v4403_v22 }
 0x151   :  { %6147 = vst [vmem:[#allocation47_spill] sm:$0xff] %v4622_v20  ;;  %v4639_v20 = vadd.f32 %v4136_v13, %v4423_v55  ;;  %v4656_v55 = vpop.eup %3656  ;;  %v3008_v30 = vadd.f32 -0.6931472, %v1814_v57  ;;  %v1252_v21 = vsel %vm1251_vm8, %v1249_v29, %v1246_v25  ;;  %v1002_v57 = vsub.f32 0.0, %v938_v0 }
 0x152   :  { %6151 = vst [vmem:[#allocation50_spill] sm:$0xff] %v4645_v56  ;;  %v4665_v9 = vpop.eup %3658  ;;  %v1748_v3 = vadd.f32 %v1252_v21, %v6156_v19  ;;  %v1091_v29 = vmul.f32 1.442695, %v999_v16  ;;  %v1293_v25 = vadd.f32 1.0, %v1292_v17  ;;  %v1274_v61 = vmul.f32 -0.5, %v4390_v34 }
 0x153   :  { %6150 = vst [vmem:[#allocation49_spill] sm:$0xff] %v4639_v20  ;;  %v4668_v50 = vmul.f32 %v4164_v35, %v3008_v30  ;;  %v936_v31 = vand.u32 2147483647, %v4639_v20  ;;  %3666 = vlog2.f32 %v1298_v2  ;;  %v1301_v30 = vmul.f32 -0.5, %v4403_v22 }
 0x154   :  { %v1812_v35 = vsel %vm788_vm7, %v4208_v7, %v1748_v3  ;;  %v1280_v0 = vadd.f32 1.0, %v4409_v4  ;;  %vm793_vm9 = vcmp.ne.f32.partialorder %v4226_v46, %v4226_v46  ;;  %v1295_v16 = vand.u32 2147483647, %v4385_v37  ;;  %v6159_v3 = vld [vmem:[#allocation2_spill] sm:$0xff] }
 0x155   :  { %v4652_v49 = vpop.f32.mrb[48].mxu0  ;;  %6155 = vst [vmem:[#allocation54_spill] sm:$0xff] %v4668_v50  ;;  %v3006_v21 = vadd.f32 -0.6931472, %v1812_v35  ;;  %v1097_v17 = vmul.f32 1.442695, %v1002_v57  ;;  %v1294_v35 = vmul.f32 %v4385_v37, %v1293_v25 }
 0x156   :  { %v4659_v41 = vpop.f32.mrb[49].mxu0  ;;  %v1000_v2 = vsub.f32 0.0, %v936_v31  ;;  %v1277_v27 = vand.u32 2147483647, %v4390_v34  ;;  %3668 = vlog2.f32 %v1280_v0  ;;  %v3661_v7 = vpop.eup %3660  ;;  %v1275_v19 = vadd.f32 1.0, %v1274_v61 }
 0x157   :  { %6153 = vst [vmem:[#allocation52_spill] sm:$0xff] %v4659_v41  ;;  %v4663_v44 = vpop.f32.mrb[50].mxu0  ;;  %v4692_v12 = vmul.f32 %v3006_v21, %v6159_v3  ;;  %3670 = vpow2.f32 %v1091_v29  ;;  %v1291_v50 = vmul.f32 0.6931472, %v3661_v7  ;;  %v1302_v58 = vadd.f32 1.0, %v1301_v30  ;;  %v6162_v29 = vld [vmem:[#allocation11_spill] sm:$0xff] }
 0x158   :  { %6154 = vst [vmem:[#allocation53_spill] sm:$0xff] %v4663_v44  ;;  %v4673_v23 = vpop.f32.mrb[51].mxu0  ;;  %v4699_v31 = vadd.f32 %v4452_v51, %v4136_v13  ;;  %v1283_v57 = vmul.f32 -0.5, %v4409_v4  ;;  %vm1296_vm10 = vcmp.lt.f32.partialorder %v1295_v16, 0.0004427343  ;;  %vm791_vm11 = vcmp.ne.f32.partialorder %v6162_v29, %v6162_v29  ;;  %v6173_v44 = vld [vmem:[#allocation12_spill] sm:$0xff] }
 0x159   :  { %6157 = vst [vmem:[#allocation55_spill] sm:$0xff] %v4673_v23  ;;  %v4689_v23 = vpop.f32.mrb[36].mxu1  ;;  %v4711_v37 = vld [vmem:[%s6030_s4] ss:$0 sm:$0xff]  ;;  %v4719_v25 = vpop.eup %3662  ;;  %3672 = vpow2.f32 %v1097_v17  ;;  %v1093_v61 = vmul.f32 1.442695, %v1000_v2  ;;  %v1297_v30 = vsel %vm1296_vm10, %v1294_v35, %v1291_v50  ;;  %v1303_v50 = vmul.f32 %v4403_v22, %v1302_v58 }
 0x15a   :  { %6158 = vst [vmem:[#allocation56_spill] sm:$0xff] %v4689_v23  ;;  %v4715_v13 = vadd.f32 %v4711_v37, %v4460_v42  ;;  %vm4721_vm12 = vcmp.lt.f32.partialorder %v1277_v27, 0.0004427343  ;;  %v3665_v3 = vpop.eup %3664  ;;  %v6167_v21 = vmax.f32 %v4226_v46, 0.0  ;;  %v1276_v42 = vmul.f32 %v4390_v34, %v1275_v19  ;;  %v4735_v17 = vpop.f32.mrb[37].mxu1  ;;  %v6175_v41 = vld [vmem:[#allocation3_spill] sm:$0xff] }
 0x15b   :  { %6169 = vst [vmem:[#allocation60_spill] sm:$0xff] %v4735_v17  ;;  %v1273_v27 = vmul.f32 0.6931472, %v3665_v3  ;;  %v941_v2 = vand.u32 2147483647, %v4699_v31  ;;  %v1284_v35 = vadd.f32 1.0, %v1283_v57  ;;  %vm794_vm13 = vcmp.ne.f32.partialorder %v6173_v44, %v6173_v44 }
 0x15c   :  { %v1753_v23 = vadd.f32 %v1297_v30, %v6167_v21  ;;  %v1286_v19 = vand.u32 2147483647, %v4409_v4  ;;  %v939_v21 = vand.u32 2147483647, %v4715_v13  ;;  %v6171_v57 = vld [vmem:[#allocation33_spill] sm:$0xff]  ;;  %v6172_v17 = vmax.f32 %v6162_v29, 0.0 }
 0x15d   :  { %v4695_v20 = vpop.f32.mrb[52].mxu0  ;;  %v1325_v3 = vadd.f32 1.0, %v6171_v57 }
 0x15e   :  { %6160 = vst [vmem:[#allocation2_spill] sm:$0xff] %v4695_v20  ;;  %v4702_v0 = vpop.f32.mrb[53].mxu0  ;;  %v1817_v34 = vsel %vm793_vm9, %v4226_v46, %v1753_v23  ;;  %v4757_v23 = vpop.f32.mrb[38].mxu1  ;;  %vm1287_vm15 = vcmp.lt.f32.partialorder %v1286_v19, 0.0004427343 }
 0x15f   :  { %6161 = vst [vmem:[#allocation57_spill] sm:$0xff] %v4702_v0  ;;  %v4717_v51 = vpop.f32.mrb[54].mxu0  ;;  %v1304_v0 = vand.u32 2147483647, %v4403_v22  ;;  %v3011_v30 = vadd.f32 -0.6931472, %v1817_v34  ;;  %v1279_v22 = vsel %vm4721_vm12, %v1276_v42, %v1273_v27  ;;  %3674 = vlog2.f32 %v1325_v3 }
 0x160   :  { %6163 = vst [vmem:[#allocation11_spill] sm:$0xff] %v4717_v51  ;;  %v4725_v7 = vpop.f32.mrb[55].mxu0  ;;  %v4733_v51 = vadd.f32 %v4711_v37, %v4473_v62  ;;  %v4747_v62 = vadd.f32 %v4711_v37, %v4483_v1  ;;  %v1751_v20 = vadd.f32 %v1279_v22, %v6172_v17  ;;  %6174 = vst [vmem:[#allocation33_spill] sm:$0xff] %v4757_v23  ;;  %v1005_v42 = vsub.f32 0.0, %v941_v2 }
 0x161   :  { %6166 = vst [vmem:[#allocation58_spill] sm:$0xff] %v4725_v7  ;;  %v3667_v7 = vpop.eup %3666  ;;  %vm1305_vm14 = vcmp.lt.f32.partialorder %v1304_v0, 0.0004427343  ;;  %v4760_v34 = vmul.f32 %v6175_v41, %v3011_v30  ;;  %v6177_v0 = vmax.f32 %v6173_v44, 0.0  ;;  %v1003_v23 = vsub.f32 0.0, %v939_v21  ;;  %v6179_v30 = vld [vmem:[#allocation4_spill] sm:$0xff] }
 0x162   :  { %6168 = vst [vmem:[#allocation59_spill] sm:$0xff] %v4733_v51  ;;  %6170 = vst [vmem:[#allocation61_spill] sm:$0xff] %v4747_v62  ;;  %v1300_v58 = vmul.f32 0.6931472, %v3667_v7  ;;  %v942_v46 = vand.u32 2147483647, %v4733_v51  ;;  %v3669_v1 = vpop.eup %3668  ;;  %v1285_v7 = vmul.f32 %v4409_v4, %v1284_v35  ;;  %v1815_v17 = vsel %vm791_vm11, %v6162_v29, %v1751_v20 }
 0x163   :  { %6176 = vst [vmem:[#allocation12_spill] sm:$0xff] %v4760_v34  ;;  %v4763_v27 = vpop.eup %3670  ;;  %v1282_v5 = vmul.f32 0.6931472, %v3669_v1  ;;  %v3009_v56 = vadd.f32 -0.6931472, %v1815_v17  ;;  %v1307_v35 = vadd.f32 1.0, %v4425_v11 }
 0x164   :  { %v1306_v16 = vsel %vm1305_vm14, %v1303_v50, %v1300_v58  ;;  %v940_v41 = vand.u32 2147483647, %v4747_v62  ;;  %v1006_v2 = vsub.f32 0.0, %v942_v46  ;;  %v4779_v29 = vpop.eup %3672  ;;  %v6180_v58 = vld [vmem:[#allocation13_spill] sm:$0xff]  ;;  %v1328_v46 = vmul.f32 -0.5, %v6171_v57 }
 0x165   :  { %v1754_v22 = vadd.f32 %v1306_v16, %v6177_v0  ;;  %v1288_v50 = vsel %vm1287_vm15, %v1285_v7, %v1282_v5  ;;  %v4777_v20 = vpop.f32.mrb[56].mxu0  ;;  %v4782_v21 = vmul.f32 %v3009_v56, %v6179_v30  ;;  %vm792_vm0 = vcmp.ne.f32.partialorder %v6180_v58, %v6180_v58  ;;  %v4788_v16 = vpop.f32.mrb[39].mxu1  ;;  %v6183_v7 = vld [vmem:[#allocation5_spill] sm:$0xff] }
 0x166   :  { %6178 = vst [vmem:[#allocation3_spill] sm:$0xff] %v4777_v20  ;;  %v6181_v3 = vmax.f32 %v6180_v58, 0.0  ;;  %6182 = vst [vmem:[#allocation4_spill] sm:$0xff] %v4788_v16  ;;  %v1103_v5 = vmul.f32 1.442695, %v1005_v42  ;;  %3676 = vlog2.f32 %v1307_v35  ;;  %v1004_v0 = vsub.f32 0.0, %v940_v41 }
 0x167   :  { %v1818_v4 = vsel %vm794_vm13, %v6173_v44, %v1754_v22  ;;  %v1099_v44 = vmul.f32 1.442695, %v1003_v23  ;;  %v1334_v22 = vadd.f32 1.0, %v4434_v28  ;;  %3678 = vpow2.f32 %v1093_v61  ;;  %v6190_v23 = vld [vmem:[#allocation15_spill] sm:$0xff]  ;;  %v6197_v20 = vld [vmem:[#allocation21_spill] sm:$0xff] }
 0x168   :  { %v3012_v19 = vadd.f32 -0.6931472, %v1818_v4  ;;  %v1752_v1 = vadd.f32 %v1288_v50, %v6181_v3  ;;  %v1105_v50 = vmul.f32 1.442695, %v1006_v2  ;;  %v1310_v35 = vmul.f32 -0.5, %v4425_v11 }
 0x169   :  { %3680 = vlog2.f32 %v1334_v22  ;;  %v1329_v3 = vadd.f32 1.0, %v1328_v46  ;;  %v1337_v61 = vmul.f32 -0.5, %v4434_v28  ;;  %v1101_v2 = vmul.f32 1.442695, %v1004_v0  ;;  %v6192_v46 = vld [vmem:[#allocation17_spill] sm:$0xff] }
 0x16a   :  { %v4792_v17 = vmul.f32 %v6183_v7, %v3012_v19  ;;  %v1816_v56 = vsel %vm792_vm0, %v6180_v58, %v1752_v1  ;;  %v4801_v19 = vpop.f32.mrb[57].mxu0  ;;  %3682 = vpow2.f32 %v1103_v5  ;;  %v6186_v58 = vld [vmem:[#allocation6_spill] sm:$0xff]  ;;  %v1331_v7 = vand.u32 2147483647, %v6171_v57 }
 0x16b   :  { %v3010_v30 = vadd.f32 -0.6931472, %v1816_v56  ;;  %6185 = vst [vmem:[#allocation5_spill] sm:$0xff] %v4801_v19  ;;  %v4807_v1 = vpop.f32.mrb[58].mxu0  ;;  %3684 = vpow2.f32 %v1099_v44  ;;  %v1316_v56 = vadd.f32 1.0, %v4448_v52  ;;  %vm797_vm1 = vcmp.ne.f32.partialorder %v6190_v23, %v6190_v23 }
 0x16c   :  { %6184 = vst [vmem:[#allocation13_spill] sm:$0xff] %v4792_v17  ;;  %6187 = vst [vmem:[#allocation6_spill] sm:$0xff] %v4807_v1  ;;  %v4811_v42 = vpop.f32.mrb[59].mxu0  ;;  %3686 = vpow2.f32 %v1105_v50  ;;  %v1311_v44 = vadd.f32 1.0, %v1310_v35  ;;  %v4823_v0 = vadd.f32 %v4711_v37, %v4509_v39  ;;  %v1330_v22 = vmul.f32 %v6171_v57, %v1329_v3 }
 0x16d   :  { %v4804_v41 = vmul.f32 %v3010_v30, %v6186_v58  ;;  %6188 = vst [vmem:[#allocation62_spill] sm:$0xff] %v4811_v42  ;;  %v4817_v30 = vpop.f32.mrb[40].mxu1  ;;  %v3675_v58 = vpop.eup %3674  ;;  %3688 = vlog2.f32 %v1316_v56  ;;  %v1313_v5 = vand.u32 2147483647, %v4425_v11  ;;  %v1338_v50 = vadd.f32 1.0, %v1337_v61  ;;  %v6193_v42 = vld [vmem:[#allocation20_spill] sm:$0xff] }
 0x16e   :  { %6189 = vst [vmem:[#allocation63_spill] sm:$0xff] %v4817_v30  ;;  %6191 = vst [vmem:[#allocation15_spill] sm:$0xff] %v4823_v0  ;;  %v1327_v4 = vmul.f32 0.6931472, %v3675_v58  ;;  %3690 = vpow2.f32 %v1101_v2  ;;  %vm1332_vm2 = vcmp.lt.f32.partialorder %v1331_v7, 0.0004427343  ;;  %vm795_vm3 = vcmp.ne.f32.partialorder %v6192_v46, %v6192_v46 }
 0x16f   :  { %v1319_v30 = vmul.f32 -0.5, %v4448_v52  ;;  %vm798_vm4 = vcmp.ne.f32.partialorder %v6193_v42, %v6193_v42  ;;  %v1340_v39 = vand.u32 2147483647, %v4434_v28  ;;  %v4835_v57 = vadd.f32 %v4711_v37, %v4516_v48  ;;  %v4841_v58 = vpop.f32.mrb[41].mxu1 }
 0x170   :  { %v3677_v16 = vpop.eup %3676  ;;  %v1333_v35 = vsel %vm1332_vm2, %v1330_v22, %v1327_v4  ;;  %v6194_v3 = vmax.f32 %v6190_v23, 0.0  ;;  %v1312_v7 = vmul.f32 %v4425_v11, %v1311_v44  ;;  %v945_v56 = vand.u32 2147483647, %v4823_v0  ;;  %6195 = vst [vmem:[#allocation17_spill] sm:$0xff] %v4841_v58 }
 0x171   :  { %v1309_v2 = vmul.f32 0.6931472, %v3677_v16  ;;  %v4843_v4 = vpop.eup %3678  ;;  %vm1314_vm5 = vcmp.lt.f32.partialorder %v1313_v5, 0.0004427343  ;;  %v1339_v22 = vmul.f32 %v4434_v28, %v1338_v50  ;;  %v4849_v48 = vadd.f32 %v4711_v37, %v4522_v36 }
 0x172   :  { %v1757_v61 = vadd.f32 %v1333_v35, %v6194_v3  ;;  %v1320_v44 = vadd.f32 1.0, %v1319_v30  ;;  %v1361_v35 = vadd.f32 1.0, %v4511_v38  ;;  %v6196_v28 = vmax.f32 %v6192_v46, 0.0  ;;  %v4866_v30 = vpop.f32.mrb[42].mxu1 }
 0x173   :  { %v3681_v19 = vpop.eup %3680  ;;  %v1315_v16 = vsel %vm1314_vm5, %v1312_v7, %v1309_v2  ;;  %v943_v36 = vand.u32 2147483647, %v4835_v57  ;;  %vm1341_vm6 = vcmp.lt.f32.partialorder %v1340_v39, 0.0004427343  ;;  %v1009_v0 = vsub.f32 0.0, %v945_v56  ;;  %6198 = vst [vmem:[#allocation20_spill] sm:$0xff] %v4866_v30 }
 0x174   :  { %v1821_v11 = vsel %vm797_vm1, %v6190_v23, %v1757_v61  ;;  %v4856_v3 = vpop.eup %3682  ;;  %v1755_v50 = vadd.f32 %v1315_v16, %v6196_v28  ;;  %v1336_v1 = vmul.f32 0.6931472, %v3681_v19  ;;  %vm796_vm7 = vcmp.ne.f32.partialorder %v6197_v20, %v6197_v20  ;;  %v6199_v2 = vld [vmem:[#allocation7_spill] sm:$0xff] }
 0x175   :  { %v3015_v5 = vadd.f32 -0.6931472, %v1821_v11  ;;  %v4861_v58 = vpop.eup %3684  ;;  %v1322_v23 = vand.u32 2147483647, %v4448_v52  ;;  %v4879_v39 = vadd.f32 %v4711_v37, %v4532_v14  ;;  %v6200_v28 = vmax.f32 %v6193_v42, 0.0  ;;  %v6202_v14 = vld [vmem:[#allocation8_spill] sm:$0xff] }
 0x176   :  { %v4868_v61 = vpop.eup %3686  ;;  %v1819_v19 = vsel %vm795_vm3, %v6192_v46, %v1755_v50  ;;  %v1342_v11 = vsel %vm1341_vm6, %v1339_v22, %v1336_v1  ;;  %v946_v62 = vand.u32 2147483647, %v4849_v48  ;;  %3692 = vlog2.f32 %v1361_v35  ;;  %v4886_v46 = vpop.f32.mrb[60].mxu0 }
 0x177   :  { %v4871_v7 = vmul.f32 %v6199_v2, %v3015_v5  ;;  %v3689_v56 = vpop.eup %3688  ;;  %v3013_v16 = vadd.f32 -0.6931472, %v1819_v19  ;;  %v1758_v30 = vadd.f32 %v1342_v11, %v6200_v28  ;;  %v1321_v2 = vmul.f32 %v4448_v52, %v1320_v44  ;;  %6201 = vst [vmem:[#allocation21_spill] sm:$0xff] %v4886_v46  ;;  %v4896_v19 = vpop.f32.mrb[43].mxu1  ;;  %v6205_v46 = vld [vmem:[#allocation9_spill] sm:$0xff] }
 0x178   :  { %v1318_v5 = vmul.f32 0.6931472, %v3689_v56  ;;  %v1007_v51 = vsub.f32 0.0, %v943_v36  ;;  %v1343_v34 = vadd.f32 1.0, %v4518_v54  ;;  %v4888_v1 = vpop.eup %3690  ;;  %vm1323_vm8 = vcmp.lt.f32.partialorder %v1322_v23, 0.0004427343 }
 0x179   :  { %v2565_v22 = vmul.f32 %v3013_v16, %v6202_v14  ;;  %v1822_v50 = vsel %vm798_vm4, %v6193_v42, %v1758_v30  ;;  %v1364_v35 = vmul.f32 -0.5, %v4511_v38  ;;  %6203 = vst [vmem:[#allocation7_spill] sm:$0xff] %v4896_v19  ;;  %v1111_v44 = vmul.f32 1.442695, %v1009_v0 }
 0x17a   :  { %v3016_v52 = vadd.f32 -0.6931472, %v1822_v50  ;;  %v1324_v36 = vsel %vm1323_vm8, %v1321_v2, %v1318_v5  ;;  %3694 = vlog2.f32 %v1343_v34  ;;  %v6204_v11 = vmax.f32 %v6197_v20, 0.0 }
 0x17b   :  { %v1010_v28 = vsub.f32 0.0, %v946_v62  ;;  %v944_v16 = vand.u32 2147483647, %v4879_v39  ;;  %v1370_v14 = vadd.f32 1.0, %v4576_v40  ;;  %v1107_v23 = vmul.f32 1.442695, %v1007_v51 }
 0x17c   :  { %v1756_v56 = vadd.f32 %v1324_v36, %v6204_v11  ;;  %v2568_v17 = vmul.f32 %v6205_v46, %v3016_v52  ;;  %v1365_v0 = vadd.f32 1.0, %v1364_v35  ;;  %v1346_v5 = vmul.f32 -0.5, %v4518_v54  ;;  %v4910_v62 = vpop.f32.mrb[61].mxu0  ;;  %v6206_v46 = vld [vmem:[#allocation24_spill] sm:$0xff] }
 0x17d   :  { %3696 = vlog2.f32 %v1370_v14  ;;  %vm801_vm9 = vcmp.ne.f32.partialorder %v6206_v46, %v6206_v46  ;;  %v1367_v51 = vand.u32 2147483647, %v4511_v38  ;;  %v1373_v52 = vmul.f32 -0.5, %v4576_v40  ;;  %v4917_v36 = vpop.f32.mrb[62].mxu0  ;;  %v6209_v14 = vld [vmem:[#allocation10_spill] sm:$0xff] }
 0x17e   :  { %v1820_v34 = vsel %vm796_vm7, %v6197_v20, %v1756_v56  ;;  %v2622_v2 = vpack.c.bf16 %v2568_v17, %v4871_v7  ;;  %6207 = vst [vmem:[#allocation8_spill] sm:$0xff] %v4917_v36  ;;  %3698 = vpow2.f32 %v1111_v44  ;;  %v1113_v20 = vmul.f32 1.442695, %v1010_v28  ;;  %v4920_v56 = vpop.f32.mrb[63].mxu0 }
 0x17f   :  { %v3014_v50 = vadd.f32 -0.6931472, %v1820_v34  ;;  %v1008_v35 = vsub.f32 0.0, %v944_v16  ;;  %v1352_v11 = vadd.f32 1.0, %v4582_v63  ;;  %6208 = vst [vmem:[#allocation9_spill] sm:$0xff] %v4920_v56  ;;  %3700 = vpow2.f32 %v1107_v23 }
 0x180   :  { %v1349_v7 = vand.u32 2147483647, %v4518_v54  ;;  %v3693_v34 = vpop.eup %3692  ;;  %v1366_v42 = vmul.f32 %v4511_v38, %v1365_v0  ;;  %v1347_v19 = vadd.f32 1.0, %v1346_v5  ;;  %v4928_v44 = vadd.f32 %v4711_v37, %v4553_v18  ;;  %v6210_v0 = vld [vmem:[#allocation26_spill] sm:$0xff] }
 0x181   :  { %v2566_v30 = vmul.f32 %v3014_v50, %v6209_v14  ;;  %3702 = vlog2.f32 %v1352_v11  ;;  %v1363_v16 = vmul.f32 0.6931472, %v3693_v34  ;;  %v1374_v36 = vadd.f32 1.0, %v1373_v52 }
 0x182   :  { %v1355_v56 = vmul.f32 -0.5, %v4582_v63  ;;  %3704 = vpow2.f32 %v1113_v20  ;;  %v1109_v23 = vmul.f32 1.442695, %v1008_v35  ;;  %vm1368_vm10 = vcmp.lt.f32.partialorder %v1367_v51, 0.0004427343  ;;  %v6215_v20 = vld [vmem:[#allocation25_spill] sm:$0xff] }
 0x183   :  { %v2621_v28 = vpack.c.bf16 %v2566_v30, %v2565_v22  ;;  %v4933_v50 = vadd.f32 %v4711_v37, %v4563_v53  ;;  %v1369_v38 = vsel %vm1368_vm10, %v1366_v42, %v1363_v16  ;;  %vm799_vm11 = vcmp.ne.f32.partialorder %v6210_v0, %v6210_v0  ;;  %v4942_v30 = vpop.f32.mrb[44].mxu1 }
 0x184   :  { %v3695_v14 = vpop.eup %3694  ;;  %vm4937_vm12 = vcmp.lt.f32.partialorder %v1349_v7, 0.0004427343  ;;  %v1376_v22 = vand.u32 2147483647, %v4576_v40  ;;  %6213 = vst [vmem:[#allocation24_spill] sm:$0xff] %v4942_v30  ;;  %v6214_v5 = vmax.f32 %v6206_v46, 0.0  ;;  %v1348_v53 = vmul.f32 %v4518_v54, %v1347_v19 }
 0x185   :  { %3263 = vmatprep.subr.bf16.mxu1 %v2621_v28  ;;  %v1345_v52 = vmul.f32 0.6931472, %v3695_v14  ;;  %v949_v42 = vand.u32 2147483647, %v4928_v44  ;;  %v6216_v35 = vpack.c.bf16 %v4455_v59, %v6215_v20  ;;  %v1375_v11 = vmul.f32 %v4576_v40, %v1374_v36  ;;  %v4965_v36 = vpop.f32.mrb[45].mxu1 }
 0x186   :  { %v1761_v51 = vadd.f32 %v1369_v38, %v6214_v5  ;;  %v1356_v7 = vadd.f32 1.0, %v1355_v56  ;;  %v1358_v34 = vand.u32 2147483647, %v4582_v63  ;;  %v4955_v28 = vadd.f32 %v4711_v37, %v4567_v8  ;;  %6217 = vst [vmem:[#allocation10_spill] sm:$0xff] %v4965_v36  ;;  %v4980_v20 = vpop.f32.mrb[46].mxu1 }
 0x187   :  { %3264 = vmatpush3.bf16.msra.mxu1 %v6216_v35  ;;  %v3697_v16 = vpop.eup %3696  ;;  %v1351_v59 = vsel %vm4937_vm12, %v1348_v53, %v1345_v52  ;;  %v947_v19 = vand.u32 2147483647, %v4933_v50  ;;  %v1397_v40 = vadd.f32 1.0, %v4626_v6  ;;  %v6218_v8 = vmax.f32 %v6210_v0, 0.0  ;;  %v6221_v52 = vld [vmem:[#allocation22_spill] sm:$0xff]  ;;  %6223 = vst [vmem:[#allocation26_spill] sm:$0xff] %v4980_v20 }
 0x188   :  { %3265 = vmatprep.subr.bf16.mxu1 %v2622_v2  ;;  %v1825_v54 = vsel %vm801_vm9, %v6206_v46, %v1761_v51  ;;  %v1372_v2 = vmul.f32 0.6931472, %v3697_v16  ;;  %v4971_v38 = vadd.f32 %v4711_v37, %v4572_v24  ;;  %v4973_v5 = vpop.eup %3698  ;;  %3706 = vpow2.f32 %v1109_v23  ;;  %v6219_v46 = vld [vmem:[#allocation28_spill] sm:$0xff]  ;;  %v6224_v16 = vld [vmem:[#allocation14_spill] sm:$0xff] }
 0x189   :  { %v3019_v56 = vadd.f32 -0.6931472, %v1825_v54  ;;  %v1759_v14 = vadd.f32 %v1351_v59, %v6218_v8  ;;  %vm802_vm13 = vcmp.ne.f32.partialorder %v6219_v46, %v6219_v46  ;;  %vm1377_vm14 = vcmp.lt.f32.partialorder %v1376_v22, 0.0004427343  ;;  %v6220_v51 = vld [vmem:[#allocation32_spill] sm:$0xff]  ;;  %v4982_v35 = vpop.eup %3700 }
 0x18a   :  { %v1013_v18 = vsub.f32 0.0, %v949_v42  ;;  %v6222_v53 = vpack.c.bf16 %v6220_v51, %v6221_v52  ;;  %v1378_v23 = vsel %vm1377_vm14, %v1375_v11, %v1372_v2  ;;  %vm4991_vm15 = vcmp.lt.f32.partialorder %v1358_v34, 0.0004427343  ;;  %v6228_v11 = vld [vmem:[#allocation16_spill] sm:$0xff] }
 0x18b   :  { %v4985_v54 = vmul.f32 %v6224_v16, %v3019_v56  ;;  %v1823_v24 = vsel %vm799_vm11, %v6210_v0, %v1759_v14  ;;  %v3703_v42 = vpop.eup %3702  ;;  %v6227_v8 = vmax.f32 %v6219_v46, 0.0  ;;  %v950_v52 = vand.u32 2147483647, %v4955_v28 }
 0x18c   :  { %3266 = vmatpush3.bf16.msra.mxu1 %v6222_v53  ;;  %v3017_v59 = vadd.f32 -0.6931472, %v1823_v24  ;;  %3708 = vlog2.f32 %v1397_v40  ;;  %v1354_v56 = vmul.f32 0.6931472, %v3703_v42  ;;  %v1357_v53 = vmul.f32 %v4582_v63, %v1356_v7  ;;  %v5000_v0 = vpop.eup %3704  ;;  %v5009_v40 = vpop.f32.mrb[47].mxu1  ;;  %v6230_v7 = vld [vmem:[#allocation30_spill] sm:$0xff] }
 0x18d   :  { %v1762_v51 = vadd.f32 %v1378_v23, %v6227_v8  ;;  %v1011_v16 = vsub.f32 0.0, %v947_v19  ;;  %v948_v17 = vand.u32 2147483647, %v4971_v38  ;;  %v1400_v2 = vmul.f32 -0.5, %v4626_v6  ;;  %6229 = vst [vmem:[#allocation25_spill] sm:$0xff] %v5009_v40 }
 0x18e   :  { %v2569_v34 = vmul.f32 %v3017_v59, %v6228_v11  ;;  %v1379_v24 = vadd.f32 1.0, %v4642_v33  ;;  %vm800_vm0 = vcmp.ne.f32.partialorder %v6230_v7, %v6230_v7  ;;  %v1360_v19 = vsel %vm4991_vm15, %v1357_v53, %v1354_v56  ;;  %v5023_v56 = vpop.f32.mrb[48].mxu1 }
 0x18f   :  { %v1826_v14 = vsel %vm802_vm13, %v6219_v46, %v1762_v51  ;;  %v1119_v42 = vmul.f32 1.442695, %v1013_v18  ;;  %v6231_v59 = vmax.f32 %v6230_v7, 0.0  ;;  %v1014_v46 = vsub.f32 0.0, %v950_v52  ;;  %v6232_v51 = vld [vmem:[#allocation18_spill] sm:$0xff] }
 0x190   :  { %v3020_v23 = vadd.f32 -0.6931472, %v1826_v14  ;;  %3710 = vlog2.f32 %v1379_v24  ;;  %v1115_v40 = vmul.f32 1.442695, %v1011_v16  ;;  %v1406_v14 = vadd.f32 1.0, %v4656_v55  ;;  %v5027_v24 = vpop.f32.mrb[49].mxu1 }
 0x191   :  { %v1760_v8 = vadd.f32 %v1360_v19, %v6231_v59  ;;  %v1012_v36 = vsub.f32 0.0, %v948_v17  ;;  %v1401_v30 = vadd.f32 1.0, %v1400_v2  ;;  %v1382_v22 = vmul.f32 -0.5, %v4642_v33  ;;  %v6233_v2 = vld [vmem:[#allocation19_spill] sm:$0xff] }
 0x192   :  { %v2572_v11 = vmul.f32 %v6232_v51, %v3020_v23  ;;  %3712 = vlog2.f32 %v1406_v14  ;;  %v5029_v23 = vpop.eup %3706  ;;  %v1121_v16 = vmul.f32 1.442695, %v1014_v46  ;;  %v1409_v17 = vmul.f32 -0.5, %v4656_v55 }
 0x193   :  { %v1824_v63 = vsel %vm800_vm0, %v6230_v7, %v1760_v8  ;;  %3714 = vpow2.f32 %v1119_v42  ;;  %v1403_v7 = vand.u32 2147483647, %v4626_v6  ;;  %v1117_v51 = vmul.f32 1.442695, %v1012_v36 }
 0x194   :  { %v2624_v18 = vpack.c.bf16 %v2572_v11, %v4985_v54  ;;  %v3018_v53 = vadd.f32 -0.6931472, %v1824_v63  ;;  %3716 = vpow2.f32 %v1115_v40  ;;  %v1388_v54 = vadd.f32 1.0, %v4665_v9  ;;  %v5036_v63 = vpop.f32.mrb[50].mxu1 }
 0x195   :  { %6234 = vst [vmem:[#allocation28_spill] sm:$0xff] %v5036_v63  ;;  %v1402_v11 = vmul.f32 %v4626_v6, %v1401_v30  ;;  %v1383_v14 = vadd.f32 1.0, %v1382_v22  ;;  %v1385_v42 = vand.u32 2147483647, %v4642_v33  ;;  %v5042_v20 = vadd.f32 %v4711_v37, %v4597_v43  ;;  %v5053_v43 = vpop.f32.mrb[51].mxu1 }
 0x196   :  { %v2570_v19 = vmul.f32 %v3018_v53, %v6233_v2  ;;  %v3709_v8 = vpop.eup %3708  ;;  %3718 = vlog2.f32 %v1388_v54  ;;  %vm805_vm1 = vcmp.ne.f32.partialorder %v4446_v26, %v4446_v26  ;;  %vm1404_vm2 = vcmp.lt.f32.partialorder %v1403_v7, 0.0004427343  ;;  %6235 = vst [vmem:[#allocation32_spill] sm:$0xff] %v5053_v43  ;;  %v6252_v43 = vld [vmem:[#allocation29_spill] sm:$0xff] }
 0x197   :  { %v1399_v52 = vmul.f32 0.6931472, %v3709_v8  ;;  %3720 = vpow2.f32 %v1121_v16  ;;  %v1410_v40 = vadd.f32 1.0, %v1409_v17  ;;  %vm803_vm3 = vcmp.ne.f32.partialorder %v4477_v60, %v4477_v60 }
 0x198   :  { %v2623_v46 = vpack.c.bf16 %v2570_v19, %v2569_v34  ;;  %v1391_v6 = vmul.f32 -0.5, %v4665_v9  ;;  %v5051_v30 = vadd.f32 %v4711_v37, %v4600_v15  ;;  %3722 = vpow2.f32 %v1117_v51 }
 0x199   :  { %v1405_v53 = vsel %vm1404_vm2, %v1402_v11, %v1399_v52  ;;  %v6236_v34 = vmax.f32 %v4446_v26, 0.0  ;;  %vm5057_vm4 = vcmp.lt.f32.partialorder %v1385_v42, 0.0004427343  ;;  %vm806_vm5 = vcmp.ne.f32.partialorder %v4481_v45, %v4481_v45 }
 0x19a   :  { %3267 = vmatprep.subr.bf16.mxu1 %v2623_v46  ;;  %v3711_v36 = vpop.eup %3710  ;;  %v6239_v52 = vpack.c.bf16 %v4556_v47, %v4525_v10  ;;  %v1384_v7 = vmul.f32 %v4642_v33, %v1383_v14  ;;  %v1412_v17 = vand.u32 2147483647, %v4656_v55  ;;  %v953_v2 = vand.u32 2147483647, %v5042_v20  ;;  %v5079_v47 = vpop.f32.mrb[52].mxu1 }
 0x19b   :  { %v1765_v22 = vadd.f32 %v1405_v53, %v6236_v34  ;;  %v1381_v15 = vmul.f32 0.6931472, %v3711_v36  ;;  %v1411_v54 = vmul.f32 %v4656_v55, %v1410_v40  ;;  %v5076_v8 = vadd.f32 %v4711_v37, %v4608_v32  ;;  %6240 = vst [vmem:[#allocation22_spill] sm:$0xff] %v5079_v47  ;;  %v6242_v32 = vld [vmem:[#allocation47_spill] sm:$0xff]  ;;  %v6243_v53 = vld [vmem:[#allocation40_spill] sm:$0xff] }
 0x19c   :  { %3268 = vmatpush3.bf16.msra.mxu1 %v6239_v52  ;;  %v1433_v10 = vadd.f32 1.0, %v4719_v25  ;;  %v3713_v33 = vpop.eup %3712  ;;  %v1392_v11 = vadd.f32 1.0, %v1391_v6  ;;  %v951_v14 = vand.u32 2147483647, %v5051_v30  ;;  %v5090_v40 = vadd.f32 %v4711_v37, %v6242_v32  ;;  %v6244_v36 = vld [vmem:[#allocation36_spill] sm:$0xff]  ;;  %v6246_v6 = vld [vmem:[#allocation23_spill] sm:$0xff] }
 0x19d   :  { %3269 = vmatprep.subr.bf16.mxu1 %v2624_v18  ;;  %v1829_v19 = vsel %vm805_vm1, %v4446_v26, %v1765_v22  ;;  %v1387_v18 = vsel %vm5057_vm4, %v1384_v7, %v1381_v15  ;;  %v5084_v42 = vpop.eup %3714  ;;  %v6241_v26 = vmax.f32 %v4477_v60, 0.0  ;;  %v1408_v46 = vmul.f32 0.6931472, %v3713_v33 }
 0x19e   :  { %v3023_v51 = vadd.f32 -0.6931472, %v1829_v19  ;;  %3724 = vlog2.f32 %v1433_v10  ;;  %v6245_v34 = vpack.c.bf16 %v6243_v53, %v6244_v36  ;;  %v5095_v22 = vpop.eup %3716  ;;  %vm1413_vm6 = vcmp.lt.f32.partialorder %v1412_v17, 0.0004427343 }
 0x19f   :  { %v1763_v55 = vadd.f32 %v1387_v18, %v6241_v26  ;;  %v1017_v52 = vsub.f32 0.0, %v953_v2  ;;  %v1394_v15 = vand.u32 2147483647, %v4665_v9  ;;  %v1414_v19 = vsel %vm1413_vm6, %v1411_v54, %v1408_v46 }
 0x1a0   :  { %3270 = vmatpush3.bf16.msra.mxu1 %v6245_v34  ;;  %v5098_v16 = vmul.f32 %v6246_v6, %v3023_v51  ;;  %v954_v33 = vand.u32 2147483647, %v5076_v8  ;;  %v3719_v18 = vpop.eup %3718  ;;  %v6247_v32 = vmax.f32 %v4481_v45, 0.0  ;;  %v1015_v53 = vsub.f32 0.0, %v951_v14 }
 0x1a1   :  { %v1827_v7 = vsel %vm803_vm3, %v4477_v60, %v1763_v55  ;;  %v1436_v17 = vmul.f32 -0.5, %v4719_v25  ;;  %v5110_v2 = vpop.eup %3720  ;;  %v1390_v36 = vmul.f32 0.6931472, %v3719_v18  ;;  %v1393_v34 = vmul.f32 %v4665_v9, %v1392_v11  ;;  %v6248_v55 = vld [vmem:[#allocation27_spill] sm:$0xff]  ;;  %v5122_v9 = vpop.f32.mrb[53].mxu1  ;;  %v6250_v11 = vld [vmem:[#allocation37_spill] sm:$0xff] }
 0x1a2   :  { %v3021_v26 = vadd.f32 -0.6931472, %v1827_v7  ;;  %v1766_v51 = vadd.f32 %v1414_v19, %v6247_v32  ;;  %v952_v60 = vand.u32 2147483647, %v5090_v40  ;;  %v1415_v54 = vadd.f32 1.0, %v4763_v27  ;;  %v5120_v14 = vpop.eup %3722  ;;  %6249 = vst [vmem:[#allocation14_spill] sm:$0xff] %v5122_v9 }
 0x1a3   :  { %v1127_v7 = vmul.f32 1.442695, %v1017_v52  ;;  %vm1395_vm7 = vcmp.lt.f32.partialorder %v1394_v15, 0.0004427343  ;;  %v1018_v18 = vsub.f32 0.0, %v954_v33  ;;  %v6251_v10 = vmax.f32 %v6250_v11, 0.0 }
 0x1a4   :  { %v2573_v46 = vmul.f32 %v3021_v26, %v6248_v55  ;;  %v1830_v6 = vsel %vm806_vm5, %v4481_v45, %v1766_v51  ;;  %v1396_v32 = vsel %vm1395_vm7, %v1393_v34, %v1390_v36  ;;  %3726 = vlog2.f32 %v1415_v54 }
 0x1a5   :  { %v3024_v19 = vadd.f32 -0.6931472, %v1830_v6  ;;  %v1764_v59 = vadd.f32 %v1396_v32, %v6251_v10  ;;  %v1123_v47 = vmul.f32 1.442695, %v1015_v53  ;;  %v1437_v26 = vadd.f32 1.0, %v1436_v17 }
 0x1a6   :  { %v1442_v55 = vadd.f32 1.0, %v4779_v29  ;;  %vm804_vm8 = vcmp.ne.f32.partialorder %v6250_v11, %v6250_v11  ;;  %v1016_v45 = vsub.f32 0.0, %v952_v60  ;;  %v1439_v52 = vand.u32 2147483647, %v4719_v25 }
 0x1a7   :  { %v2576_v63 = vmul.f32 %v6252_v43, %v3024_v19  ;;  %v1828_v15 = vsel %vm804_vm8, %v6250_v11, %v1764_v59  ;;  %v1418_v33 = vmul.f32 -0.5, %v4763_v27  ;;  %v5135_v10 = vadd.f32 %v4711_v37, %v4652_v49  ;;  %v6253_v59 = vld [vmem:[#allocation31_spill] sm:$0xff] }
 0x1a8   :  { %3728 = vlog2.f32 %v1442_v55  ;;  %v3725_v51 = vpop.eup %3724  ;;  %v3022_v43 = vadd.f32 -0.6931472, %v1828_v15  ;;  %v1129_v36 = vmul.f32 1.442695, %v1018_v18  ;;  %v1438_v60 = vmul.f32 %v4719_v25, %v1437_v26  ;;  %v5147_v25 = vpop.f32.mrb[54].mxu1 }
 0x1a9   :  { %v2626_v53 = vpack.c.bf16 %v2576_v63, %v5098_v16  ;;  %3730 = vpow2.f32 %v1127_v7  ;;  %v1435_v34 = vmul.f32 0.6931472, %v3725_v51  ;;  %vm1440_vm9 = vcmp.lt.f32.partialorder %v1439_v52, 0.0004427343  ;;  %v6254_v7 = vld [vmem:[#allocation41_spill] sm:$0xff]  ;;  %6256 = vst [vmem:[#allocation16_spill] sm:$0xff] %v5147_v25 }
 0x1aa   :  { %3732 = vpow2.f32 %v1123_v47  ;;  %v2574_v54 = vmul.f32 %v3022_v43, %v6253_v59  ;;  %v1445_v6 = vmul.f32 -0.5, %v4779_v29  ;;  %v1424_v49 = vadd.f32 1.0, %v4843_v4 }
 0x1ab   :  { %v1125_v19 = vmul.f32 1.442695, %v1016_v45  ;;  %v1441_v32 = vsel %vm1440_vm9, %v1438_v60, %v1435_v34  ;;  %v1419_v11 = vadd.f32 1.0, %v1418_v33  ;;  %v957_v63 = vand.u32 2147483647, %v5135_v10 }
 0x1ac   :  { %v2625_v16 = vpack.c.bf16 %v2574_v54, %v2573_v46  ;;  %v6255_v55 = vmax.f32 %v6254_v7, 0.0  ;;  %v1421_v18 = vand.u32 2147483647, %v4763_v27  ;;  %3734 = vlog2.f32 %v1424_v49  ;;  %v6259_v49 = vld [vmem:[#allocation43_spill] sm:$0xff] }
 0x1ad   :  { %3736 = vpow2.f32 %v1129_v36  ;;  %vm809_vm10 = vcmp.ne.f32.partialorder %v6254_v7, %v6254_v7  ;;  %v1446_v46 = vadd.f32 1.0, %v1445_v6  ;;  %v1448_v33 = vand.u32 2147483647, %v4779_v29  ;;  %v6257_v36 = vld [vmem:[#allocation50_spill] sm:$0xff]  ;;  %v6260_v6 = vld [vmem:[#allocation52_spill] sm:$0xff] }
 0x1ae   :  { %v1769_v47 = vadd.f32 %v1441_v32, %v6255_v55  ;;  %v3727_v45 = vpop.eup %3726  ;;  %v1427_v51 = vmul.f32 -0.5, %v4843_v4  ;;  %3271 = vmatprep.subr.bf16.mxu1 %v2625_v16  ;;  %v1420_v60 = vmul.f32 %v4763_v27, %v1419_v11  ;;  %v1021_v59 = vsub.f32 0.0, %v957_v63  ;;  %v6262_v11 = vld [vmem:[#allocation53_spill] sm:$0xff] }
 0x1af   :  { %v1417_v34 = vmul.f32 0.6931472, %v3727_v45  ;;  %v6258_v54 = vpack.c.bf16 %v4692_v12, %v6257_v36  ;;  %3738 = vpow2.f32 %v1125_v19  ;;  %vm807_vm11 = vcmp.ne.f32.partialorder %v6259_v49, %v6259_v49  ;;  %v5174_v19 = vpop.f32.mrb[55].mxu1 }
 0x1b0   :  { %v1833_v15 = vsel %vm809_vm10, %v6254_v7, %v1769_v47  ;;  %vm1422_vm12 = vcmp.lt.f32.partialorder %v1421_v18, 0.0004427343  ;;  %v5164_v32 = vadd.f32 %v4711_v37, %v6260_v6  ;;  %v6261_v7 = vld [vmem:[#allocation34_spill] sm:$0xff]  ;;  %v5171_v63 = vadd.f32 %v4711_v37, %v6262_v11  ;;  %6263 = vst [vmem:[#allocation30_spill] sm:$0xff] %v5174_v19  ;;  %v6267_v6 = vld [vmem:[#allocation45_spill] sm:$0xff]  ;;  %v5188_v11 = vpop.f32.mrb[56].mxu1 }
 0x1b1   :  { %v3027_v43 = vadd.f32 -0.6931472, %v1833_v15  ;;  %3272 = vmatpush3.bf16.msra.mxu1 %v6258_v54  ;;  %v1423_v27 = vsel %vm1422_vm12, %v1420_v60, %v1417_v34  ;;  %v1469_v12 = vadd.f32 1.0, %v4856_v3  ;;  %v6264_v18 = vmax.f32 %v6259_v49, 0.0  ;;  %v6265_v34 = vld [vmem:[#allocation46_spill] sm:$0xff]  ;;  %6269 = vst [vmem:[#allocation18_spill] sm:$0xff] %v5188_v11 }
 0x1b2   :  { %3273 = vmatprep.subr.bf16.mxu1 %v2626_v53  ;;  %v3729_v16 = vpop.eup %3728  ;;  %v1447_v53 = vmul.f32 %v4779_v29, %v1446_v46  ;;  %v1428_v36 = vadd.f32 1.0, %v1427_v51  ;;  %vm810_vm13 = vcmp.ne.f32.partialorder %v6265_v34, %v6265_v34  ;;  %vm1449_vm14 = vcmp.lt.f32.partialorder %v1448_v33, 0.0004427343  ;;  %v6266_v54 = vld [vmem:[#allocation54_spill] sm:$0xff]  ;;  %v6276_v19 = vld [vmem:[#allocation49_spill] sm:$0xff] }
 0x1b3   :  { %v5167_v55 = vmul.f32 %v6261_v7, %v3027_v43  ;;  %v5176_v47 = vpop.eup %3730  ;;  %v1767_v45 = vadd.f32 %v1423_v27, %v6264_v18  ;;  %v1444_v15 = vmul.f32 0.6931472, %v3729_v16  ;;  %v1135_v60 = vmul.f32 1.442695, %v1021_v59  ;;  %v6271_v18 = vld [vmem:[#allocation55_spill] sm:$0xff] }
 0x1b4   :  { %v5181_v43 = vpop.eup %3732  ;;  %3740 = vlog2.f32 %v1469_v12  ;;  %v6268_v7 = vpack.c.bf16 %v6266_v54, %v6267_v6  ;;  %v1430_v51 = vand.u32 2147483647, %v4843_v4  ;;  %v955_v16 = vand.u32 2147483647, %v5164_v32  ;;  %v5203_v6 = vpop.f32.mrb[57].mxu1 }
 0x1b5   :  { %v1831_v29 = vsel %vm807_vm11, %v6259_v49, %v1767_v45  ;;  %v1450_v46 = vsel %vm1449_vm14, %v1447_v53, %v1444_v15  ;;  %v6270_v33 = vmax.f32 %v6265_v34, 0.0  ;;  %v958_v12 = vand.u32 2147483647, %v5171_v63  ;;  %6272 = vst [vmem:[#allocation19_spill] sm:$0xff] %v5203_v6 }
 0x1b6   :  { %3274 = vmatpush3.bf16.msra.mxu1 %v6268_v7  ;;  %v3025_v27 = vadd.f32 -0.6931472, %v1831_v29  ;;  %v5201_v54 = vadd.f32 %v4711_v37, %v6271_v18  ;;  %v3735_v7 = vpop.eup %3734  ;;  %v1429_v45 = vmul.f32 %v4843_v4, %v1428_v36  ;;  %v1472_v15 = vmul.f32 -0.5, %v4856_v3  ;;  %v5209_v29 = vpop.f32.mrb[58].mxu1 }
 0x1b7   :  { %v1770_v59 = vadd.f32 %v1450_v46, %v6270_v33  ;;  %v1451_v53 = vadd.f32 1.0, %v4861_v58  ;;  %6273 = vst [vmem:[#allocation47_spill] sm:$0xff] %v5209_v29  ;;  %v5211_v46 = vpop.eup %3736  ;;  %v6274_v33 = vld [vmem:[#allocation35_spill] sm:$0xff]  ;;  %3742 = vpow2.f32 %v1135_v60  ;;  %v1426_v26 = vmul.f32 0.6931472, %v3735_v7 }
 0x1b8   :  { %v2577_v52 = vmul.f32 %v3025_v27, %v6274_v33  ;;  %vm1431_vm15 = vcmp.lt.f32.partialorder %v1430_v51, 0.0004427343  ;;  %v1019_v4 = vsub.f32 0.0, %v955_v16  ;;  %v1022_v17 = vsub.f32 0.0, %v958_v12  ;;  %v6275_v27 = vld [vmem:[#allocation38_spill] sm:$0xff] }
 0x1b9   :  { %v1834_v18 = vsel %vm810_vm13, %v6265_v34, %v1770_v59  ;;  %3744 = vlog2.f32 %v1451_v53  ;;  %v1432_v36 = vsel %vm1431_vm15, %v1429_v45, %v1426_v26  ;;  %v956_v6 = vand.u32 2147483647, %v5201_v54  ;;  %v5220_v11 = vpop.eup %3738  ;;  %v5226_v59 = vpop.f32.mrb[59].mxu1 }
 0x1ba   :  { %v3028_v49 = vadd.f32 -0.6931472, %v1834_v18  ;;  %v1478_v29 = vadd.f32 1.0, %v4868_v61  ;;  %v6277_v25 = vmax.f32 %v6276_v19, 0.0  ;;  %v1473_v34 = vadd.f32 1.0, %v1472_v15  ;;  %6278 = vst [vmem:[#allocation40_spill] sm:$0xff] %v5226_v59 }
 0x1bb   :  { %v1454_v60 = vmul.f32 -0.5, %v4861_v58  ;;  %vm808_vm0 = vcmp.ne.f32.partialorder %v6276_v19, %v6276_v19  ;;  %v1475_v51 = vand.u32 2147483647, %v4856_v3  ;;  %v1131_v7 = vmul.f32 1.442695, %v1019_v4 }
 0x1bc   :  { %v2580_v33 = vmul.f32 %v6275_v27, %v3028_v49  ;;  %v1768_v9 = vadd.f32 %v1432_v36, %v6277_v25  ;;  %3746 = vlog2.f32 %v1478_v29  ;;  %v5235_v49 = vpop.f32.mrb[60].mxu1  ;;  %v1137_v53 = vmul.f32 1.442695, %v1022_v17 }
 0x1bd   :  { %6279 = vst [vmem:[#allocation36_spill] sm:$0xff] %v5235_v49  ;;  %v1020_v18 = vsub.f32 0.0, %v956_v6  ;;  %v1481_v36 = vmul.f32 -0.5, %v4868_v61  ;;  %v1474_v26 = vmul.f32 %v4856_v3, %v1473_v34  ;;  %v1455_v59 = vadd.f32 1.0, %v1454_v60 }
 0x1be   :  { %v2628_v16 = vpack.c.bf16 %v2580_v33, %v5167_v55  ;;  %v1832_v12 = vsel %vm808_vm0, %v6276_v19, %v1768_v9  ;;  %v3741_v45 = vpop.eup %3740  ;;  %v1460_v29 = vadd.f32 1.0, %v4888_v1  ;;  %v6280_v55 = vld [vmem:[#allocation39_spill] sm:$0xff]  ;;  %vm1476_vm1 = vcmp.lt.f32.partialorder %v1475_v51, 0.0004427343  ;;  %v6281_v19 = vld [vmem:[#allocation2_spill] sm:$0xff] }
 0x1bf   :  { %v3026_v15 = vadd.f32 -0.6931472, %v1832_v12  ;;  %v1471_v27 = vmul.f32 0.6931472, %v3741_v45  ;;  %v5244_v4 = vadd.f32 %v4711_v37, %v6281_v19  ;;  %v5246_v12 = vpop.f32.mrb[61].mxu1  ;;  %vm813_vm2 = vcmp.ne.f32.partialorder %v4699_v31, %v4699_v31 }
 0x1c0   :  { %6282 = vst [vmem:[#allocation23_spill] sm:$0xff] %v5246_v12  ;;  %v1457_v3 = vand.u32 2147483647, %v4861_v58  ;;  %3748 = vlog2.f32 %v1460_v29  ;;  %v6283_v60 = vmax.f32 %v4699_v31, 0.0  ;;  %v1482_v45 = vadd.f32 1.0, %v1481_v36 }
 0x1c1   :  { %v2578_v33 = vmul.f32 %v3026_v15, %v6280_v55  ;;  %v1477_v17 = vsel %vm1476_vm1, %v1474_v26, %v1471_v27  ;;  %v5251_v6 = vpop.eup %3742  ;;  %3750 = vpow2.f32 %v1131_v7  ;;  %v1133_v55 = vmul.f32 1.442695, %v1020_v18  ;;  %v6284_v7 = vld [vmem:[#allocation57_spill] sm:$0xff] }
 0x1c2   :  { %v1773_v51 = vadd.f32 %v1477_v17, %v6283_v60  ;;  %3752 = vpow2.f32 %v1137_v53  ;;  %v1456_v19 = vmul.f32 %v4861_v58, %v1455_v59  ;;  %v1484_v9 = vand.u32 2147483647, %v4868_v61  ;;  %v6286_v58 = vld [vmem:[#allocation11_spill] sm:$0xff] }
 0x1c3   :  { %v2627_v34 = vpack.c.bf16 %v2578_v33, %v2577_v52  ;;  %v3745_v15 = vpop.eup %3744  ;;  %v961_v29 = vand.u32 2147483647, %v5244_v4  ;;  %v1463_v25 = vmul.f32 -0.5, %v4888_v1  ;;  %vm1458_vm3 = vcmp.lt.f32.partialorder %v1457_v3, 0.0004427343 }
 0x1c4   :  { %v1837_v26 = vsel %vm813_vm2, %v4699_v31, %v1773_v51  ;;  %v1453_v27 = vmul.f32 0.6931472, %v3745_v15  ;;  %v5262_v36 = vadd.f32 %v4711_v37, %v6284_v7  ;;  %v6285_v53 = vpack.c.bf16 %v4804_v41, %v4782_v21  ;;  %v5270_v31 = vld [vmem:[%s6030_s4] ss:$0 sm:$0xff]  ;;  %v5284_v7 = vpop.f32.mrb[62].mxu1 }
 0x1c5   :  { %3275 = vmatprep.subr.bf16.mxu1 %v2627_v34  ;;  %v3031_v52 = vadd.f32 -0.6931472, %v1837_v26  ;;  %v5274_v59 = vadd.f32 %v5270_v31, %v6286_v58  ;;  %vm811_vm4 = vcmp.ne.f32.partialorder %v4715_v13, %v4715_v13  ;;  %v1483_v37 = vmul.f32 %v4868_v61, %v1482_v45  ;;  %v6287_v41 = vld [vmem:[#allocation42_spill] sm:$0xff]  ;;  %6289 = vst [vmem:[#allocation27_spill] sm:$0xff] %v5284_v7 }
 0x1c6   :  { %3276 = vmatpush3.bf16.msra.mxu1 %v6285_v53  ;;  %v3747_v18 = vpop.eup %3746  ;;  %v1459_v33 = vsel %vm1458_vm3, %v1456_v19, %v1453_v27  ;;  %v1505_v21 = vadd.f32 1.0, %v4973_v5  ;;  %v6288_v3 = vmax.f32 %v4715_v13, 0.0  ;;  %v1466_v51 = vand.u32 2147483647, %v4888_v1  ;;  %v6290_v27 = vld [vmem:[#allocation13_spill] sm:$0xff] }
 0x1c7   :  { %3277 = vmatprep.subr.bf16.mxu1 %v2628_v16  ;;  %v2583_v17 = vmul.f32 %v6287_v41, %v3031_v52  ;;  %v1480_v60 = vmul.f32 0.6931472, %v3747_v18  ;;  %vm1485_vm5 = vcmp.lt.f32.partialorder %v1484_v9, 0.0004427343  ;;  %v1025_v15 = vsub.f32 0.0, %v961_v29  ;;  %v6291_v52 = vld [vmem:[#allocation12_spill] sm:$0xff] }
 0x1c8   :  { %v1771_v34 = vadd.f32 %v1459_v33, %v6288_v3  ;;  %v1464_v26 = vadd.f32 1.0, %v1463_v25  ;;  %3754 = vlog2.f32 %v1505_v21  ;;  %v959_v16 = vand.u32 2147483647, %v5262_v36  ;;  %v6293_v18 = vld [vmem:[#allocation59_spill] sm:$0xff]  ;;  %v6295_v29 = vld [vmem:[#allocation58_spill] sm:$0xff] }
 0x1c9   :  { %v1486_v61 = vsel %vm1485_vm5, %v1483_v37, %v1480_v60  ;;  %v962_v45 = vand.u32 2147483647, %v5274_v59  ;;  %v6292_v53 = vpack.c.bf16 %v6290_v27, %v6291_v52  ;;  %v6294_v33 = vmax.f32 %v6293_v18, 0.0  ;;  %v5311_v52 = vpop.f32.mrb[63].mxu1 }
 0x1ca   :  { %v1835_v19 = vsel %vm811_vm4, %v4715_v13, %v1771_v34  ;;  %v5296_v25 = vadd.f32 %v5270_v31, %v6295_v29  ;;  %v1508_v21 = vmul.f32 -0.5, %v4973_v5  ;;  %v3749_v13 = vpop.eup %3748  ;;  %3756 = vpow2.f32 %v1133_v55  ;;  %v6299_v34 = vld [vmem:[#allocation44_spill] sm:$0xff]  ;;  %6300 = vst [vmem:[#allocation29_spill] sm:$0xff] %v5311_v52 }
 0x1cb   :  { %3278 = vmatpush3.bf16.msra.mxu1 %v6292_v53  ;;  %v3029_v58 = vadd.f32 -0.6931472, %v1835_v19  ;;  %v1774_v9 = vadd.f32 %v1486_v61, %v6294_v33  ;;  %vm814_vm6 = vcmp.ne.f32.partialorder %v6293_v18, %v6293_v18  ;;  %vm5301_vm7 = vcmp.lt.f32.partialorder %v1466_v51, 0.0004427343  ;;  %v5306_v3 = vpop.eup %3750 }
 0x1cc   :  { %6296 = vst [vmem:[#allocation37_spill] sm:$0xff] %v5296_v25  ;;  %v1487_v41 = vadd.f32 1.0, %v4982_v35  ;;  %v1462_v61 = vmul.f32 0.6931472, %v3749_v13  ;;  %v1465_v27 = vmul.f32 %v4888_v1, %v1464_v26  ;;  %v5313_v55 = vpop.eup %3752  ;;  %v1143_v51 = vmul.f32 1.442695, %v1025_v15 }
 0x1cd   :  { %v2581_v60 = vmul.f32 %v3029_v58, %v6299_v34  ;;  %v1838_v19 = vsel %vm814_vm6, %v6293_v18, %v1774_v9  ;;  %v1023_v33 = vsub.f32 0.0, %v959_v16  ;;  %v1026_v7 = vsub.f32 0.0, %v962_v45  ;;  %v6301_v34 = vld [vmem:[#allocation48_spill] sm:$0xff]  ;;  %v6302_v9 = vld [vmem:[#allocation61_spill] sm:$0xff]  ;;  %v6306_v15 = vld [vmem:[#allocation51_spill] sm:$0xff] }
 0x1ce   :  { %v3032_v53 = vadd.f32 -0.6931472, %v1838_v19  ;;  %3758 = vlog2.f32 %v1487_v41  ;;  %v1468_v29 = vsel %vm5301_vm7, %v1465_v27, %v1462_v61  ;;  %v960_v12 = vand.u32 2147483647, %v5296_v25 }
 0x1cf   :  { %v1509_v58 = vadd.f32 1.0, %v1508_v21  ;;  %v6303_v13 = vmax.f32 %v6302_v9, 0.0  ;;  %v1511_v26 = vand.u32 2147483647, %v4973_v5  ;;  %v1514_v52 = vadd.f32 1.0, %v5000_v0 }
 0x1d0   :  { %v2584_v18 = vmul.f32 %v6301_v34, %v3032_v53  ;;  %vm812_vm8 = vcmp.ne.f32.partialorder %v6302_v9, %v6302_v9  ;;  %v1490_v45 = vmul.f32 -0.5, %v4982_v35  ;;  %v1139_v41 = vmul.f32 1.442695, %v1023_v33 }
 0x1d1   :  { %v1772_v1 = vadd.f32 %v1468_v29, %v6303_v13  ;;  %3760 = vlog2.f32 %v1514_v52  ;;  %v1145_v27 = vmul.f32 1.442695, %v1026_v7  ;;  %v1024_v53 = vsub.f32 0.0, %v960_v12  ;;  %v6304_v13 = vld [vmem:[#allocation3_spill] sm:$0xff] }
 0x1d2   :  { %v5328_v37 = vpack.c.bf16 %v2584_v18, %v2583_v17  ;;  %v3755_v19 = vpop.eup %3754  ;;  %3762 = vpow2.f32 %v1143_v51  ;;  %v1510_v34 = vmul.f32 %v4973_v5, %v1509_v58  ;;  %vm1512_vm9 = vcmp.lt.f32.partialorder %v1511_v26, 0.0004427343 }
 0x1d3   :  { %v1836_v21 = vsel %vm812_vm8, %v6302_v9, %v1772_v1  ;;  %v1507_v29 = vmul.f32 0.6931472, %v3755_v19  ;;  %v5334_v16 = vadd.f32 %v5270_v31, %v6304_v13  ;;  %v1491_v18 = vadd.f32 1.0, %v1490_v45  ;;  %v6307_v1 = vld [vmem:[#allocation15_spill] sm:$0xff]  ;;  %v6309_v13 = vld [vmem:[#allocation5_spill] sm:$0xff] }
 0x1d4   :  { %v3030_v61 = vadd.f32 -0.6931472, %v1836_v21  ;;  %v1517_v9 = vmul.f32 -0.5, %v5000_v0  ;;  %v1496_v52 = vadd.f32 1.0, %v5029_v23  ;;  %v5339_v33 = vpop.eup %3756  ;;  %3764 = vpow2.f32 %v1139_v41 }
 0x1d5   :  { %6305 = vst [vmem:[#allocation31_spill] sm:$0xff] %v5334_v16  ;;  %v1513_v7 = vsel %vm1512_vm9, %v1510_v34, %v1507_v29  ;;  %v1493_v5 = vand.u32 2147483647, %v4982_v35  ;;  %v1141_v58 = vmul.f32 1.442695, %v1024_v53  ;;  %v6308_v26 = vmax.f32 %v6307_v1, 0.0 }
 0x1d6   :  { %v2582_v17 = vmul.f32 %v3030_v61, %v6306_v15  ;;  %3766 = vlog2.f32 %v1496_v52  ;;  %vm817_vm10 = vcmp.ne.f32.partialorder %v6307_v1, %v6307_v1  ;;  %v1520_v45 = vand.u32 2147483647, %v5000_v0 }
 0x1d7   :  { %v1777_v21 = vadd.f32 %v1513_v7, %v6308_v26  ;;  %3768 = vpow2.f32 %v1145_v27  ;;  %v965_v41 = vand.u32 2147483647, %v5334_v16  ;;  %v1518_v29 = vadd.f32 1.0, %v1517_v9 }
 0x1d8   :  { %v5343_v51 = vpack.c.bf16 %v2582_v17, %v2581_v60  ;;  %v3759_v15 = vpop.eup %3758  ;;  %v1492_v60 = vmul.f32 %v4982_v35, %v1491_v18  ;;  %vm1494_vm11 = vcmp.lt.f32.partialorder %v1493_v5, 0.0004427343  ;;  %v1499_v34 = vmul.f32 -0.5, %v5029_v23 }
 0x1d9   :  { %v1841_v19 = vsel %vm817_vm10, %v6307_v1, %v1777_v21  ;;  %v1489_v61 = vmul.f32 0.6931472, %v3759_v15  ;;  %v5356_v27 = vadd.f32 %v5270_v31, %v6309_v13  ;;  %3770 = vpow2.f32 %v1141_v58  ;;  %v6311_v1 = vld [vmem:[#allocation56_spill] sm:$0xff]  ;;  %v6313_v58 = vld [vmem:[#allocation6_spill] sm:$0xff] }
 0x1da   :  { %v3035_v53 = vadd.f32 -0.6931472, %v1841_v19  ;;  %vm815_vm12 = vcmp.ne.f32.partialorder %v4835_v57, %v4835_v57  ;;  %v6312_v35 = vmax.f32 %v4835_v57, 0.0  ;;  %v1029_v9 = vsub.f32 0.0, %v965_v41 }
 0x1db   :  { %6310 = vst [vmem:[#allocation41_spill] sm:$0xff] %v5356_v27  ;;  %v1495_v52 = vsel %vm1494_vm11, %v1492_v60, %v1489_v61  ;;  %v3761_v7 = vpop.eup %3760  ;;  %v1541_v5 = vadd.f32 1.0, %v5084_v42  ;;  %v1519_v19 = vmul.f32 %v5000_v0, %v1518_v29  ;;  %vm1521_vm13 = vcmp.lt.f32.partialorder %v1520_v45, 0.0004427343 }
 0x1dc   :  { %v2587_v26 = vmul.f32 %v6311_v1, %v3035_v53  ;;  %v1775_v18 = vadd.f32 %v1495_v52, %v6312_v35  ;;  %v5365_v21 = vpop.eup %3762  ;;  %v1516_v15 = vmul.f32 0.6931472, %v3761_v7  ;;  %v5370_v13 = vadd.f32 %v5270_v31, %v6313_v58  ;;  %v6314_v35 = vld [vmem:[#allocation62_spill] sm:$0xff] }
 0x1dd   :  { %v1500_v60 = vadd.f32 1.0, %v1499_v34  ;;  %v963_v53 = vand.u32 2147483647, %v5356_v27  ;;  %3772 = vlog2.f32 %v1541_v5  ;;  %v1502_v1 = vand.u32 2147483647, %v5029_v23  ;;  %v6316_v5 = vld [vmem:[#allocation60_spill] sm:$0xff] }
 0x1de   :  { %v1839_v61 = vsel %vm815_vm12, %v4835_v57, %v1775_v18  ;;  %v1522_v41 = vsel %vm1521_vm13, %v1519_v19, %v1516_v15  ;;  %v5377_v7 = vadd.f32 %v5270_v31, %v6314_v35  ;;  %v5379_v0 = vpop.eup %3764  ;;  %vm818_vm14 = vcmp.ne.f32.partialorder %v4849_v48, %v4849_v48 }
 0x1df   :  { %v3033_v52 = vadd.f32 -0.6931472, %v1839_v61  ;;  %v6315_v45 = vmax.f32 %v4849_v48, 0.0  ;;  %v1151_v34 = vmul.f32 1.442695, %v1029_v9  ;;  %v1544_v58 = vmul.f32 -0.5, %v5084_v42 }
 0x1e0   :  { %v3767_v18 = vpop.eup %3766  ;;  %v966_v19 = vand.u32 2147483647, %v5370_v13  ;;  %v1523_v61 = vadd.f32 1.0, %v5095_v22  ;;  %v1501_v49 = vmul.f32 %v5029_v23, %v1500_v60  ;;  %vm1503_vm15 = vcmp.lt.f32.partialorder %v1502_v1, 0.0004427343 }
 0x1e1   :  { %v1778_v57 = vadd.f32 %v1522_v41, %v6315_v45  ;;  %v2585_v15 = vmul.f32 %v3033_v52, %v6316_v5  ;;  %v5390_v35 = vpop.eup %3768  ;;  %v1498_v12 = vmul.f32 0.6931472, %v3767_v18  ;;  %v1027_v41 = vsub.f32 0.0, %v963_v53 }
 0x1e2   :  { %v964_v9 = vand.u32 2147483647, %v5377_v7  ;;  %3774 = vlog2.f32 %v1523_v61  ;;  %vm816_vm0 = vcmp.ne.f32.partialorder %v4879_v39, %v4879_v39  ;;  %v1550_v29 = vadd.f32 1.0, %v5110_v2 }
 0x1e3   :  { %v1842_v17 = vsel %vm818_vm14, %v4849_v48, %v1778_v57  ;;  %v1504_v52 = vsel %vm1503_vm15, %v1501_v49, %v1498_v12  ;;  %v5399_v16 = vpop.eup %3770  ;;  %v6317_v48 = vld [vmem:[#allocation33_spill] sm:$0xff]  ;;  %v6318_v23 = vmax.f32 %v4879_v39, 0.0  ;;  %v1545_v53 = vadd.f32 1.0, %v1544_v58 }
 0x1e4   :  { %v3036_v45 = vadd.f32 -0.6931472, %v1842_v17  ;;  %v1030_v17 = vsub.f32 0.0, %v966_v19  ;;  %v1147_v1 = vmul.f32 1.442695, %v1027_v41  ;;  %v1526_v61 = vmul.f32 -0.5, %v5095_v22 }
 0x1e5   :  { %v1776_v60 = vadd.f32 %v1504_v52, %v6318_v23  ;;  %v1547_v18 = vand.u32 2147483647, %v5084_v42  ;;  %3776 = vlog2.f32 %v1550_v29  ;;  %v1028_v5 = vsub.f32 0.0, %v964_v9  ;;  %v6319_v19 = vld [vmem:[#allocation21_spill] sm:$0xff] }
 0x1e6   :  { %v2588_v57 = vmul.f32 %v6317_v48, %v3036_v45  ;;  %3778 = vpow2.f32 %v1151_v34  ;;  %v1553_v52 = vmul.f32 -0.5, %v5110_v2  ;;  %v5413_v58 = vadd.f32 %v5270_v31, %v6319_v19  ;;  %v6320_v34 = vld [vmem:[#allocation4_spill] sm:$0xff] }
 0x1e7   :  { %v1840_v12 = vsel %vm816_vm0, %v4879_v39, %v1776_v60  ;;  %v3773_v27 = vpop.eup %3772  ;;  %v1153_v41 = vmul.f32 1.442695, %v1030_v17  ;;  %v1546_v29 = vmul.f32 %v5084_v42, %v1545_v53  ;;  %3780 = vpow2.f32 %v1147_v1 }
 0x1e8   :  { %v5406_v49 = vpack.c.bf16 %v2588_v57, %v2587_v26  ;;  %v3034_v25 = vadd.f32 -0.6931472, %v1840_v12  ;;  %v1543_v48 = vmul.f32 0.6931472, %v3773_v27  ;;  %v1532_v26 = vadd.f32 1.0, %v5120_v14 }
 0x1e9   :  { %vm1548_vm1 = vcmp.lt.f32.partialorder %v1547_v18, 0.0004427343  ;;  %v1527_v39 = vadd.f32 1.0, %v1526_v61  ;;  %v1149_v9 = vmul.f32 1.442695, %v1028_v5  ;;  %v6321_v19 = vmax.f32 %v4928_v44, 0.0 }
 0x1ea   :  { %v2586_v57 = vmul.f32 %v3034_v25, %v6320_v34  ;;  %v1549_v23 = vsel %vm1548_vm1, %v1546_v29, %v1543_v48  ;;  %v1529_v60 = vand.u32 2147483647, %v5095_v22  ;;  %3782 = vlog2.f32 %v1532_v26 }
 0x1eb   :  { %v1781_v17 = vadd.f32 %v1549_v23, %v6321_v19  ;;  %v1554_v27 = vadd.f32 1.0, %v1553_v52  ;;  %v969_v42 = vand.u32 2147483647, %v5413_v58  ;;  %3784 = vpow2.f32 %v1153_v41 }
 0x1ec   :  { %v5419_v12 = vpack.c.bf16 %v2586_v57, %v2585_v15  ;;  %v3775_v53 = vpop.eup %3774  ;;  %vm821_vm2 = vcmp.ne.f32.partialorder %v4928_v44, %v4928_v44  ;;  %v1535_v5 = vmul.f32 -0.5, %v5120_v14  ;;  %v1528_v15 = vmul.f32 %v5095_v22, %v1527_v39  ;;  %v6322_v22 = vld [vmem:[#allocation63_spill] sm:$0xff] }
 0x1ed   :  { %v1845_v1 = vsel %vm821_vm2, %v4928_v44, %v1781_v17  ;;  %v1525_v18 = vmul.f32 0.6931472, %v3775_v53  ;;  %v1556_v61 = vand.u32 2147483647, %v5110_v2  ;;  %vm819_vm3 = vcmp.ne.f32.partialorder %v4933_v50, %v4933_v50 }
 0x1ee   :  { %v3039_v48 = vadd.f32 -0.6931472, %v1845_v1  ;;  %vm1530_vm4 = vcmp.lt.f32.partialorder %v1529_v60, 0.0004427343  ;;  %v5435_v52 = vadd.f32 %v5270_v31, %v4910_v62  ;;  %3786 = vpow2.f32 %v1149_v9 }
 0x1ef   :  { %v3777_v41 = vpop.eup %3776  ;;  %v1531_v29 = vsel %vm1530_vm4, %v1528_v15, %v1525_v18  ;;  %v1555_v26 = vmul.f32 %v5110_v2, %v1554_v27  ;;  %v1033_v44 = vsub.f32 0.0, %v969_v42  ;;  %v6323_v39 = vmax.f32 %v4933_v50, 0.0  ;;  %v6325_v18 = vld [vmem:[#allocation8_spill] sm:$0xff] }
 0x1f0   :  { %v5438_v34 = vpop.eup %3778  ;;  %v2591_v57 = vmul.f32 %v6322_v22, %v3039_v48  ;;  %v1552_v19 = vmul.f32 0.6931472, %v3777_v41  ;;  %v1536_v17 = vadd.f32 1.0, %v1535_v5  ;;  %vm822_vm5 = vcmp.ne.f32.partialorder %v4955_v28, %v4955_v28  ;;  %v6327_v22 = vld [vmem:[#allocation17_spill] sm:$0xff] }
 0x1f1   :  { %v1779_v23 = vadd.f32 %v1531_v29, %v6323_v39  ;;  %vm1557_vm6 = vcmp.lt.f32.partialorder %v1556_v61, 0.0004427343  ;;  %vm820_vm7 = vcmp.ne.f32.partialorder %v4971_v38, %v4971_v38  ;;  %v1577_v62 = vadd.f32 1.0, %v5176_v47  ;;  %v5454_v42 = vpop.eup %3780  ;;  %v6326_v61 = vld [vmem:[#allocation9_spill] sm:$0xff] }
 0x1f2   :  { %v1558_v9 = vsel %vm1557_vm6, %v1555_v26, %v1552_v19  ;;  %v1538_v60 = vand.u32 2147483647, %v5120_v14  ;;  %v967_v27 = vand.u32 2147483647, %v5435_v52  ;;  %v6324_v5 = vmax.f32 %v4955_v28, 0.0 }
 0x1f3   :  { %v1843_v2 = vsel %vm819_vm3, %v4933_v50, %v1779_v23  ;;  %v5460_v15 = vadd.f32 %v5270_v31, %v6325_v18  ;;  %v5464_v48 = vadd.f32 %v5270_v31, %v6326_v61  ;;  %v1159_v29 = vmul.f32 1.442695, %v1033_v44 }
 0x1f4   :  { %v3037_v53 = vadd.f32 -0.6931472, %v1843_v2  ;;  %v1782_v1 = vadd.f32 %v1558_v9, %v6324_v5  ;;  %v3783_v50 = vpop.eup %3782  ;;  %v1537_v26 = vmul.f32 %v5120_v14, %v1536_v17  ;;  %3788 = vlog2.f32 %v1577_v62 }
 0x1f5   :  { %v1534_v19 = vmul.f32 0.6931472, %v3783_v50  ;;  %v1580_v2 = vmul.f32 -0.5, %v5176_v47  ;;  %v5474_v9 = vpop.eup %3784  ;;  %vm1539_vm8 = vcmp.lt.f32.partialorder %v1538_v60, 0.0004427343  ;;  %v1031_v5 = vsub.f32 0.0, %v967_v27 }
 0x1f6   :  { %v2589_v39 = vmul.f32 %v3037_v53, %v6327_v22  ;;  %v1846_v23 = vsel %vm822_vm5, %v4955_v28, %v1782_v1  ;;  %v1559_v44 = vadd.f32 1.0, %v5181_v43  ;;  %v970_v14 = vand.u32 2147483647, %v5460_v15  ;;  %v6328_v53 = vld [vmem:[#allocation20_spill] sm:$0xff] }
 0x1f7   :  { %v3040_v31 = vadd.f32 -0.6931472, %v1846_v23  ;;  %v1540_v18 = vsel %vm1539_vm8, %v1537_v26, %v1534_v19  ;;  %v968_v17 = vand.u32 2147483647, %v5464_v48  ;;  %v1583_v62 = vand.u32 2147483647, %v5176_v47 }
 0x1f8   :  { %v6329_v28 = vmax.f32 %v4971_v38, 0.0  ;;  %3790 = vlog2.f32 %v1559_v44  ;;  %v1586_v50 = vadd.f32 1.0, %v5211_v46  ;;  %v5484_v22 = vpop.eup %3786  ;;  %v1581_v27 = vadd.f32 1.0, %v1580_v2 }
 0x1f9   :  { %v2592_v61 = vmul.f32 %v6328_v53, %v3040_v31  ;;  %3792 = vpow2.f32 %v1159_v29  ;;  %v1562_v26 = vmul.f32 -0.5, %v5181_v43  ;;  %v1589_v31 = vmul.f32 -0.5, %v5211_v46 }
 0x1fa   :  { %v1780_v1 = vadd.f32 %v1540_v18, %v6329_v28  ;;  %3794 = vlog2.f32 %v1586_v50  ;;  %v5495_v18 = vmul.f32 1.442695, %v1031_v5  ;;  %v5497_v53 = vsub.f32 0.0, %v970_v14  ;;  %v6332_v28 = vld [vmem:[#allocation7_spill] sm:$0xff] }
 0x1fb   :  { %v5488_v23 = vpack.c.bf16 %v2592_v61, %v2591_v57  ;;  %v5499_v29 = vsub.f32 0.0, %v968_v17  ;;  %vm825_vm9 = vcmp.ne.f32.partialorder %v5042_v20, %v5042_v20  ;;  %vm5503_vm10 = vcmp.lt.f32.partialorder %v1583_v62, 0.0004427343 }
 0x1fc   :  { %v1844_v19 = vsel %vm820_vm7, %v4971_v38, %v1780_v1  ;;  %v1565_v2 = vand.u32 2147483647, %v5181_v43  ;;  %v1568_v38 = vadd.f32 1.0, %v5220_v11  ;;  %v1571_v61 = vmul.f32 -0.5, %v5220_v11 }
 0x1fd   :  { %v3038_v44 = vadd.f32 -0.6931472, %v1844_v19  ;;  %v1563_v1 = vadd.f32 1.0, %v1562_v26  ;;  %v1592_v14 = vand.u32 2147483647, %v5211_v46  ;;  %v1613_v17 = vadd.f32 1.0, %v5251_v6 }
 0x1fe   :  { %v3789_v50 = vpop.eup %3788  ;;  %v1582_v19 = vmul.f32 %v5176_v47, %v1581_v27  ;;  %v1590_v62 = vadd.f32 1.0, %v1589_v31  ;;  %3796 = vlog2.f32 %v1568_v38  ;;  %v1574_v60 = vand.u32 2147483647, %v5220_v11 }
 0x1ff   :  { %v2590_v5 = vmul.f32 %v3038_v44, %v6332_v28  ;;  %v1579_v25 = vmul.f32 0.6931472, %v3789_v50  ;;  %3798 = vlog2.f32 %v1613_v17  ;;  %v1616_v45 = vmul.f32 -0.5, %v5251_v6 }
 0x200   :  { %vm823_vm11 = vcmp.ne.f32.partialorder %v5051_v30, %v5051_v30  ;;  %vm5520_vm12 = vcmp.lt.f32.partialorder %v1565_v2, 0.0004427343  ;;  %v1572_v44 = vadd.f32 1.0, %v1571_v61  ;;  %v1595_v47 = vadd.f32 1.0, %v5306_v3 }
 0x201   :  { %v5515_v41 = vpack.c.bf16 %v2590_v5, %v2589_v39  ;;  %v1585_v27 = vsel %vm5503_vm10, %v1582_v19, %v1579_v25  ;;  %v1564_v39 = vmul.f32 %v5181_v43, %v1563_v1  ;;  %vm826_vm13 = vcmp.ne.f32.partialorder %v5076_v8, %v5076_v8 }
 0x202   :  { %vm5530_vm14 = vcmp.lt.f32.partialorder %v1592_v14, 0.0004427343  ;;  %v1598_v2 = vmul.f32 -0.5, %v5306_v3  ;;  %v3791_v38 = vpop.eup %3790  ;;  %v6337_v28 = vmax.f32 %v5042_v20, 0.0  ;;  %v1619_v5 = vand.u32 2147483647, %v5251_v6 }
 0x203   :  { %3800 = vlog2.f32 %v1595_v47  ;;  %v1622_v25 = vadd.f32 1.0, %v5313_v55  ;;  %v5539_v57 = vpop.eup %3792  ;;  %v1561_v43 = vmul.f32 0.6931472, %v3791_v38  ;;  %v1591_v1 = vmul.f32 %v5211_v46, %v1590_v62 }
 0x204   :  { %v1785_v61 = vadd.f32 %v1585_v27, %v6337_v28  ;;  %vm5542_vm15 = vcmp.lt.f32.partialorder %v1574_v60, 0.0004427343  ;;  %v1617_v17 = vadd.f32 1.0, %v1616_v45  ;;  %v3795_v50 = vpop.eup %3794  ;;  %v1573_v47 = vmul.f32 %v5220_v11, %v1572_v44  ;;  %v6343_v44 = vld [vmem:[#allocation24_spill] sm:$0xff] }
 0x205   :  { %v1601_v27 = vand.u32 2147483647, %v5306_v3  ;;  %3802 = vlog2.f32 %v1622_v25  ;;  %v1567_v46 = vsel %vm5520_vm12, %v1564_v39, %v1561_v43  ;;  %v1588_v60 = vmul.f32 0.6931472, %v3795_v50 }
 0x206   :  { %v1849_v19 = vsel %vm825_vm9, %v5042_v20, %v1785_v61  ;;  %vm824_vm0 = vcmp.ne.f32.partialorder %v5090_v40, %v5090_v40  ;;  %v1599_v45 = vadd.f32 1.0, %v1598_v2  ;;  %v6340_v62 = vmax.f32 %v5051_v30, 0.0 }
 0x207   :  { %v3043_v28 = vadd.f32 -0.6931472, %v1849_v19  ;;  %vm829_vm1 = vcmp.ne.f32.partialorder %v5135_v10, %v5135_v10  ;;  %vm5560_vm2 = vcmp.lt.f32.partialorder %v1619_v5, 0.0004427343  ;;  %v1625_v11 = vmul.f32 -0.5, %v5313_v55 }
 0x208   :  { %v1783_v38 = vadd.f32 %v1567_v46, %v6340_v62  ;;  %v1604_v26 = vadd.f32 1.0, %v5339_v33  ;;  %v1594_v61 = vsel %vm5530_vm14, %v1591_v1, %v1588_v60  ;;  %v1618_v2 = vmul.f32 %v5251_v6, %v1617_v17  ;;  %v3797_v43 = vpop.eup %3796 }
 0x209   :  { %v2595_v39 = vmul.f32 %v6343_v44, %v3043_v28  ;;  %v1628_v25 = vand.u32 2147483647, %v5313_v55  ;;  %v6344_v50 = vmax.f32 %v5076_v8, 0.0  ;;  %v1607_v46 = vmul.f32 -0.5, %v5339_v33  ;;  %v3799_v28 = vpop.eup %3798 }
 0x20a   :  { %v1847_v5 = vsel %vm823_vm11, %v5051_v30, %v1783_v38  ;;  %3804 = vlog2.f32 %v1604_v26  ;;  %v1570_v31 = vmul.f32 0.6931472, %v3797_v43  ;;  %vm827_vm3 = vcmp.ne.f32.partialorder %v5164_v32, %v5164_v32  ;;  %v6347_v26 = vld [vmem:[#allocation10_spill] sm:$0xff] }
 0x20b   :  { %v1786_v19 = vadd.f32 %v1594_v61, %v6344_v50  ;;  %v3041_v62 = vadd.f32 -0.6931472, %v1847_v5  ;;  %v1600_v6 = vmul.f32 %v5306_v3, %v1599_v45  ;;  %vm5581_vm4 = vcmp.lt.f32.partialorder %v1601_v27, 0.0004427343  ;;  %v6351_v50 = vld [vmem:[#allocation26_spill] sm:$0xff] }
 0x20c   :  { %v1615_v17 = vmul.f32 0.6931472, %v3799_v28  ;;  %v1626_v60 = vadd.f32 1.0, %v1625_v11  ;;  %v1649_v38 = vadd.f32 1.0, %v5365_v21  ;;  %v1576_v43 = vsel %vm5542_vm15, %v1573_v47, %v1570_v31 }
 0x20d   :  { %v1850_v30 = vsel %vm826_vm13, %v5076_v8, %v1786_v19  ;;  %v2593_v44 = vmul.f32 %v3041_v62, %v6347_v26  ;;  %vm5593_vm5 = vcmp.lt.f32.partialorder %v1628_v25, 0.0004427343  ;;  %v3801_v27 = vpop.eup %3800  ;;  %v6350_v45 = vmax.f32 %v5090_v40, 0.0 }
 0x20e   :  { %v3044_v61 = vadd.f32 -0.6931472, %v1850_v30  ;;  %v1621_v8 = vsel %vm5560_vm2, %v1618_v2, %v1615_v17  ;;  %vm830_vm6 = vcmp.ne.f32.partialorder %v5171_v63, %v5171_v63  ;;  %v1608_v11 = vadd.f32 1.0, %v1607_v46 }
 0x20f   :  { %v1784_v5 = vadd.f32 %v1576_v43, %v6350_v45  ;;  %3806 = vlog2.f32 %v1649_v38  ;;  %v6352_v14 = vmax.f32 %v5135_v10, 0.0  ;;  %v1597_v25 = vmul.f32 0.6931472, %v3801_v27  ;;  %v3803_v62 = vpop.eup %3802  ;;  %v6354_v43 = vld [vmem:[#allocation25_spill] sm:$0xff] }
 0x210   :  { %v2596_v19 = vmul.f32 %v6351_v50, %v3044_v61  ;;  %v1652_v28 = vmul.f32 -0.5, %v5365_v21  ;;  %v1627_v2 = vmul.f32 %v5313_v55, %v1626_v60  ;;  %v1610_v31 = vand.u32 2147483647, %v5339_v33 }
 0x211   :  { %v1789_v47 = vadd.f32 %v1621_v8, %v6352_v14  ;;  %v1848_v20 = vsel %vm824_vm0, %v5090_v40, %v1784_v5  ;;  %v2646_v46 = vlaneseq  ;;  %v1603_v26 = vsel %vm5581_vm4, %v1600_v6, %v1597_v25 }
 0x212   :  { %v5613_v30 = vpack.c.bf16 %v2596_v19, %v2595_v39  ;;  %v3042_v17 = vadd.f32 -0.6931472, %v1848_v20  ;;  %vm828_vm7 = vcmp.ne.f32.partialorder %v5201_v54, %v5201_v54  ;;  %v6353_v55 = vmax.f32 %v5164_v32, 0.0 }
 0x213   :  { %v1853_v38 = vsel %vm829_vm1, %v5135_v10, %v1789_v47  ;;  %v1624_v61 = vmul.f32 0.6931472, %v3803_v62  ;;  %v1609_v39 = vmul.f32 %v5339_v33, %v1608_v11  ;;  %v1653_v45 = vadd.f32 1.0, %v1652_v28 }
 0x214   :  { %v3047_v40 = vadd.f32 -0.6931472, %v1853_v38  ;;  %v1787_v60 = vadd.f32 %v1603_v26, %v6353_v55  ;;  %v2594_v27 = vmul.f32 %v3042_v17, %v6354_v43  ;;  %v1655_v5 = vand.u32 2147483647, %v5365_v21  ;;  %v3805_v10 = vpop.eup %3804  ;;  %v6357_v55 = vld [vmem:[#allocation28_spill] sm:$0xff] }
 0x215   :  { %v5628_v8 = vshrl.u32 %v2646_v46, 7  ;;  %v1630_v50 = vsel %vm5593_vm5, %v1627_v2, %v1624_v61  ;;  %v1631_v33 = vadd.f32 1.0, %v5379_v0  ;;  %v6355_v14 = vmax.f32 %v5171_v63, 0.0 }
 0x216   :  { %v2599_v6 = vmul.f32 %v5023_v56, %v3047_v40  ;;  %v1851_v1 = vsel %vm827_vm3, %v5164_v32, %v1787_v60  ;;  %v5638_v11 = vpack.c.bf16 %v2594_v27, %v2593_v44  ;;  %v1606_v25 = vmul.f32 0.6931472, %v3805_v10  ;;  %v5645_v56 = vld [vmem:[%s6031_s1] sm:$0xf] }
 0x217   :  { %v3045_v19 = vadd.f32 -0.6931472, %v1851_v1  ;;  %v1790_v47 = vadd.f32 %v1630_v50, %v6355_v14  ;;  %vm1611_vm8 = vcmp.lt.f32.partialorder %v1610_v31, 0.0004427343  ;;  %v5648_v32 = vadd.s32 8, %v5628_v8  ;;  %v6359_v50 = vld [vmem:[#allocation32_spill] sm:$0xff] }
 0x218   :  { %v2661_v3 = vsub.s32 1, %v5628_v8  ;;  %3808 = vlog2.f32 %v1631_v33  ;;  %v1612_v62 = vsel %vm1611_vm8, %v1609_v39, %v1606_v25  ;;  %v6356_v46 = vmax.f32 %v5201_v54, 0.0 }
 0x219   :  { %v2597_v44 = vmul.f32 %v3045_v19, %v5027_v24  ;;  %v1854_v28 = vsel %vm830_vm6, %v5171_v63, %v1790_v47  ;;  %v3807_v20 = vpop.eup %3806  ;;  %v1634_v38 = vmul.f32 -0.5, %v5379_v0  ;;  %v1654_v40 = vmul.f32 %v5365_v21, %v1653_v45 }
 0x21a   :  { %v3048_v2 = vadd.f32 -0.6931472, %v1854_v28  ;;  %v1788_v17 = vadd.f32 %v1612_v62, %v6356_v46  ;;  %v5659_v31 = vrot.slane %v5645_v56, %v2661_v3  ;;  %v1651_v26 = vmul.f32 0.6931472, %v3807_v20 }
 0x21b   :  { %vm1656_vm9 = vcmp.lt.f32.partialorder %v1655_v5, 0.0004427343  ;;  %v2657_v24 = vsub.s32 0, %v5628_v8  ;;  %v1161_v61 = vmul.f32 1.442695, %v5497_v53  ;;  %v6358_v45 = vmax.f32 %v5244_v4, 0.0 }
 0x21c   :  { %v2600_v60 = vmul.f32 %v6357_v55, %v3048_v2  ;;  %v1852_v63 = vsel %vm828_vm7, %v5201_v54, %v1788_v17  ;;  %vm2672_vm10 = vcmp.eq.s32.totalorder %v5628_v8, %v5659_v31  ;;  %vm2676_vm11 = vcmp.eq.s32.totalorder %v5648_v32, %v5659_v31  ;;  %v6360_v2 = vld [vmem:[#allocation22_spill] sm:$0xff] }
 0x21d   :  { %v3046_v39 = vadd.f32 -0.6931472, %v1852_v63  ;;  %v1657_v21 = vsel %vm1656_vm9, %v1654_v40, %v1651_v26  ;;  %vm3158_vm12 = vmpackc.low %vm2676_vm11, %vm2672_vm10  ;;  %v5675_v43 = vrot.slane %v5645_v56, %v2657_v24  ;;  %v3838_v10 = vmov 1.0|1.0  }
 0x21e   :  { %v2638_v27 = vpack.c.bf16 %v2600_v60, %v2599_v6  ;;  %v1793_v5 = vadd.f32 %v1657_v21, %v6358_v45  ;;  %3159 = vmatprep.mubr.msk.bf16.mxu1 %vm3158_vm12, %v3838_v10  ;;  %v1635_v54 = vadd.f32 1.0, %v1634_v38  ;;  %v1658_v1 = vadd.f32 1.0, %v5390_v35 }
 0x21f   :  { %v2598_v33 = vmul.f32 %v3046_v39, %v6359_v50  ;;  %vm833_vm13 = vcmp.ne.f32.partialorder %v5244_v4, %v5244_v4  ;;  %vm2671_vm14 = vcmp.eq.s32.totalorder %v5628_v8, %v5675_v43  ;;  %vm2675_vm15 = vcmp.eq.s32.totalorder %v5648_v32, %v5675_v43 }
 0x220   :  { %v1857_v53 = vsel %vm833_vm13, %v5244_v4, %v1793_v5  ;;  %v1637_v6 = vand.u32 2147483647, %v5379_v0  ;;  %vm3160_vm0 = vmpackc.low %vm2675_vm15, %vm2671_vm14  ;;  %3810 = vlog2.f32 %v1658_v1  ;;  %v1661_v19 = vmul.f32 -0.5, %v5390_v35 }
 0x221   :  { %v778_v14 = vmax.f32 %v5460_v15, 0.0  ;;  %v2637_v47 = vpack.c.bf16 %v2598_v33, %v2597_v44  ;;  %v3051_v25 = vadd.f32 -0.6931472, %v1857_v53  ;;  %3161 = vmatmul.mubr.msk.bf16.vlgmr.msra.gmra.mrb[64].mxu1 %vm3160_vm0, %v3838_v10  ;;  %v1640_v3 = vadd.f32 1.0, %v5399_v16  ;;  %v6367_v53 = vld [vmem:[#allocation14_spill] sm:$0xff] }
 0x222   :  { %v3809_v28 = vpop.eup %3808  ;;  %3812 = vpow2.f32 %v5495_v18  ;;  %v1157_v62 = vmul.f32 1.442695, %v5499_v29  ;;  %v1636_v4 = vmul.f32 %v5379_v0, %v1635_v54  ;;  %v1643_v20 = vmul.f32 -0.5, %v5399_v16 }
 0x223   :  { %v5699_v46 = vmul.f32 %v6360_v2, %v3051_v25  ;;  %3303 = vmatprep.subr.bf16.mxu0 %v2637_v47  ;;  %3489 = vmatprep.subr.bf16.mxu1 %v2637_v47  ;;  %v1633_v44 = vmul.f32 0.6931472, %v3809_v28  ;;  %3814 = vlog2.f32 %v1640_v3  ;;  %v1685_v17 = vadd.f32 1.0, %v5438_v34  ;;  %v6368_v28 = vld [vmem:[#allocation31_spill] sm:$0xff] }
 0x224   :  { %3816 = vpow2.f32 %v1161_v61  ;;  %vm1638_vm1 = vcmp.lt.f32.partialorder %v1637_v6, 0.0004427343  ;;  %3304 = vmatpush3.bf16.msra.mxu0 %v5343_v51  ;;  %3497 = vmatpush3.bf16.msra.mxu1 %v5343_v51  ;;  %v1662_v18 = vadd.f32 1.0, %v1661_v19  ;;  %v1664_v0 = vand.u32 2147483647, %v5390_v35 }
 0x225   :  { %v1639_v29 = vsel %vm1638_vm1, %v1636_v4, %v1633_v44  ;;  %3305 = vmatprep.subr.bf16.mxu0 %v2638_v27  ;;  %3490 = vmatprep.subr.bf16.mxu1 %v2638_v27  ;;  %3818 = vlog2.f32 %v1685_v17  ;;  %v1688_v38 = vmul.f32 -0.5, %v5438_v34  ;;  %v1667_v26 = vadd.f32 1.0, %v5454_v42 }
 0x226   :  { %3820 = vpow2.f32 %v1157_v62  ;;  %vm831_vm2 = vcmp.ne.f32.partialorder %v5262_v36, %v5262_v36  ;;  %v6361_v40 = vmax.f32 %v5262_v36, 0.0  ;;  %v1646_v51 = vand.u32 2147483647, %v5399_v16 }
 0x227   :  { %vm834_vm3 = vcmp.ne.f32.partialorder %v5274_v59, %v5274_v59  ;;  %v1644_v55 = vadd.f32 1.0, %v1643_v20  ;;  %3822 = vlog2.f32 %v1667_v26  ;;  %v1670_v60 = vmul.f32 -0.5, %v5454_v42  ;;  %v6372_v26 = vld [vmem:[#allocation41_spill] sm:$0xff] }
 0x228   :  { %v1791_v24 = vadd.f32 %v1639_v29, %v6361_v40  ;;  %3306 = vmatpush3.bf16.msra.mxu0 %v5328_v37  ;;  %3498 = vmatpush3.bf16.msra.mxu1 %v5328_v37  ;;  %v1691_v61 = vand.u32 2147483647, %v5438_v34  ;;  %v1694_v39 = vadd.f32 1.0, %v5474_v9  ;;  %v1697_v21 = vmul.f32 -0.5, %v5474_v9  ;;  %v6383_v40 = vld [vmem:[#allocation30_spill] sm:$0xff] }
 0x229   :  { %v1663_v45 = vmul.f32 %v5390_v35, %v1662_v18  ;;  %vm5722_vm4 = vcmp.lt.f32.partialorder %v1664_v0, 0.0004427343  ;;  %v1689_v54 = vadd.f32 1.0, %v1688_v38  ;;  %vm5728_vm6 = vcmp.lt.f32.partialorder %v1646_v51, 0.0004427343 }
 0x22a   :  { %v1855_v63 = vsel %vm831_vm2, %v5262_v36, %v1791_v24  ;;  %v3811_v1 = vpop.eup %3810  ;;  %v6364_v36 = vld [vmem:[#allocation37_spill] sm:$0xff]  ;;  %v1673_v50 = vand.u32 2147483647, %v5454_v42  ;;  %3824 = vlog2.f32 %v1694_v39  ;;  %v1676_v33 = vadd.f32 1.0, %v5484_v22 }
 0x22b   :  { %v3049_v27 = vadd.f32 -0.6931472, %v1855_v63  ;;  %vm832_vm5 = vcmp.ne.f32.partialorder %v6364_v36, %v6364_v36  ;;  %v1660_v6 = vmul.f32 0.6931472, %v3811_v1  ;;  %v1671_v19 = vadd.f32 1.0, %v1670_v60 }
 0x22c   :  { %v1698_v47 = vadd.f32 1.0, %v1697_v21  ;;  %v5737_v25 = vpop.eup %3812  ;;  %v1645_v3 = vmul.f32 %v5399_v16, %v1644_v55  ;;  %vm837_vm7 = vcmp.ne.f32.partialorder %v6368_v28, %v6368_v28  ;;  %vm5742_vm8 = vcmp.lt.f32.partialorder %v1691_v61, 0.0004427343 }
 0x22d   :  { %v5735_v35 = vmul.f32 %v3049_v27, %v6367_v53  ;;  %3826 = vlog2.f32 %v1676_v33  ;;  %v1679_v4 = vmul.f32 -0.5, %v5484_v22  ;;  %v3815_v20 = vpop.eup %3814  ;;  %v1666_v2 = vsel %vm5722_vm4, %v1663_v45, %v1660_v6  ;;  %v6378_v53 = vld [vmem:[#allocation16_spill] sm:$0xff] }
 0x22e   :  { %v1690_v44 = vmul.f32 %v5438_v34, %v1689_v54  ;;  %v1700_v17 = vand.u32 2147483647, %v5474_v9  ;;  %v1721_v16 = vadd.f32 1.0, %v5539_v57  ;;  %v5752_v18 = vpop.eup %3816  ;;  %v6371_v0 = vmax.f32 %v5274_v59, 0.0  ;;  %v6386_v54 = vld [vmem:[#allocation19_spill] sm:$0xff] }
 0x22f   :  { %v1642_v38 = vmul.f32 0.6931472, %v3815_v20  ;;  %vm835_vm9 = vcmp.ne.f32.partialorder %v6372_v26, %v6372_v26  ;;  %vm5758_vm10 = vcmp.lt.f32.partialorder %v1673_v50, 0.0004427343  ;;  %v1724_v24 = vmul.f32 -0.5, %v5539_v57  ;;  %v3819_v34 = vpop.eup %3818 }
 0x230   :  { %v1794_v29 = vadd.f32 %v1666_v2, %v6371_v0  ;;  %v1672_v51 = vmul.f32 %v5454_v42, %v1671_v19  ;;  %v1699_v55 = vmul.f32 %v5474_v9, %v1698_v47  ;;  %v1682_v60 = vand.u32 2147483647, %v5484_v22  ;;  %v5766_v63 = vpop.eup %3820 }
 0x231   :  { %3828 = vlog2.f32 %v1721_v16  ;;  %v1648_v39 = vsel %vm5728_vm6, %v1645_v3, %v1642_v38  ;;  %v1687_v21 = vmul.f32 0.6931472, %v3819_v34  ;;  %v1680_v27 = vadd.f32 1.0, %v1679_v4  ;;  %v3823_v45 = vpop.eup %3822 }
 0x232   :  { %v1858_v61 = vsel %vm834_vm3, %v5274_v59, %v1794_v29  ;;  %v6375_v42 = vmax.f32 %v6364_v36, 0.0  ;;  %vm838_vm11 = vcmp.ne.f32.partialorder %v5370_v13, %v5370_v13  ;;  %vm5778_vm12 = vcmp.lt.f32.partialorder %v1700_v17, 0.0004427343 }
 0x233   :  { %v3052_v5 = vadd.f32 -0.6931472, %v1858_v61  ;;  %v1703_v1 = vadd.f32 1.0, %v5737_v25  ;;  %v1693_v59 = vsel %vm5742_vm8, %v1690_v44, %v1687_v21  ;;  %v1669_v37 = vmul.f32 0.6931472, %v3823_v45  ;;  %v6384_v21 = vld [vmem:[#allocation18_spill] sm:$0xff] }
 0x234   :  { %v1792_v9 = vadd.f32 %v1648_v39, %v6375_v42  ;;  %v1725_v50 = vadd.f32 1.0, %v1724_v24  ;;  %v1706_v33 = vmul.f32 -0.5, %v5737_v25  ;;  %v6379_v47 = vmax.f32 %v6368_v28, 0.0  ;;  %v3825_v62 = vpop.eup %3824 }
 0x235   :  { %v2604_v6 = vmul.f32 %v6378_v53, %v3052_v5  ;;  %vm836_vm13 = vcmp.ne.f32.partialorder %v5377_v7, %v5377_v7  ;;  %3830 = vlog2.f32 %v1703_v1  ;;  %v1675_v20 = vsel %vm5758_vm10, %v1672_v51, %v1669_v37 }
 0x236   :  { %v1856_v19 = vsel %vm832_vm5, %v6364_v36, %v1792_v9  ;;  %v1797_v3 = vadd.f32 %v1693_v59, %v6379_v47  ;;  %v1681_v2 = vmul.f32 %v5484_v22, %v1680_v27  ;;  %vm5798_vm14 = vcmp.lt.f32.partialorder %v1682_v60, 0.0004427343 }
 0x237   :  { %v3050_v4 = vadd.f32 -0.6931472, %v1856_v19  ;;  %v2640_v36 = vpack.c.bf16 %v2604_v6, %v5699_v46  ;;  %v6382_v16 = vmax.f32 %v6372_v26, 0.0  ;;  %v1696_v29 = vmul.f32 0.6931472, %v3825_v62  ;;  %v3827_v38 = vpop.eup %3826 }
 0x238   :  { %v1861_v17 = vsel %vm837_vm7, %v6368_v28, %v1797_v3  ;;  %vm841_vm15 = vcmp.ne.f32.partialorder %v5413_v58, %v5413_v58  ;;  %v1726_v22 = vmul.f32 %v5539_v57, %v1725_v50  ;;  %v1727_v46 = vand.u32 2147483647, %v5539_v57 }
 0x239   :  { %v1795_v0 = vadd.f32 %v1675_v20, %v6382_v16  ;;  %v2602_v24 = vmul.f32 %v3050_v4, %v6383_v40  ;;  %v3055_v34 = vadd.f32 -0.6931472, %v1861_v17  ;;  %v1702_v51 = vsel %vm5778_vm12, %v1699_v55, %v1696_v29  ;;  %v6388_v4 = vld [vmem:[#allocation47_spill] sm:$0xff] }
 0x23a   :  { %v1678_v60 = vmul.f32 0.6931472, %v3827_v38  ;;  %v1707_v61 = vadd.f32 1.0, %v1706_v33  ;;  %v6385_v5 = vmax.f32 %v5370_v13, 0.0  ;;  %v1709_v1 = vand.u32 2147483647, %v5737_v25 }
 0x23b   :  { %v1859_v28 = vsel %vm835_vm9, %v6372_v26, %v1795_v0  ;;  %v2639_v39 = vpack.c.bf16 %v2602_v24, %v5735_v35  ;;  %v2607_v27 = vmul.f32 %v6384_v21, %v3055_v34  ;;  %v3829_v9 = vpop.eup %3828  ;;  %v1730_v26 = vadd.f32 1.0, %v5752_v18 }
 0x23c   :  { %v3053_v45 = vadd.f32 -0.6931472, %v1859_v28  ;;  %v1798_v42 = vadd.f32 %v1702_v51, %v6385_v5  ;;  %v1684_v57 = vsel %vm5798_vm14, %v1681_v2, %v1678_v60  ;;  %v1733_v55 = vmul.f32 -0.5, %v5752_v18 }
 0x23d   :  { %3307 = vmatprep.subr.bf16.mxu0 %v2639_v39  ;;  %3491 = vmatprep.subr.bf16.mxu1 %v2639_v39  ;;  %v6387_v37 = vmax.f32 %v5377_v7, 0.0  ;;  %v1723_v33 = vmul.f32 0.6931472, %v3829_v9  ;;  %vm839_vm0 = vcmp.ne.f32.partialorder %v5435_v52, %v5435_v52  ;;  %vm1728_vm1 = vcmp.lt.f32.partialorder %v1727_v46, 0.0004427343 }
 0x23e   :  { %v2605_v35 = vmul.f32 %v3053_v45, %v6386_v54  ;;  %v1862_v59 = vsel %vm838_vm11, %v5370_v13, %v1798_v42  ;;  %3308 = vmatpush3.bf16.msra.mxu0 %v5419_v12  ;;  %3499 = vmatpush3.bf16.msra.mxu1 %v5419_v12  ;;  %3832 = vlog2.f32 %v1730_v26  ;;  %v1736_v6 = vand.u32 2147483647, %v5752_v18  ;;  %v6395_v26 = vld [vmem:[#allocation23_spill] sm:$0xff] }
 0x23f   :  { %v1796_v50 = vadd.f32 %v1684_v57, %v6387_v37  ;;  %v3056_v53 = vadd.f32 -0.6931472, %v1862_v59  ;;  %3309 = vmatprep.subr.bf16.mxu0 %v2640_v36  ;;  %3492 = vmatprep.subr.bf16.mxu1 %v2640_v36  ;;  %v1729_v19 = vsel %vm1728_vm1, %v1726_v22, %v1723_v33  ;;  %v1734_v47 = vadd.f32 1.0, %v1733_v55  ;;  %v3831_v62 = vpop.eup %3830 }
 0x240   :  { %v1712_v3 = vadd.f32 1.0, %v5766_v63  ;;  %v6389_v2 = vmax.f32 %v5413_v58, 0.0  ;;  %v1708_v17 = vmul.f32 %v5737_v25, %v1707_v61  ;;  %v1705_v16 = vmul.f32 0.6931472, %v3831_v62 }
 0x241   :  { %v1860_v13 = vsel %vm836_vm13, %v5377_v7, %v1796_v50  ;;  %v2608_v20 = vmul.f32 %v6388_v4, %v3056_v53  ;;  %vm1710_vm2 = vcmp.lt.f32.partialorder %v1709_v1, 0.0004427343  ;;  %v1715_v36 = vmul.f32 -0.5, %v5766_v63  ;;  %v6390_v7 = vld [vmem:[#allocation40_spill] sm:$0xff]  ;;  %v6398_v53 = vld [vmem:[#allocation27_spill] sm:$0xff] }
 0x242   :  { %v3054_v12 = vadd.f32 -0.6931472, %v1860_v13  ;;  %v1801_v44 = vadd.f32 %v1729_v19, %v6389_v2  ;;  %3834 = vlog2.f32 %v1712_v3  ;;  %3310 = vmatpush3.bf16.msra.mxu0 %v5406_v49  ;;  %3500 = vmatpush3.bf16.msra.mxu1 %v5406_v49  ;;  %v5859_v40 = vadd.s32 16, %v5628_v8 }
 0x243   :  { %v2642_v0 = vpack.c.bf16 %v2608_v20, %v2607_v27  ;;  %v1711_v24 = vsel %vm1710_vm2, %v1708_v17, %v1705_v16  ;;  %v1735_v34 = vmul.f32 %v5752_v18, %v1734_v47  ;;  %vm5862_vm3 = vcmp.lt.f32.partialorder %v1736_v6, 0.0004427343 }
 0x244   :  { %v2606_v29 = vmul.f32 %v3054_v12, %v6390_v7  ;;  %v1865_v38 = vsel %vm841_vm15, %v5413_v58, %v1801_v44  ;;  %v6393_v28 = vmax.f32 %v5435_v52, 0.0  ;;  %v5869_v51 = vadd.s32 24, %v5628_v8  ;;  %v6394_v58 = vld [vmem:[#allocation36_spill] sm:$0xff] }
 0x245   :  { %v3059_v25 = vadd.f32 -0.6931472, %v1865_v38  ;;  %vm2680_vm4 = vcmp.eq.s32.totalorder %v5859_v40, %v5659_v31  ;;  %v1716_v61 = vadd.f32 1.0, %v1715_v36  ;;  %v2669_v18 = vsub.s32 3, %v5628_v8 }
 0x246   :  { %v2641_v46 = vpack.c.bf16 %v2606_v29, %v2605_v35  ;;  %v1799_v49 = vadd.f32 %v1711_v24, %v6393_v28  ;;  %vm2679_vm5 = vcmp.eq.s32.totalorder %v5859_v40, %v5675_v43  ;;  %vm2684_vm6 = vcmp.eq.s32.totalorder %v5869_v51, %v5659_v31 }
 0x247   :  { %v5874_v60 = vmul.f32 %v6394_v58, %v3059_v25  ;;  %vm2683_vm7 = vcmp.eq.s32.totalorder %v5869_v51, %v5675_v43  ;;  %v2665_v21 = vsub.s32 2, %v5628_v8  ;;  %vm3162_vm8 = vmpackc.low %vm2684_vm6, %vm2680_vm4  ;;  %v5891_v45 = vrot.slane %v5645_v56, %v2669_v18 }
 0x248   :  { %3311 = vmatprep.subr.bf16.mxu0 %v2641_v46  ;;  %3493 = vmatprep.subr.bf16.mxu1 %v2641_v46  ;;  %v1863_v39 = vsel %vm839_vm0, %v5435_v52, %v1799_v49  ;;  %v5894_v5 = vadd.s32 32, %v5628_v8  ;;  %v5897_v52 = vadd.s32 40, %v5628_v8  ;;  %v3833_v42 = vpop.eup %3832  ;;  %v1718_v9 = vand.u32 2147483647, %v5766_v63  ;;  %vm3164_vm9 = vmpackc.low %vm2683_vm7, %vm2679_vm5 }
 0x249   :  { %v3057_v27 = vadd.f32 -0.6931472, %v1863_v39  ;;  %3312 = vmatpush3.bf16.msra.mxu0 %v5515_v41  ;;  %3501 = vmatpush3.bf16.msra.mxu1 %v5515_v41  ;;  %v5904_v41 = vrot.slane %v5645_v56, %v2665_v21  ;;  %v5907_v57 = vadd.s32 48, %v5628_v8  ;;  %v5910_v1 = vadd.s32 56, %v5628_v8 }
 0x24a   :  { %3313 = vmatprep.subr.bf16.mxu0 %v2642_v0  ;;  %3494 = vmatprep.subr.bf16.mxu1 %v2642_v0  ;;  %v1732_v54 = vmul.f32 0.6931472, %v3833_v42  ;;  %vm2674_vm10 = vcmp.eq.s32.totalorder %v5628_v8, %v5891_v45  ;;  %vm2678_vm11 = vcmp.eq.s32.totalorder %v5648_v32, %v5891_v45  ;;  %vm2688_vm15 = vcmp.eq.s32.totalorder %v5894_v5, %v5659_v31 }
 0x24b   :  { %v2609_v55 = vmul.f32 %v3057_v27, %v6395_v26  ;;  %3163 = vmatprep.mubr.msk.bf16.mxu1 %vm3162_vm8, %v3838_v10  ;;  %vm3174_vm12 = vmpackc.low %vm2678_vm11, %vm2674_vm10  ;;  %vm2673_vm13 = vcmp.eq.s32.totalorder %v5628_v8, %v5904_v41  ;;  %vm2677_vm14 = vcmp.eq.s32.totalorder %v5648_v32, %v5904_v41  ;;  %vm2692_vm0 = vcmp.eq.s32.totalorder %v5897_v52, %v5659_v31 }
 0x24c   :  { %3165 = vmatmul.mubr.msk.bf16.gmra.mrb[68].mxu1 %vm3164_vm9, %v3838_v10  ;;  %v3835_v56 = vpop.eup %3834  ;;  %v776_v35 = vmax.f32 %v5464_v48, 0.0  ;;  %v1738_v59 = vsel %vm5862_vm3, %v1735_v34, %v1732_v54  ;;  %v1717_v37 = vmul.f32 %v5766_v63, %v1716_v61  ;;  %vm5933_vm1 = vmpackc.low %vm2677_vm14, %vm2673_vm13  ;;  %3175 = vmatprep.mubr.msk.bf16.mxu0 %vm3174_vm12, %v3838_v10  ;;  %vm2687_vm3 = vcmp.eq.s32.totalorder %v5894_v5, %v5675_v43 }
 0x24d   :  { %3314 = vmatpush3.bf16.msra.mxu0 %v5488_v23  ;;  %3502 = vmatpush3.bf16.msra.mxu1 %v5488_v23  ;;  %v1802_v32 = vadd.f32 %v1738_v59, %v778_v14  ;;  %v1714_v50 = vmul.f32 0.6931472, %v3835_v56  ;;  %vm3166_vm2 = vmpackc.low %vm2692_vm0, %vm2688_vm15  ;;  %vm2691_vm4 = vcmp.eq.s32.totalorder %v5897_v52, %v5675_v43  ;;  %vm842_vm5 = vcmp.ne.f32.partialorder %v5460_v15, %v5460_v15 }
 0x24e   :  { %vm1719_vm6 = vcmp.lt.f32.partialorder %v1718_v9, 0.0004427343  ;;  %3167 = vmatprep.mubr.msk.bf16.mxu1 %vm3166_vm2, %v3838_v10  ;;  %vm2696_vm7 = vcmp.eq.s32.totalorder %v5907_v57, %v5659_v31  ;;  %vm2700_vm8 = vcmp.eq.s32.totalorder %v5910_v1, %v5659_v31  ;;  %vm3168_vm9 = vmpackc.low %vm2691_vm4, %vm2687_vm3  ;;  %vm840_vm10 = vcmp.ne.f32.partialorder %v5464_v48, %v5464_v48 }
 0x24f   :  { %v1866_v23 = vsel %vm842_vm5, %v5460_v15, %v1802_v32  ;;  %v1720_v14 = vsel %vm1719_vm6, %v1717_v37, %v1714_v50  ;;  %vm3170_vm11 = vmpackc.low %vm2700_vm8, %vm2696_vm7  ;;  %v6399_v15 = vld [vmem:[#allocation29_spill] sm:$0xff]  ;;  %vm2695_vm12 = vcmp.eq.s32.totalorder %v5907_v57, %v5675_v43  ;;  %vm2699_vm13 = vcmp.eq.s32.totalorder %v5910_v1, %v5675_v43 }
 0x250   :  { %v3060_v63 = vadd.f32 -0.6931472, %v1866_v23  ;;  %v1800_v33 = vadd.f32 %v1720_v14, %v776_v35  ;;  %vm2698_vm14 = vcmp.eq.s32.totalorder %v5907_v57, %v5891_v45  ;;  %vm2702_vm15 = vcmp.eq.s32.totalorder %v5910_v1, %v5891_v45  ;;  %vm3172_vm0 = vmpackc.low %vm2699_vm13, %vm2695_vm12 }
 0x251   :  { %vm3186_vm2 = vmpackc.low %vm2702_vm15, %vm2698_vm14  ;;  %vm2682_vm3 = vcmp.eq.s32.totalorder %v5859_v40, %v5891_v45  ;;  %vm2686_vm4 = vcmp.eq.s32.totalorder %v5869_v51, %v5891_v45  ;;  %vm2697_vm5 = vcmp.eq.s32.totalorder %v5907_v57, %v5904_v41  ;;  %vm2701_vm6 = vcmp.eq.s32.totalorder %v5910_v1, %v5904_v41 }
 0x252   :  { %v2612_v6 = vmul.f32 %v6398_v53, %v3060_v63  ;;  %v1864_v13 = vsel %vm840_vm10, %v5464_v48, %v1800_v33  ;;  %vm3178_vm7 = vmpackc.low %vm2686_vm4, %vm2682_vm3  ;;  %vm2685_vm10 = vcmp.eq.s32.totalorder %v5869_v51, %v5904_v41  ;;  %vm2694_vm12 = vcmp.eq.s32.totalorder %v5897_v52, %v5891_v45 }
 0x253   :  { %v3058_v19 = vadd.f32 -0.6931472, %v1864_v13  ;;  %vm3188_vm8 = vmpackc.low %vm2701_vm6, %vm2697_vm5  ;;  %vm2693_vm15 = vcmp.eq.s32.totalorder %v5897_v52, %v5904_v41 }
 0x254   :  { %3169 = vmatmul.mubr.msk.bf16.gmra.mrb[72].mxu1 %vm3168_vm9, %v3838_v10  ;;  %v2644_v47 = vpack.c.bf16 %v2612_v6, %v5874_v60  ;;  %vm2681_vm9 = vcmp.eq.s32.totalorder %v5859_v40, %v5904_v41 }
 0x255   :  { %3171 = vmatprep.mubr.msk.bf16.mxu1 %vm3170_vm11, %v3838_v10  ;;  %v2610_v31 = vmul.f32 %v3058_v19, %v6399_v15  ;;  %vm2690_vm11 = vcmp.eq.s32.totalorder %v5894_v5, %v5891_v45  ;;  %vm3180_vm13 = vmpackc.low %vm2685_vm10, %vm2681_vm9 }
 0x256   :  { %vm3182_vm14 = vmpackc.low %vm2694_vm12, %vm2690_vm11 }
 0x257   :  { %v2643_v3 = vpack.c.bf16 %v2610_v31, %v2609_v55 }
 0x259   :  { %3315 = vmatprep.subr.bf16.mxu0 %v2643_v3  ;;  %3495 = vmatprep.subr.bf16.mxu1 %v2643_v3 }
 0x25a   :  { %3316 = vmatpush3.bf16.msra.mxu0 %v5638_v11  ;;  %3503 = vmatpush3.bf16.msra.mxu1 %v5638_v11 }
 0x25b   :  { %3317 = vmatprep.subr.bf16.mxu0 %v2644_v47  ;;  %3496 = vmatprep.subr.bf16.mxu1 %v2644_v47 }
 0x25c   :  { %3173 = vmatmul.mubr.msk.bf16.gmra.mrb[76].mxu1 %vm3172_vm0, %v3838_v10 }
 0x25d   :  { %3187 = vmatprep.mubr.msk.bf16.mxu1 %vm3186_vm2, %v3838_v10 }
 0x25e   :  { %3318 = vmatpush3.bf16.msra.mxu0 %v5613_v30  ;;  %3504 = vmatpush3.bf16.msra.mxu1 %v5613_v30 }
 0x261   :  { %3177 = vmatmul.mubr.msk.bf16.vlgmr.msra.gmra.mrb[64].mxu0 %vm5933_vm1, %v3838_v10  ;;  %vm2689_vm1 = vcmp.eq.s32.totalorder %v5894_v5, %v5904_v41 }
 0x262   :  { %3179 = vmatprep.mubr.msk.bf16.mxu0 %vm3178_vm7, %v3838_v10  ;;  %vm3184_vm0 = vmpackc.low %vm2693_vm15, %vm2689_vm1 }
 0x264   :  { %3189 = vmatmul.mubr.msk.bf16.vlgmr.msra.gmra.mrb[80].mxu1 %vm3188_vm8, %v3838_v10 }
 0x269   :  { %3181 = vmatmul.mubr.msk.bf16.gmra.mrb[68].mxu0 %vm3180_vm13, %v3838_v10 }
 0x26a   :  { %3183 = vmatprep.mubr.msk.bf16.mxu0 %vm3182_vm14, %v3838_v10 }
 0x271   :  { %3185 = vmatmul.mubr.msk.bf16.gmra.mrb[72].mxu0 %vm3184_vm0, %v3838_v10 }
 0x2f4   :  { %v3279_v48 = vpop.f32.mrb[64].mxu1 }
 0x2f5   :  { %v3280_v30 = vpop.f32.mrb[65].mxu1 }
 0x2f6   :  { %v3281_v11 = vadd.f32 %v3280_v30, %v3279_v48  ;;  %v3282_v43 = vpop.f32.mrb[66].mxu1 }
 0x2f7   :  { %v3283_v62 = vpop.f32.mrb[67].mxu1 }
 0x2f8   :  { %v3284_v4 = vadd.f32 %v3283_v62, %v3282_v43 }
 0x31f   :  { %v3285_v20 = vpop.f32.mrb[68].mxu1 }
 0x320   :  { %v3286_v12 = vpop.f32.mrb[69].mxu1 }
 0x321   :  { %v3287_v2 = vadd.f32 %v3286_v12, %v3285_v20  ;;  %v3288_v44 = vpop.f32.mrb[70].mxu1 }
 0x322   :  { %v3289_v17 = vpop.f32.mrb[71].mxu1 }
 0x323   :  { %v3290_v16 = vadd.f32 %v3289_v17, %v3288_v44 }
 0x327   :  { %v3291_v36 = vpop.f32.mrb[72].mxu1 }
 0x328   :  { %v3292_v0 = vpop.f32.mrb[73].mxu1 }
 0x329   :  { %v3293_v7 = vadd.f32 %v3292_v0, %v3291_v36  ;;  %v3294_v29 = vpop.f32.mrb[74].mxu1 }
 0x32a   :  { %v3295_v38 = vpop.f32.mrb[75].mxu1 }
 0x32b   :  { %v3296_v40 = vadd.f32 %v3295_v38, %v3294_v29 }
 0x32f   :  { %v3297_v25 = vpop.f32.mrb[76].mxu1 }
 0x330   :  { %v3298_v10 = vpop.f32.mrb[77].mxu1 }
 0x331   :  { %v3299_v24 = vadd.f32 %v3298_v10, %v3297_v25  ;;  %v3300_v34 = vpop.f32.mrb[78].mxu1 }
 0x332   :  { %v3301_v22 = vpop.f32.mrb[79].mxu1 }
 0x333   :  { %v3302_v46 = vadd.f32 %v3301_v22, %v3300_v34 }
 0x334   :  { %v3319_v28 = vpop.f32.mrb[64].mxu0 }
 0x335   :  { %v3320_v49 = vpop.f32.mrb[65].mxu0 }
 0x336   :  { %v3321_v51 = vadd.f32 %v3320_v49, %v3319_v28  ;;  %v3322_v58 = vpop.f32.mrb[66].mxu0 }
 0x337   :  { %v3323_v60 = vpop.f32.mrb[67].mxu0  ;;  %v3337_v61 = vpop.f32.mrb[80].mxu1 }
 0x338   :  { %v2891_v18 = vadd.f32 %v3321_v51, %v3281_v11  ;;  %v3324_v39 = vadd.f32 %v3323_v60, %v3322_v58  ;;  %v3338_v21 = vpop.f32.mrb[81].mxu1 }
 0x339   :  { %v3339_v27 = vadd.f32 %v3338_v21, %v3337_v61  ;;  %v3340_v45 = vpop.f32.mrb[82].mxu1 }
 0x33a   :  { %v2894_v5 = vadd.f32 %v3324_v39, %v3284_v4  ;;  %v3341_v52 = vpop.f32.mrb[83].mxu1  ;;  %2929 = vst [vmem:[%s6032_s6] sm:$0xff] %v2891_v18 }
 0x33b   :  { %v2915_v42 = vadd.f32 %v3339_v27, %v3299_v24  ;;  %v3342_v9 = vadd.f32 %v3341_v52, %v3340_v45 }
 0x33c   :  { %v3325_v41 = vpop.f32.mrb[68].mxu0  ;;  %2930 = vst [vmem:[%s6032_s6 + $0x8] sm:$0xff] %v2894_v5 }
 0x33d   :  { %v3326_v57 = vpop.f32.mrb[69].mxu0  ;;  %v2918_v1 = vadd.f32 %v3342_v9, %v3302_v46  ;;  %2935 = vst [vmem:[%s6032_s6 + $0x30] sm:$0xff] %v2915_v42 }
 0x33e   :  { %v3327_v26 = vadd.f32 %v3326_v57, %v3325_v41  ;;  %v3328_v55 = vpop.f32.mrb[70].mxu0 }
 0x33f   :  { %v3329_v54 = vpop.f32.mrb[71].mxu0  ;;  %2936 = vst [vmem:[%s6032_s6 + $0x38] sm:$0xff] %v2918_v1 }
 0x340   :  { %v2899_v56 = vadd.f32 %v3327_v26, %v3287_v2  ;;  %v3330_v35 = vadd.f32 %v3329_v54, %v3328_v55 }
 0x342   :  { %v2902_v59 = vadd.f32 %v3330_v35, %v3290_v16  ;;  %2931 = vst [vmem:[%s6032_s6 + $0x10] sm:$0xff] %v2899_v56 }
 0x344   :  { %v3331_v37 = vpop.f32.mrb[72].mxu0  ;;  %2932 = vst [vmem:[%s6032_s6 + $0x18] sm:$0xff] %v2902_v59 }
 0x345   :  { %v3332_v8 = vpop.f32.mrb[73].mxu0 }
 0x346   :  { %v3333_v32 = vadd.f32 %v3332_v8, %v3331_v37  ;;  %v3334_v50 = vpop.f32.mrb[74].mxu0 }
 0x347   :  { %v3335_v23 = vpop.f32.mrb[75].mxu0 }
 0x348   :  { %v2907_v14 = vadd.f32 %v3333_v32, %v3293_v7  ;;  %v3336_v63 = vadd.f32 %v3335_v23, %v3334_v50 }
 0x34a   :  { %v2910_v33 = vadd.f32 %v3336_v63, %v3296_v40  ;;  %2933 = vst [vmem:[%s6032_s6 + $0x20] sm:$0xff] %v2907_v14 }
 0x34c   :  { %2934 = vst [vmem:[%s6032_s6 + $0x28] sm:$0xff] %v2910_v33 }

// kernel: interaction_forward.3
= control target key start
LH: loop header
LB: loop body
LE: loop exit
PB: predicated region body
PF: predicated region fallthrough
CT: control target
= control target key end

     0   :  { %11 = vsyncpa [#allocation3], 0  ;;  %s3813_s0 = inlined_call_operand.vmem [shape: f32[64,128], index: 0, kind: input, shape index: {}]   ;;  %s3814_s1 = inlined_call_operand.vmem [shape: f32[64,128], index: 1, kind: input, shape index: {}]   ;;  %s3815_s2 = inlined_call_operand.vmem [shape: bf16[6,128,128], index: 2, kind: input, shape index: {}]   ;;  %s3816_s3 = inlined_call_operand.vmem [shape: f32[7,128], index: 3, kind: input, shape index: {}]   ;;  %s3817_s4 = inlined_call_operand.hbm [shape: f32[64,128], index: 4, kind: output, shape index: {0}]   ;;  %s3818_s5 = inlined_call_operand.hbm [shape: f32[64,128], index: 5, kind: output, shape index: {1}]  }
   0x1   :  { %v2439_v0 = vld [vmem:[%s3815_s2] sm:$0xff]   ;;  %v2440_v1 = vld [vmem:[%s3815_s2 + $0x8] sm:$0xff]   ;;  %v2441_v2 = vld [vmem:[%s3815_s2 + $0x10] sm:$0xff]  }
   0x2   :  { %2291 = vmatprep.subr.bf16.mxu0 %v2439_v0  ;;  %v2442_v3 = vld [vmem:[%s3815_s2 + $0x18] sm:$0xff]   ;;  %v2816_v4 = vld [vmem:[%s3813_s0] sm:$0xff]  ;;  %v2821_v5 = vld [vmem:[%s3813_s0 + $0x8] sm:$0xff] }
   0x3   :  { %2292 = vmatpush3.bf16.msra.mxu0 %v2439_v0  ;;  %v2826_v6 = vld [vmem:[%s3813_s0 + $0x10] sm:$0xff]  ;;  %v2831_v7 = vld [vmem:[%s3813_s0 + $0x18] sm:$0xff]  ;;  %v2443_v8 = vld [vmem:[%s3815_s2 + $0x20] sm:$0xff]   ;;  %v54_v9 = vand.u32 2147483647, %v2816_v4  ;;  %v30_v28 = vmax.f32 %v2816_v4, 0.0  ;;  %vm38_vm1 = vcmp.ne.f32.partialorder %v2816_v4, %v2816_v4  ;;  %vm39_vm8 = vcmp.ne.f32.partialorder %v2821_v5, %v2821_v5 }
   0x4   :  { %2293 = vmatprep.subr.bf16.mxu0 %v2440_v1  ;;  %v55_v10 = vand.u32 2147483647, %v2821_v5  ;;  %v56_v11 = vand.u32 2147483647, %v2826_v6  ;;  %v57_v12 = vand.u32 2147483647, %v2831_v7  ;;  %vm40_vm10 = vcmp.ne.f32.partialorder %v2826_v6, %v2826_v6 }
   0x5   :  { %v2843_v13 = vld [vmem:[%s3813_s0 + $0x20] sm:$0xff]  ;;  %v2848_v14 = vld [vmem:[%s3813_s0 + $0x28] sm:$0xff]  ;;  %v62_v15 = vsub.f32 0.0, %v54_v9  ;;  %v2853_v17 = vld [vmem:[%s3813_s0 + $0x30] sm:$0xff]  ;;  %v31_v43 = vmax.f32 %v2821_v5, 0.0  ;;  %v32_v45 = vmax.f32 %v2826_v6, 0.0  ;;  %vm41_vm11 = vcmp.ne.f32.partialorder %v2831_v7, %v2831_v7 }
   0x6   :  { %v63_v16 = vsub.f32 0.0, %v55_v10  ;;  %v2858_v18 = vld [vmem:[%s3813_s0 + $0x38] sm:$0xff]  ;;  %v64_v19 = vsub.f32 0.0, %v56_v11  ;;  %v65_v20 = vsub.f32 0.0, %v57_v12  ;;  %v58_v23 = vand.u32 2147483647, %v2843_v13 }
   0x7   :  { %2294 = vmatpush3.bf16.msra.mxu0 %v2440_v1  ;;  %v70_v21 = vmul.f32 1.442695, %v62_v15  ;;  %v59_v26 = vand.u32 2147483647, %v2848_v14  ;;  %v2444_v27 = vld [vmem:[%s3815_s2 + $0x28] sm:$0xff]   ;;  %v2445_v33 = vld [vmem:[%s3815_s2 + $0x30] sm:$0xff]   ;;  %vm42_vm12 = vcmp.ne.f32.partialorder %v2843_v13, %v2843_v13  ;;  %vm43_vm13 = vcmp.ne.f32.partialorder %v2848_v14, %v2848_v14 }
   0x8   :  { %2295 = vmatprep.subr.bf16.mxu0 %v2441_v2  ;;  %v72_v22 = vmul.f32 1.442695, %v63_v16  ;;  %v74_v24 = vmul.f32 1.442695, %v64_v19  ;;  %v76_v25 = vmul.f32 1.442695, %v65_v20  ;;  %vm44_vm14 = vcmp.ne.f32.partialorder %v2853_v17, %v2853_v17 }
   0x9   :  { %2487 = vpow2.f32 %v70_v21  ;;  %v66_v29 = vsub.f32 0.0, %v58_v23  ;;  %v67_v30 = vsub.f32 0.0, %v59_v26  ;;  %v60_v31 = vand.u32 2147483647, %v2853_v17  ;;  %v2446_v40 = vld [vmem:[%s3815_s2 + $0x38] sm:$0xff]  }
   0xa   :  { %2489 = vpow2.f32 %v72_v22  ;;  %v61_v32 = vand.u32 2147483647, %v2858_v18  ;;  %v33_v46 = vmax.f32 %v2831_v7, 0.0  ;;  %v34_v50 = vmax.f32 %v2843_v13, 0.0 }
   0xb   :  { %2296 = vmatpush3.bf16.msra.mxu0 %v2441_v2  ;;  %2491 = vpow2.f32 %v74_v24  ;;  %v78_v34 = vmul.f32 1.442695, %v66_v29  ;;  %v80_v35 = vmul.f32 1.442695, %v67_v30  ;;  %v68_v36 = vsub.f32 0.0, %v60_v31 }
   0xc   :  { %2297 = vmatprep.subr.bf16.mxu0 %v2442_v3  ;;  %2493 = vpow2.f32 %v76_v25  ;;  %v69_v37 = vsub.f32 0.0, %v61_v32  ;;  %v35_v51 = vmax.f32 %v2848_v14, 0.0  ;;  %v36_v55 = vmax.f32 %v2853_v17, 0.0 }
   0xd   :  { %2495 = vpow2.f32 %v78_v34  ;;  %v82_v38 = vmul.f32 1.442695, %v68_v36  ;;  %v37_v62 = vmax.f32 %v2858_v18, 0.0  ;;  %vm45_vm15 = vcmp.ne.f32.partialorder %v2858_v18, %v2858_v18 }
   0xe   :  { %v84_v39 = vmul.f32 1.442695, %v69_v37  ;;  %2497 = vpow2.f32 %v80_v35 }
   0xf   :  { %2298 = vmatpush3.bf16.msra.mxu0 %v2442_v3  ;;  %2499 = vpow2.f32 %v82_v38 }
  0x10   :  { %2299 = vmatprep.subr.bf16.mxu0 %v2443_v8  ;;  %2501 = vpow2.f32 %v84_v39 }
  0x13   :  { %2300 = vmatpush3.bf16.msra.mxu0 %v2443_v8  ;;  %v2488_v41 = vpop.eup %2487 }
  0x14   :  { %2301 = vmatprep.subr.bf16.mxu0 %v2444_v27  ;;  %v2490_v42 = vpop.eup %2489  ;;  %v86_v44 = vadd.f32 1.0, %v2488_v41  ;;  %v89_v48 = vmul.f32 -0.5, %v2488_v41  ;;  %v92_v53 = vand.u32 2147483647, %v2488_v41 }
  0x15   :  { %v2492_v47 = vpop.eup %2491  ;;  %v95_v49 = vadd.f32 1.0, %v2490_v42  ;;  %v98_v57 = vmul.f32 -0.5, %v2490_v42  ;;  %v101_v58 = vand.u32 2147483647, %v2490_v42 }
  0x16   :  { %v2879_v52 = vpop.eup %2493  ;;  %2503 = vlog2.f32 %v86_v44  ;;  %v104_v54 = vadd.f32 1.0, %v2492_v47  ;;  %v107_v59 = vmul.f32 -0.5, %v2492_v47  ;;  %v110_v60 = vand.u32 2147483647, %v2492_v47 }
  0x17   :  { %2302 = vmatpush3.bf16.msra.mxu0 %v2444_v27  ;;  %v2882_v56 = vpop.eup %2495  ;;  %2505 = vlog2.f32 %v95_v49  ;;  %v113_v61 = vadd.f32 1.0, %v2879_v52  ;;  %v90_v0 = vadd.f32 1.0, %v89_v48  ;;  %v116_v1 = vmul.f32 -0.5, %v2879_v52 }
  0x18   :  { %2303 = vmatprep.subr.bf16.mxu0 %v2445_v33  ;;  %2507 = vlog2.f32 %v104_v54  ;;  %v2886_v63 = vpop.eup %2497  ;;  %v119_v2 = vand.u32 2147483647, %v2879_v52  ;;  %vm2892_vm0 = vcmp.lt.f32.partialorder %v92_v53, 0.0004427343  ;;  %v122_v9 = vadd.f32 1.0, %v2882_v56 }
  0x19   :  { %v2890_v3 = vpop.eup %2499  ;;  %2509 = vlog2.f32 %v113_v61  ;;  %v125_v10 = vmul.f32 -0.5, %v2882_v56  ;;  %v99_v11 = vadd.f32 1.0, %v98_v57  ;;  %vm2900_vm2 = vcmp.lt.f32.partialorder %v101_v58, 0.0004427343 }
  0x1a   :  { %v108_v15 = vadd.f32 1.0, %v107_v59  ;;  %v128_v16 = vand.u32 2147483647, %v2882_v56  ;;  %v2905_v19 = vpop.eup %2501  ;;  %vm2907_vm3 = vcmp.lt.f32.partialorder %v110_v60, 0.0004427343  ;;  %2511 = vlog2.f32 %v122_v9 }
  0x1b   :  { %2304 = vmatpush3.bf16.msra.mxu0 %v2445_v33  ;;  %v131_v21 = vadd.f32 1.0, %v2886_v63  ;;  %v134_v22 = vmul.f32 -0.5, %v2886_v63  ;;  %v117_v23 = vadd.f32 1.0, %v116_v1  ;;  %vm2913_vm4 = vcmp.lt.f32.partialorder %v119_v2, 0.0004427343 }
  0x1c   :  { %2305 = vmatprep.subr.bf16.mxu0 %v2446_v40  ;;  %v137_v25 = vand.u32 2147483647, %v2886_v63  ;;  %v140_v26 = vadd.f32 1.0, %v2890_v3  ;;  %v91_v27 = vmul.f32 %v2488_v41, %v90_v0  ;;  %v126_v29 = vadd.f32 1.0, %v125_v10 }
  0x1d   :  { %2513 = vlog2.f32 %v131_v21  ;;  %v143_v30 = vmul.f32 -0.5, %v2890_v3  ;;  %vm2920_vm5 = vcmp.lt.f32.partialorder %v128_v16, 0.0004427343  ;;  %v146_v32 = vand.u32 2147483647, %v2890_v3 }
  0x1e   :  { %2515 = vlog2.f32 %v140_v26  ;;  %v149_v33 = vadd.f32 1.0, %v2905_v19  ;;  %v100_v35 = vmul.f32 %v2490_v42, %v99_v11  ;;  %v135_v36 = vadd.f32 1.0, %v134_v22 }
  0x1f   :  { %2306 = vmatpush3.bf16.msra.mxu0 %v2446_v40  ;;  %v152_v37 = vmul.f32 -0.5, %v2905_v19  ;;  %v155_v38 = vand.u32 2147483647, %v2905_v19  ;;  %v109_v41 = vmul.f32 %v2492_v47, %v108_v15  ;;  %vm2928_vm6 = vcmp.lt.f32.partialorder %v137_v25, 0.0004427343 }
  0x20   :  { %v2504_v34 = vpop.eup %2503  ;;  %2517 = vlog2.f32 %v149_v33  ;;  %v144_v53 = vadd.f32 1.0, %v143_v30  ;;  %vm2932_vm7 = vcmp.lt.f32.partialorder %v146_v32, 0.0004427343  ;;  %v118_v58 = vmul.f32 %v2879_v52, %v117_v23 }
  0x21   :  { %v2506_v39 = vpop.eup %2505  ;;  %v88_v40 = vmul.f32 0.6931472, %v2504_v34  ;;  %v153_v42 = vadd.f32 1.0, %v152_v37  ;;  %vm2941_vm9 = vcmp.lt.f32.partialorder %v155_v38, 0.0004427343  ;;  %v127_v8 = vmul.f32 %v2882_v56, %v126_v29 }
  0x22   :  { %v2508_v48 = vpop.eup %2507  ;;  %v97_v49 = vmul.f32 0.6931472, %v2506_v39  ;;  %v145_v20 = vmul.f32 %v2890_v3, %v144_v53 }
  0x23   :  { %v94_v57 = vsel %vm2892_vm0, %v91_v27, %v88_v40  ;;  %v106_v47 = vmul.f32 0.6931472, %v2508_v48  ;;  %v2510_v60 = vpop.eup %2509  ;;  %v154_v24 = vmul.f32 %v2905_v19, %v153_v42 }
  0x24   :  { %v103_v61 = vsel %vm2900_vm2, %v100_v35, %v97_v49  ;;  %v158_v0 = vadd.f32 %v94_v57, %v30_v28  ;;  %v115_v2 = vmul.f32 0.6931472, %v2510_v60  ;;  %v2512_v9 = vpop.eup %2511 }
  0x25   :  { %v159_v52 = vadd.f32 %v103_v61, %v31_v43  ;;  %v112_v1 = vsel %vm2907_vm3, %v109_v41, %v106_v47  ;;  %v136_v43 = vmul.f32 %v2886_v63, %v135_v36  ;;  %v124_v15 = vmul.f32 0.6931472, %v2512_v9 }
  0x26   :  { %v166_v28 = vsel %vm38_vm1, %v2816_v4, %v158_v0  ;;  %v160_v10 = vadd.f32 %v112_v1, %v32_v45  ;;  %v121_v12 = vsel %vm2913_vm4, %v118_v58, %v115_v2 }
  0x27   :  { %v167_v11 = vsel %vm39_vm8, %v2821_v5, %v159_v52  ;;  %v2028_v56 = vadd.f32 -0.6931472, %v166_v28  ;;  %v2514_v16 = vpop.eup %2513  ;;  %v161_v45 = vadd.f32 %v121_v12, %v33_v46  ;;  %v130_v5 = vsel %vm2920_vm5, %v127_v8, %v124_v15 }
  0x28   :  { %v2029_v4 = vadd.f32 -0.6931472, %v167_v11  ;;  %v168_v63 = vsel %vm40_vm10, %v2826_v6, %v160_v10  ;;  %v2516_v21 = vpop.eup %2515  ;;  %v133_v23 = vmul.f32 0.6931472, %v2514_v16  ;;  %v162_v26 = vadd.f32 %v130_v5, %v34_v50 }
  0x29   :  { %v2030_v22 = vadd.f32 -0.6931472, %v168_v63  ;;  %v169_v46 = vsel %vm41_vm11, %v2831_v7, %v161_v45  ;;  %v142_v6 = vmul.f32 0.6931472, %v2516_v21 }
  0x2a   :  { %v182_v25 = vpack.c.bf16 %v2029_v4, %v2028_v56  ;;  %v2518_v27 = vpop.eup %2517  ;;  %v2031_v3 = vadd.f32 -0.6931472, %v169_v46  ;;  %v139_v29 = vsel %vm2928_vm6, %v136_v43, %v133_v23  ;;  %v170_v7 = vsel %vm42_vm12, %v2843_v13, %v162_v26 }
  0x2b   :  { %v163_v19 = vadd.f32 %v139_v29, %v35_v51  ;;  %v148_v50 = vsel %vm2932_vm7, %v145_v20, %v142_v6  ;;  %v151_v30 = vmul.f32 0.6931472, %v2518_v27  ;;  %v2032_v32 = vadd.f32 -0.6931472, %v170_v7 }
  0x2c   :  { %2307 = vmatprep.mubr.bf16.mxu0 %v182_v25  ;;  %v183_v31 = vpack.c.bf16 %v2031_v3, %v2030_v22  ;;  %v164_v33 = vadd.f32 %v148_v50, %v36_v55 }
  0x2d   :  { %v171_v34 = vsel %vm43_vm13, %v2848_v14, %v163_v19  ;;  %v157_v51 = vsel %vm2941_vm9, %v154_v24, %v151_v30 }
  0x2e   :  { %2308 = vmatmul.mubr.bf16.vlgmr.msra.gmra.mrb[0].mxu0 %v183_v31  ;;  %v2033_v35 = vadd.f32 -0.6931472, %v171_v34  ;;  %v165_v13 = vadd.f32 %v157_v51, %v37_v62  ;;  %v172_v36 = vsel %vm44_vm14, %v2853_v17, %v164_v33 }
  0x2f   :  { %v2034_v37 = vadd.f32 -0.6931472, %v172_v36 }
  0x30   :  { %v184_v38 = vpack.c.bf16 %v2033_v35, %v2032_v32  ;;  %v173_v39 = vsel %vm45_vm15, %v2858_v18, %v165_v13 }
  0x31   :  { %v2035_v55 = vadd.f32 -0.6931472, %v173_v39 }
  0x32   :  { %2311 = vmatprep.mubr.bf16.mxu0 %v184_v38 }
  0x33   :  { %v185_v14 = vpack.c.bf16 %v2035_v55, %v2034_v37 }
  0x34   :  { %12 = vsyncpa [#allocation5], 0  ;;  %v2447_v40 = vld [vmem:[%s3815_s2 + $0x40] sm:$0xff]   ;;  %v2448_v62 = vld [vmem:[%s3815_s2 + $0x48] sm:$0xff]  }
  0x35   :  { %2315 = vmatprep.subr.bf16.mxu1 %v2447_v40  ;;  %v2449_v17 = vld [vmem:[%s3815_s2 + $0x50] sm:$0xff]   ;;  %v2450_v18 = vld [vmem:[%s3815_s2 + $0x58] sm:$0xff]   ;;  %v2451_v41 = vld [vmem:[%s3815_s2 + $0x60] sm:$0xff]  }
  0x36   :  { %2312 = vmatmul.mubr.bf16.gmra.mrb[4].mxu0 %v185_v14  ;;  %2316 = vmatpush3.bf16.msra.mxu1 %v2447_v40  ;;  %v2452_v44 = vld [vmem:[%s3815_s2 + $0x68] sm:$0xff]   ;;  %v2453_v48 = vld [vmem:[%s3815_s2 + $0x70] sm:$0xff]   ;;  %v2454_v49 = vld [vmem:[%s3815_s2 + $0x78] sm:$0xff]  }
  0x37   :  { %2317 = vmatprep.subr.bf16.mxu1 %v2448_v62  ;;  %v2036_v53 = vld [vmem:[%s3816_s3] ss:$0 sm:$0xff] }
  0x3a   :  { %2318 = vmatpush3.bf16.msra.mxu1 %v2448_v62 }
  0x3b   :  { %2319 = vmatprep.subr.bf16.mxu1 %v2449_v17 }
  0x3e   :  { %2320 = vmatpush3.bf16.msra.mxu1 %v2449_v17 }
  0x3f   :  { %2321 = vmatprep.subr.bf16.mxu1 %v2450_v18 }
  0x42   :  { %2322 = vmatpush3.bf16.msra.mxu1 %v2450_v18 }
  0x43   :  { %2323 = vmatprep.subr.bf16.mxu1 %v2451_v41 }
  0x46   :  { %2324 = vmatpush3.bf16.msra.mxu1 %v2451_v41 }
  0x47   :  { %2325 = vmatprep.subr.bf16.mxu1 %v2452_v44 }
  0x4a   :  { %2326 = vmatpush3.bf16.msra.mxu1 %v2452_v44 }
  0x4b   :  { %2327 = vmatprep.subr.bf16.mxu1 %v2453_v48 }
  0x4e   :  { %2328 = vmatpush3.bf16.msra.mxu1 %v2453_v48 }
  0x4f   :  { %2329 = vmatprep.subr.bf16.mxu1 %v2454_v49 }
  0x52   :  { %2330 = vmatpush3.bf16.msra.mxu1 %v2454_v49 }
 0x101   :  { %v2309_v54 = vpop.f32.mrb[0].mxu0 }
 0x102   :  { %v3041_v42 = vadd.f32 %v2309_v54, %v2036_v53  ;;  %v289_v57 = vpop.f32.mrb[1].mxu0 }
 0x103   :  { %v3043_v47 = vadd.f32 %v2036_v53, %v289_v57  ;;  %v2310_v58 = vpop.f32.mrb[2].mxu0 }
 0x104   :  { %v346_v59 = vand.u32 2147483647, %v3041_v42  ;;  %v3046_v60 = vadd.f32 %v2310_v58, %v2036_v53  ;;  %v292_v61 = vpop.f32.mrb[3].mxu0  ;;  %v322_v34 = vmax.f32 %v3041_v42, 0.0  ;;  %vm330_vm0 = vcmp.ne.f32.partialorder %v3041_v42, %v3041_v42 }
 0x105   :  { %v344_v0 = vand.u32 2147483647, %v3043_v47  ;;  %v3049_v52 = vadd.f32 %v2036_v53, %v292_v61  ;;  %v320_v37 = vmax.f32 %v3043_v47, 0.0  ;;  %vm328_vm2 = vcmp.ne.f32.partialorder %v3043_v47, %v3043_v47 }
 0x106   :  { %v354_v1 = vsub.f32 0.0, %v346_v59  ;;  %v347_v2 = vand.u32 2147483647, %v3046_v60  ;;  %v323_v38 = vmax.f32 %v3046_v60, 0.0  ;;  %vm331_vm4 = vcmp.ne.f32.partialorder %v3046_v60, %v3046_v60 }
 0x107   :  { %v352_v8 = vsub.f32 0.0, %v344_v0  ;;  %v345_v9 = vand.u32 2147483647, %v3049_v52  ;;  %v321_v40 = vmax.f32 %v3049_v52, 0.0  ;;  %vm329_vm6 = vcmp.ne.f32.partialorder %v3049_v52, %v3049_v52  ;;  %v475_v0 = vld [vmem:[%s3814_s1 + $0x18] sm:$0xff] }
 0x108   :  { %v364_v28 = vmul.f32 1.442695, %v354_v1  ;;  %v355_v10 = vsub.f32 0.0, %v347_v2 }
 0x109   :  { %v360_v43 = vmul.f32 1.442695, %v352_v8  ;;  %v353_v11 = vsub.f32 0.0, %v345_v9  ;;  %v2313_v56 = vpop.f32.mrb[4].mxu0 }
 0x10a   :  { %2519 = vpow2.f32 %v364_v28  ;;  %v366_v12 = vmul.f32 1.442695, %v355_v10  ;;  %v3053_v15 = vadd.f32 %v2313_v56, %v2036_v53  ;;  %v305_v16 = vpop.f32.mrb[5].mxu0 }
 0x10b   :  { %2521 = vpow2.f32 %v360_v43  ;;  %v362_v4 = vmul.f32 1.442695, %v353_v11  ;;  %v3055_v45 = vadd.f32 %v2036_v53, %v305_v16  ;;  %v2314_v63 = vpop.f32.mrb[6].mxu0 }
 0x10c   :  { %2523 = vpow2.f32 %v366_v12  ;;  %v350_v20 = vand.u32 2147483647, %v3053_v15  ;;  %v308_v21 = vpop.f32.mrb[7].mxu0  ;;  %v3059_v23 = vadd.f32 %v2314_v63, %v2036_v53  ;;  %v326_v62 = vmax.f32 %v3053_v15, 0.0 }
 0x10d   :  { %2525 = vpow2.f32 %v362_v4  ;;  %v348_v22 = vand.u32 2147483647, %v3055_v45  ;;  %v3061_v24 = vadd.f32 %v2036_v53, %v308_v21  ;;  %v324_v41 = vmax.f32 %v3055_v45, 0.0 }
 0x10e   :  { %v358_v5 = vsub.f32 0.0, %v350_v20  ;;  %v351_v26 = vand.u32 2147483647, %v3059_v23  ;;  %v327_v53 = vmax.f32 %v3059_v23, 0.0  ;;  %vm334_vm10 = vcmp.ne.f32.partialorder %v3053_v15, %v3053_v15 }
 0x10f   :  { %v356_v25 = vsub.f32 0.0, %v348_v22  ;;  %v349_v27 = vand.u32 2147483647, %v3061_v24  ;;  %v325_v61 = vmax.f32 %v3061_v24, 0.0  ;;  %vm332_vm11 = vcmp.ne.f32.partialorder %v3055_v45, %v3055_v45 }
 0x110   :  { %v372_v46 = vmul.f32 1.442695, %v358_v5  ;;  %v359_v3 = vsub.f32 0.0, %v351_v26  ;;  %vm335_vm13 = vcmp.ne.f32.partialorder %v3059_v23, %v3059_v23  ;;  %vm333_vm15 = vcmp.ne.f32.partialorder %v3061_v24, %v3061_v24 }
 0x111   :  { %v368_v6 = vmul.f32 1.442695, %v356_v25  ;;  %v357_v7 = vsub.f32 0.0, %v349_v27 }
 0x112   :  { %2527 = vpow2.f32 %v372_v46  ;;  %v374_v19 = vmul.f32 1.442695, %v359_v3 }
 0x113   :  { %2529 = vpow2.f32 %v368_v6  ;;  %v370_v36 = vmul.f32 1.442695, %v357_v7 }
 0x114   :  { %v2520_v29 = vpop.eup %2519  ;;  %2531 = vpow2.f32 %v374_v19 }
 0x115   :  { %v2522_v50 = vpop.eup %2521  ;;  %v394_v30 = vadd.f32 1.0, %v2520_v29  ;;  %v397_v35 = vmul.f32 -0.5, %v2520_v29  ;;  %v400_v55 = vand.u32 2147483647, %v2520_v29 }
 0x116   :  { %v2524_v31 = vpop.eup %2523  ;;  %v376_v32 = vadd.f32 1.0, %v2522_v50  ;;  %v379_v13 = vmul.f32 -0.5, %v2522_v50  ;;  %v382_v17 = vand.u32 2147483647, %v2522_v50 }
 0x117   :  { %v2526_v33 = vpop.eup %2525  ;;  %2533 = vlog2.f32 %v394_v30  ;;  %v403_v51 = vadd.f32 1.0, %v2524_v31  ;;  %v406_v14 = vmul.f32 -0.5, %v2524_v31  ;;  %v398_v48 = vadd.f32 1.0, %v397_v35 }
 0x118   :  { %2535 = vlog2.f32 %v376_v32  ;;  %v385_v39 = vadd.f32 1.0, %v2526_v33  ;;  %v388_v18 = vmul.f32 -0.5, %v2526_v33  ;;  %v380_v49 = vadd.f32 1.0, %v379_v13 }
 0x119   :  { %2537 = vlog2.f32 %v403_v51  ;;  %v409_v57 = vand.u32 2147483647, %v2524_v31  ;;  %vm3075_vm1 = vcmp.lt.f32.partialorder %v400_v55, 0.0004427343  ;;  %v407_v1 = vadd.f32 1.0, %v406_v14 }
 0x11a   :  { %2539 = vlog2.f32 %v385_v39  ;;  %v391_v2 = vand.u32 2147483647, %v2526_v33  ;;  %vm3081_vm3 = vcmp.lt.f32.partialorder %v382_v17, 0.0004427343  ;;  %v389_v28 = vadd.f32 1.0, %v388_v18  ;;  %v474_v17 = vld [vmem:[%s3814_s1 + $0x10] sm:$0xff] }
 0x11b   :  { %2541 = vpow2.f32 %v370_v36  ;;  %v399_v11 = vmul.f32 %v2520_v29, %v398_v48  ;;  %v381_v56 = vmul.f32 %v2522_v50, %v380_v49  ;;  %vm3087_vm5 = vcmp.lt.f32.partialorder %v409_v57, 0.0004427343 }
 0x11c   :  { %v2528_v44 = vpop.eup %2527  ;;  %v408_v25 = vmul.f32 %v2524_v31, %v407_v1  ;;  %vm3093_vm7 = vcmp.lt.f32.partialorder %v391_v2, 0.0004427343  ;;  %v390_v3 = vmul.f32 %v2526_v33, %v389_v28 }
 0x11d   :  { %v2530_v54 = vpop.eup %2529  ;;  %v430_v58 = vadd.f32 1.0, %v2528_v44  ;;  %v433_v59 = vmul.f32 -0.5, %v2528_v44  ;;  %v436_v12 = vand.u32 2147483647, %v2528_v44 }
 0x11e   :  { %v412_v8 = vadd.f32 1.0, %v2530_v54  ;;  %v415_v10 = vmul.f32 -0.5, %v2530_v54  ;;  %v2532_v43 = vpop.eup %2531  ;;  %v418_v20 = vand.u32 2147483647, %v2530_v54 }
 0x11f   :  { %2543 = vlog2.f32 %v430_v58  ;;  %v434_v63 = vadd.f32 1.0, %v433_v59  ;;  %v439_v21 = vadd.f32 1.0, %v2532_v43  ;;  %v442_v26 = vmul.f32 -0.5, %v2532_v43 }
 0x120   :  { %2545 = vlog2.f32 %v412_v8  ;;  %v416_v29 = vadd.f32 1.0, %v415_v10  ;;  %vm3099_vm8 = vcmp.lt.f32.partialorder %v436_v12, 0.0004427343  ;;  %v445_v30 = vand.u32 2147483647, %v2532_v43 }
 0x121   :  { %v2534_v16 = vpop.eup %2533  ;;  %2547 = vlog2.f32 %v439_v21  ;;  %v435_v35 = vmul.f32 %v2528_v44, %v434_v63  ;;  %vm3107_vm9 = vcmp.lt.f32.partialorder %v418_v20, 0.0004427343 }
 0x122   :  { %v2536_v22 = vpop.eup %2535  ;;  %v396_v5 = vmul.f32 0.6931472, %v2534_v16  ;;  %v417_v18 = vmul.f32 %v2530_v54, %v416_v29  ;;  %vm3140_vm12 = vcmp.lt.f32.partialorder %v445_v30, 0.0004427343 }
 0x123   :  { %v2538_v6 = vpop.eup %2537  ;;  %v378_v27 = vmul.f32 0.6931472, %v2536_v22 }
 0x124   :  { %v402_v19 = vsel %vm3075_vm1, %v399_v11, %v396_v5  ;;  %v405_v7 = vmul.f32 0.6931472, %v2538_v6  ;;  %v2540_v31 = vpop.eup %2539 }
 0x125   :  { %v450_v32 = vadd.f32 %v402_v19, %v322_v34  ;;  %v384_v51 = vsel %vm3081_vm3, %v381_v56, %v378_v27  ;;  %v3111_v13 = vpop.eup %2541  ;;  %v387_v55 = vmul.f32 0.6931472, %v2540_v31  ;;  %v443_v34 = vadd.f32 1.0, %v442_v26  ;;  %v473_v56 = vld [vmem:[%s3814_s1 + $0x8] sm:$0xff] }
 0x126   :  { %v448_v36 = vadd.f32 %v384_v51, %v320_v37  ;;  %v411_v39 = vsel %vm3087_vm5, %v408_v25, %v405_v7  ;;  %v421_v44 = vadd.f32 1.0, %v3111_v13  ;;  %v424_v54 = vmul.f32 -0.5, %v3111_v13 }
 0x127   :  { %v458_v14 = vsel %vm330_vm0, %v3041_v42, %v450_v32  ;;  %v451_v37 = vadd.f32 %v411_v39, %v323_v38  ;;  %v472_v42 = vld [vmem:[%s3814_s1] sm:$0xff]  ;;  %v393_v57 = vsel %vm3093_vm7, %v390_v3, %v387_v55  ;;  %v444_v10 = vmul.f32 %v2532_v43, %v443_v34  ;;  %v478_v3 = vld [vmem:[%s3814_s1 + $0x30] sm:$0xff] }
 0x128   :  { %v2047_v48 = vadd.f32 -0.6931472, %v458_v14  ;;  %v456_v49 = vsel %vm328_vm2, %v3043_v47, %v448_v36  ;;  %v449_v1 = vadd.f32 %v393_v57, %v321_v40  ;;  %2549 = vlog2.f32 %v421_v44 }
 0x129   :  { %v2544_v58 = vpop.eup %2543  ;;  %v2045_v59 = vadd.f32 -0.6931472, %v456_v49  ;;  %v459_v47 = vsel %vm331_vm4, %v3046_v60, %v451_v37  ;;  %v427_v40 = vand.u32 2147483647, %v3111_v13  ;;  %v425_v5 = vadd.f32 1.0, %v424_v54  ;;  %v477_v54 = vld [vmem:[%s3814_s1 + $0x28] sm:$0xff] }
 0x12a   :  { %v2546_v2 = vpop.eup %2545  ;;  %v3154_v8 = vadd.f32 %v2047_v48, %v474_v17  ;;  %v2048_v9 = vadd.f32 -0.6931472, %v459_v47  ;;  %v432_v28 = vmul.f32 0.6931472, %v2544_v58  ;;  %v457_v60 = vsel %vm329_vm6, %v3049_v52, %v449_v1 }
 0x12b   :  { %v3156_v11 = vadd.f32 %v2045_v59, %v472_v42  ;;  %v414_v12 = vmul.f32 0.6931472, %v2546_v2  ;;  %v2046_v4 = vadd.f32 -0.6931472, %v457_v60  ;;  %v2548_v63 = vpop.eup %2547  ;;  %vm3193_vm14 = vcmp.lt.f32.partialorder %v427_v40, 0.0004427343 }
 0x12c   :  { %v514_v16 = vand.u32 2147483647, %v3154_v8  ;;  %1990 = vst [vmem:[#allocation4 + $0x10] sm:$0xff] %v3154_v8  ;;  %v3170_v43 = vadd.f32 %v2048_v9, %v475_v0  ;;  %v438_v52 = vsel %vm3099_vm8, %v435_v35, %v432_v28  ;;  %v441_v29 = vmul.f32 0.6931472, %v2548_v63 }
 0x12d   :  { %v512_v20 = vand.u32 2147483647, %v3156_v11  ;;  %1988 = vst [vmem:[#allocation4] sm:$0xff] %v3156_v11  ;;  %v454_v21 = vadd.f32 %v438_v52, %v326_v62  ;;  %v420_v22 = vsel %vm3107_vm9, %v417_v18, %v414_v12  ;;  %v3182_v26 = vadd.f32 %v2046_v4, %v473_v56  ;;  %v479_v18 = vld [vmem:[%s3814_s1 + $0x38] sm:$0xff] }
 0x12e   :  { %v522_v25 = vsub.f32 0.0, %v514_v16  ;;  %v515_v46 = vand.u32 2147483647, %v3170_v43  ;;  %1991 = vst [vmem:[#allocation4 + $0x18] sm:$0xff] %v3170_v43  ;;  %v452_v6 = vadd.f32 %v420_v22, %v324_v41  ;;  %v476_v41 = vld [vmem:[%s3814_s1 + $0x20] sm:$0xff]  ;;  %v447_v35 = vsel %vm3140_vm12, %v444_v10, %v441_v29 }
 0x12f   :  { %v520_v27 = vsub.f32 0.0, %v512_v20  ;;  %v462_v62 = vsel %vm334_vm10, %v3053_v15, %v454_v21  ;;  %v513_v30 = vand.u32 2147483647, %v3182_v26  ;;  %1989 = vst [vmem:[#allocation4 + $0x8] sm:$0xff] %v3182_v26  ;;  %v455_v39 = vadd.f32 %v447_v35, %v327_v53 }
 0x130   :  { %v532_v7 = vmul.f32 1.442695, %v522_v25  ;;  %v523_v50 = vsub.f32 0.0, %v515_v46  ;;  %v460_v15 = vsel %vm332_vm11, %v3055_v45, %v452_v6  ;;  %v2051_v32 = vadd.f32 -0.6931472, %v462_v62 }
 0x131   :  { %v528_v31 = vmul.f32 1.442695, %v520_v27  ;;  %v2049_v51 = vadd.f32 -0.6931472, %v460_v15  ;;  %v521_v36 = vsub.f32 0.0, %v513_v30  ;;  %v426_v14 = vmul.f32 %v3111_v13, %v425_v5 }
 0x132   :  { %2551 = vpow2.f32 %v532_v7  ;;  %v534_v33 = vmul.f32 1.442695, %v523_v50  ;;  %v2550_v55 = vpop.eup %2549  ;;  %v3210_v34 = vadd.f32 %v2051_v32, %v478_v3  ;;  %v463_v37 = vsel %vm335_vm13, %v3059_v23, %v455_v39 }
 0x133   :  { %2553 = vpow2.f32 %v528_v31  ;;  %v3212_v45 = vadd.f32 %v2049_v51, %v476_v41  ;;  %v530_v17 = vmul.f32 1.442695, %v521_v36  ;;  %v423_v53 = vmul.f32 0.6931472, %v2550_v55 }
 0x134   :  { %2555 = vpow2.f32 %v534_v33  ;;  %v518_v44 = vand.u32 2147483647, %v3210_v34  ;;  %1994 = vst [vmem:[#allocation4 + $0x30] sm:$0xff] %v3210_v34  ;;  %v2052_v13 = vadd.f32 -0.6931472, %v463_v37  ;;  %v488_v25 = vmax.f32 %v3156_v11, 0.0 }
 0x135   :  { %v516_v48 = vand.u32 2147483647, %v3212_v45  ;;  %1992 = vst [vmem:[#allocation4 + $0x20] sm:$0xff] %v3212_v45  ;;  %2557 = vpow2.f32 %v530_v17  ;;  %v429_v49 = vsel %vm3193_vm14, %v426_v14, %v423_v53  ;;  %v489_v27 = vmax.f32 %v3182_v26, 0.0 }
 0x136   :  { %v526_v42 = vsub.f32 0.0, %v518_v44  ;;  %v3228_v57 = vadd.f32 %v2052_v13, %v479_v18  ;;  %v453_v38 = vadd.f32 %v429_v49, %v325_v61  ;;  %vm496_vm0 = vcmp.ne.f32.partialorder %v3156_v11, %v3156_v11 }
 0x137   :  { %v524_v23 = vsub.f32 0.0, %v516_v48  ;;  %v490_v41 = vmax.f32 %v3154_v8, 0.0  ;;  %v491_v51 = vmax.f32 %v3170_v43, 0.0  ;;  %vm498_vm1 = vcmp.ne.f32.partialorder %v3154_v8, %v3154_v8 }
 0x138   :  { %v540_v58 = vmul.f32 1.442695, %v526_v42  ;;  %v519_v47 = vand.u32 2147483647, %v3228_v57  ;;  %1995 = vst [vmem:[#allocation4 + $0x38] sm:$0xff] %v3228_v57  ;;  %v461_v0 = vsel %vm333_vm15, %v3061_v24, %v453_v38  ;;  %vm497_vm2 = vcmp.ne.f32.partialorder %v3182_v26, %v3182_v26 }
 0x139   :  { %v536_v59 = vmul.f32 1.442695, %v524_v23  ;;  %v2050_v1 = vadd.f32 -0.6931472, %v461_v0  ;;  %vm499_vm4 = vcmp.ne.f32.partialorder %v3170_v43, %v3170_v43  ;;  %vm503_vm12 = vcmp.ne.f32.partialorder %v3228_v57, %v3228_v57 }
 0x13a   :  { %2559 = vpow2.f32 %v540_v58  ;;  %v527_v2 = vsub.f32 0.0, %v519_v47  ;;  %vm500_vm13 = vcmp.ne.f32.partialorder %v3212_v45, %v3212_v45  ;;  %vm502_vm14 = vcmp.ne.f32.partialorder %v3210_v34, %v3210_v34 }
 0x13b   :  { %2561 = vpow2.f32 %v536_v59  ;;  %v3240_v61 = vadd.f32 %v2050_v1, %v477_v54 }
 0x13c   :  { %v2552_v9 = vpop.eup %2551  ;;  %v542_v10 = vmul.f32 1.442695, %v527_v2 }
 0x13d   :  { %v2554_v28 = vpop.eup %2553  ;;  %v562_v60 = vadd.f32 1.0, %v2552_v9  ;;  %v517_v12 = vand.u32 2147483647, %v3240_v61  ;;  %1993 = vst [vmem:[#allocation4 + $0x28] sm:$0xff] %v3240_v61  ;;  %v565_v21 = vmul.f32 -0.5, %v2552_v9  ;;  %vm501_vm15 = vcmp.ne.f32.partialorder %v3240_v61, %v3240_v61 }
 0x13e   :  { %v2556_v56 = vpop.eup %2555  ;;  %v544_v40 = vadd.f32 1.0, %v2554_v28  ;;  %2563 = vpow2.f32 %v542_v10  ;;  %v547_v20 = vmul.f32 -0.5, %v2554_v28  ;;  %v550_v62 = vand.u32 2147483647, %v2554_v28 }
 0x13f   :  { %v571_v16 = vadd.f32 1.0, %v2556_v56  ;;  %v2558_v4 = vpop.eup %2557  ;;  %v525_v24 = vsub.f32 0.0, %v517_v12  ;;  %v574_v46 = vmul.f32 -0.5, %v2556_v56  ;;  %v568_v3 = vand.u32 2147483647, %v2552_v9 }
 0x140   :  { %2565 = vlog2.f32 %v544_v40  ;;  %v553_v52 = vadd.f32 1.0, %v2558_v4  ;;  %v556_v22 = vmul.f32 -0.5, %v2558_v4  ;;  %v548_v19 = vadd.f32 1.0, %v547_v20 }
 0x141   :  { %2567 = vlog2.f32 %v562_v60  ;;  %v538_v63 = vmul.f32 1.442695, %v525_v24  ;;  %v559_v7 = vand.u32 2147483647, %v2558_v4  ;;  %v566_v50 = vadd.f32 1.0, %v565_v21 }
 0x142   :  { %2569 = vlog2.f32 %v571_v16  ;;  %v557_v15 = vadd.f32 1.0, %v556_v22  ;;  %v577_v31 = vand.u32 2147483647, %v2556_v56  ;;  %v575_v35 = vadd.f32 1.0, %v574_v46 }
 0x143   :  { %2571 = vlog2.f32 %v553_v52  ;;  %vm3262_vm3 = vcmp.lt.f32.partialorder %v550_v62, 0.0004427343  ;;  %vm3268_vm5 = vcmp.lt.f32.partialorder %v568_v3, 0.0004427343  ;;  %v549_v37 = vmul.f32 %v2554_v28, %v548_v19 }
 0x144   :  { %2573 = vpow2.f32 %v538_v63  ;;  %v3244_v5 = vpop.eup %2559  ;;  %vm3273_vm6 = vcmp.lt.f32.partialorder %v559_v7, 0.0004427343  ;;  %v567_v53 = vmul.f32 %v2552_v9, %v566_v50  ;;  %v558_v48 = vmul.f32 %v2558_v4, %v557_v15 }
 0x145   :  { %v3247_v6 = vpop.eup %2561  ;;  %v598_v29 = vadd.f32 1.0, %v3244_v5  ;;  %vm3277_vm7 = vcmp.lt.f32.partialorder %v577_v31, 0.0004427343  ;;  %v576_v54 = vmul.f32 %v2556_v56, %v575_v35  ;;  %v601_v58 = vmul.f32 -0.5, %v3244_v5 }
 0x146   :  { %v580_v30 = vadd.f32 1.0, %v3247_v6  ;;  %v583_v2 = vmul.f32 -0.5, %v3247_v6  ;;  %v586_v40 = vand.u32 2147483647, %v3247_v6  ;;  %v604_v16 = vand.u32 2147483647, %v3244_v5 }
 0x147   :  { %2575 = vlog2.f32 %v598_v29  ;;  %v602_v52 = vadd.f32 1.0, %v601_v58 }
 0x148   :  { %v3255_v32 = vpop.eup %2563  ;;  %2577 = vlog2.f32 %v580_v30  ;;  %v584_v22 = vadd.f32 1.0, %v583_v2  ;;  %vm3312_vm8 = vcmp.lt.f32.partialorder %v586_v40, 0.0004427343  ;;  %vm605_vm9 = vcmp.lt.f32.partialorder %v604_v16, 0.0004427343  ;;  %v2456_v40 = vld [vmem:[%s3815_s2 + $0x88] sm:$0xff]  }
 0x149   :  { %v607_v55 = vadd.f32 1.0, %v3255_v32  ;;  %v610_v60 = vmul.f32 -0.5, %v3255_v32  ;;  %v603_v39 = vmul.f32 %v3244_v5, %v602_v52  ;;  %v2457_v16 = vld [vmem:[%s3815_s2 + $0x90] sm:$0xff]   ;;  %v2460_v52 = vld [vmem:[%s3815_s2 + $0xa8] sm:$0xff]  }
 0x14a   :  { %v2566_v33 = vpop.eup %2565 }
 0x14b   :  { %v2568_v14 = vpop.eup %2567  ;;  %v546_v17 = vmul.f32 0.6931472, %v2566_v33  ;;  %2579 = vlog2.f32 %v607_v55  ;;  %v611_v29 = vadd.f32 1.0, %v610_v60  ;;  %v495_v33 = vmax.f32 %v3228_v57, 0.0 }
 0x14c   :  { %v2570_v44 = vpop.eup %2569  ;;  %v564_v13 = vmul.f32 0.6931472, %v2568_v14 }
 0x14d   :  { %v2572_v42 = vpop.eup %2571  ;;  %v552_v23 = vsel %vm3262_vm3, %v549_v37, %v546_v17  ;;  %v573_v38 = vmul.f32 0.6931472, %v2570_v44  ;;  %v612_v14 = vmul.f32 %v3255_v32, %v611_v29 }
 0x14e   :  { %v2574_v59 = vpop.eup %2573  ;;  %v555_v47 = vmul.f32 0.6931472, %v2572_v42  ;;  %v616_v0 = vadd.f32 %v552_v23, %v488_v25  ;;  %v570_v1 = vsel %vm3268_vm5, %v567_v53, %v564_v13  ;;  %v613_v25 = vand.u32 2147483647, %v3255_v32 }
 0x14f   :  { %v579_v9 = vsel %vm3277_vm7, %v576_v54, %v573_v38  ;;  %v618_v28 = vadd.f32 %v570_v1, %v490_v41  ;;  %v589_v10 = vadd.f32 1.0, %v2574_v59  ;;  %v592_v3 = vmul.f32 -0.5, %v2574_v59 }
 0x150   :  { %v561_v56 = vsel %vm3273_vm6, %v558_v48, %v555_v47  ;;  %v619_v12 = vadd.f32 %v579_v9, %v491_v51  ;;  %v624_v24 = vsel %vm496_vm0, %v3156_v11, %v616_v0  ;;  %v585_v51 = vmul.f32 %v3247_v6, %v584_v22 }
 0x151   :  { %v617_v4 = vadd.f32 %v561_v56, %v489_v27  ;;  %2581 = vlog2.f32 %v589_v10  ;;  %v2576_v63 = vpop.eup %2575  ;;  %v626_v20 = vsel %vm498_vm1, %v3154_v8, %v618_v28  ;;  %v2053_v19 = vadd.f32 -0.6931472, %v624_v24  ;;  %v2459_v24 = vld [vmem:[%s3815_s2 + $0xa0] sm:$0xff]  }
 0x152   :  { %v627_v21 = vsel %vm499_vm4, %v3170_v43, %v619_v12  ;;  %v2578_v46 = vpop.eup %2577  ;;  %v2055_v30 = vadd.f32 -0.6931472, %v626_v20  ;;  %v600_v15 = vmul.f32 0.6931472, %v2576_v63  ;;  %v593_v37 = vadd.f32 1.0, %v592_v3  ;;  %v2455_v12 = vld [vmem:[%s3815_s2 + $0x80] sm:$0xff]  }
 0x153   :  { %v625_v27 = vsel %vm497_vm2, %v3182_v26, %v617_v4  ;;  %v2056_v62 = vadd.f32 -0.6931472, %v627_v21  ;;  %v582_v50 = vmul.f32 0.6931472, %v2578_v46  ;;  %vm614_vm10 = vcmp.lt.f32.partialorder %v613_v25, 0.0004427343  ;;  %2339 = vmatprep.subr.bf16.mxu0 %v2455_v12 }
 0x154   :  { %v2054_v7 = vadd.f32 -0.6931472, %v625_v27  ;;  %v492_v6 = vmax.f32 %v3212_v45, 0.0  ;;  %v595_v18 = vand.u32 2147483647, %v2574_v59  ;;  %v606_v53 = vsel %vm605_vm9, %v603_v39, %v600_v15  ;;  %2340 = vmatpush3.bf16.msra.mxu0 %v2455_v12  ;;  %v2458_v4 = vld [vmem:[%s3815_s2 + $0x98] sm:$0xff]  }
 0x155   :  { %v2580_v41 = vpop.eup %2579  ;;  %v641_v36 = vpack.c.bf16 %v2056_v62, %v2055_v30  ;;  %v588_v17 = vsel %vm3312_vm8, %v585_v51, %v582_v50  ;;  %v494_v48 = vmax.f32 %v3210_v34, 0.0  ;;  %v594_v32 = vmul.f32 %v2574_v59, %v593_v37  ;;  %2341 = vmatprep.subr.bf16.mxu0 %v2456_v40  ;;  %v2461_v63 = vld [vmem:[%s3815_s2 + $0xb0] sm:$0xff]   ;;  %v2462_v20 = vld [vmem:[%s3815_s2 + $0xb8] sm:$0xff]   ;;  %v2077_v21 = vld [vmem:[%s3816_s3 + $0x1] ss:$0 sm:$0xff] }
 0x156   :  { %v640_v31 = vpack.c.bf16 %v2054_v7, %v2053_v19  ;;  %v609_v55 = vmul.f32 0.6931472, %v2580_v41  ;;  %v620_v49 = vadd.f32 %v588_v17, %v492_v6  ;;  %v493_v38 = vmax.f32 %v3240_v61, 0.0 }
 0x157   :  { %v622_v23 = vadd.f32 %v606_v53, %v494_v48  ;;  %vm596_vm11 = vcmp.lt.f32.partialorder %v595_v18, 0.0004427343 }
 0x158   :  { %2331 = vmatprep.mubr.bf16.mxu1 %v640_v31  ;;  %v615_v44 = vsel %vm614_vm10, %v612_v14, %v609_v55  ;;  %v628_v0 = vsel %vm500_vm13, %v3212_v45, %v620_v49  ;;  %2342 = vmatpush3.bf16.msra.mxu0 %v2456_v40 }
 0x159   :  { %2332 = vmatmul.mubr.bf16.vlgmr.msra.gmra.mrb[0].mxu1 %v641_v36  ;;  %v623_v13 = vadd.f32 %v615_v44, %v495_v33  ;;  %v630_v59 = vsel %vm502_vm14, %v3210_v34, %v622_v23  ;;  %v2057_v9 = vadd.f32 -0.6931472, %v628_v0  ;;  %2343 = vmatprep.subr.bf16.mxu0 %v2457_v16 }
 0x15a   :  { %v2059_v10 = vadd.f32 -0.6931472, %v630_v59 }
 0x15b   :  { %v2582_v5 = vpop.eup %2581  ;;  %v631_v58 = vsel %vm503_vm12, %v3228_v57, %v623_v13 }
 0x15c   :  { %v591_v42 = vmul.f32 0.6931472, %v2582_v5  ;;  %v2060_v2 = vadd.f32 -0.6931472, %v631_v58  ;;  %2344 = vmatpush3.bf16.msra.mxu0 %v2457_v16 }
 0x15d   :  { %2345 = vmatprep.subr.bf16.mxu0 %v2458_v4 }
 0x15e   :  { %v597_v54 = vsel %vm596_vm11, %v594_v32, %v591_v42  ;;  %v643_v56 = vpack.c.bf16 %v2060_v2, %v2059_v10 }
 0x15f   :  { %v621_v47 = vadd.f32 %v597_v54, %v493_v38 }
 0x160   :  { %2346 = vmatpush3.bf16.msra.mxu0 %v2458_v4 }
 0x161   :  { %v629_v1 = vsel %vm501_vm15, %v3240_v61, %v621_v47  ;;  %2347 = vmatprep.subr.bf16.mxu0 %v2459_v24 }
 0x162   :  { %v2058_v28 = vadd.f32 -0.6931472, %v629_v1 }
 0x164   :  { %v642_v60 = vpack.c.bf16 %v2058_v28, %v2057_v9  ;;  %2348 = vmatpush3.bf16.msra.mxu0 %v2459_v24 }
 0x165   :  { %2349 = vmatprep.subr.bf16.mxu0 %v2460_v52 }
 0x166   :  { %2335 = vmatprep.mubr.bf16.mxu1 %v642_v60 }
 0x167   :  { %2336 = vmatmul.mubr.bf16.gmra.mrb[4].mxu1 %v643_v56 }
 0x168   :  { %2350 = vmatpush3.bf16.msra.mxu0 %v2460_v52 }
 0x169   :  { %2351 = vmatprep.subr.bf16.mxu0 %v2461_v63 }
 0x16c   :  { %2352 = vmatpush3.bf16.msra.mxu0 %v2461_v63 }
 0x16d   :  { %2353 = vmatprep.subr.bf16.mxu0 %v2462_v20 }
 0x170   :  { %2354 = vmatpush3.bf16.msra.mxu0 %v2462_v20 }
 0x22c   :  { %v2333_v22 = vpop.f32.mrb[0].mxu1 }
 0x22d   :  { %v3363_v25 = vadd.f32 %v2333_v22, %v2077_v21  ;;  %v748_v46 = vpop.f32.mrb[1].mxu1 }
 0x22e   :  { %v3365_v27 = vadd.f32 %v2077_v21, %v748_v46  ;;  %v2334_v62 = vpop.f32.mrb[2].mxu1 }
 0x22f   :  { %v805_v3 = vand.u32 2147483647, %v3363_v25  ;;  %v3368_v29 = vadd.f32 %v2334_v62, %v2077_v21  ;;  %v751_v19 = vpop.f32.mrb[3].mxu1  ;;  %v781_v20 = vmax.f32 %v3363_v25, 0.0  ;;  %vm789_vm0 = vcmp.ne.f32.partialorder %v3363_v25, %v3363_v25 }
 0x230   :  { %v803_v7 = vand.u32 2147483647, %v3365_v27  ;;  %v3371_v50 = vadd.f32 %v2077_v21, %v751_v19  ;;  %v779_v62 = vmax.f32 %v3365_v27, 0.0  ;;  %vm787_vm6 = vcmp.ne.f32.partialorder %v3365_v27, %v3365_v27 }
 0x231   :  { %v813_v30 = vsub.f32 0.0, %v805_v3  ;;  %v806_v15 = vand.u32 2147483647, %v3368_v29  ;;  %vm790_vm5 = vcmp.ne.f32.partialorder %v3368_v29, %v3368_v29 }
 0x232   :  { %v811_v41 = vsub.f32 0.0, %v803_v7  ;;  %v804_v31 = vand.u32 2147483647, %v3371_v50  ;;  %vm788_vm7 = vcmp.ne.f32.partialorder %v3371_v50, %v3371_v50 }
 0x233   :  { %v823_v51 = vmul.f32 1.442695, %v813_v30  ;;  %v814_v35 = vsub.f32 0.0, %v806_v15 }
 0x234   :  { %v819_v33 = vmul.f32 1.442695, %v811_v41  ;;  %v812_v36 = vsub.f32 0.0, %v804_v31 }
 0x235   :  { %2583 = vpow2.f32 %v823_v51  ;;  %v825_v39 = vmul.f32 1.442695, %v814_v35 }
 0x236   :  { %2585 = vpow2.f32 %v819_v33  ;;  %v821_v55 = vmul.f32 1.442695, %v812_v36 }
 0x237   :  { %2587 = vpow2.f32 %v825_v39 }
 0x238   :  { %2589 = vpow2.f32 %v821_v55 }
 0x23a   :  { %v2337_v14 = vpop.f32.mrb[4].mxu1 }
 0x23b   :  { %v3375_v17 = vadd.f32 %v2337_v14, %v2077_v21  ;;  %v764_v37 = vpop.f32.mrb[5].mxu1 }
 0x23c   :  { %v3377_v6 = vadd.f32 %v2077_v21, %v764_v37  ;;  %v2338_v18 = vpop.f32.mrb[6].mxu1 }
 0x23d   :  { %v809_v53 = vand.u32 2147483647, %v3375_v17  ;;  %v767_v44 = vpop.f32.mrb[7].mxu1  ;;  %v3381_v13 = vadd.f32 %v2338_v18, %v2077_v21  ;;  %vm793_vm11 = vcmp.ne.f32.partialorder %v3375_v17, %v3375_v17 }
 0x23e   :  { %v807_v48 = vand.u32 2147483647, %v3377_v6  ;;  %v3384_v2 = vadd.f32 %v2077_v21, %v767_v44  ;;  %v782_v44 = vmax.f32 %v3368_v29, 0.0  ;;  %vm791_vm14 = vcmp.ne.f32.partialorder %v3377_v6, %v3377_v6 }
 0x23f   :  { %v2584_v5 = vpop.eup %2583  ;;  %v817_v49 = vsub.f32 0.0, %v809_v53  ;;  %v810_v0 = vand.u32 2147483647, %v3381_v13  ;;  %vm794_vm13 = vcmp.ne.f32.partialorder %v3381_v13, %v3381_v13 }
 0x240   :  { %v2586_v42 = vpop.eup %2585  ;;  %v853_v32 = vadd.f32 1.0, %v2584_v5  ;;  %v815_v47 = vsub.f32 0.0, %v807_v48  ;;  %v856_v9 = vmul.f32 -0.5, %v2584_v5  ;;  %v808_v40 = vand.u32 2147483647, %v3384_v2 }
 0x241   :  { %v2588_v23 = vpop.eup %2587  ;;  %v835_v38 = vadd.f32 1.0, %v2586_v42  ;;  %v831_v59 = vmul.f32 1.442695, %v817_v49  ;;  %v838_v28 = vmul.f32 -0.5, %v2586_v42  ;;  %v818_v60 = vsub.f32 0.0, %v810_v0 }
 0x242   :  { %v2590_v54 = vpop.eup %2589  ;;  %2591 = vlog2.f32 %v853_v32  ;;  %v862_v58 = vadd.f32 1.0, %v2588_v23  ;;  %v827_v10 = vmul.f32 1.442695, %v815_v47  ;;  %v865_v56 = vmul.f32 -0.5, %v2588_v23 }
 0x243   :  { %2593 = vlog2.f32 %v835_v38  ;;  %v844_v1 = vadd.f32 1.0, %v2590_v54  ;;  %v833_v12 = vmul.f32 1.442695, %v818_v60  ;;  %v857_v16 = vadd.f32 1.0, %v856_v9 }
 0x244   :  { %2595 = vlog2.f32 %v862_v58  ;;  %v859_v4 = vand.u32 2147483647, %v2584_v5  ;;  %v847_v24 = vmul.f32 -0.5, %v2590_v54  ;;  %v839_v52 = vadd.f32 1.0, %v838_v28 }
 0x245   :  { %2597 = vlog2.f32 %v844_v1  ;;  %v816_v63 = vsub.f32 0.0, %v808_v40  ;;  %v841_v21 = vand.u32 2147483647, %v2586_v42  ;;  %v866_v22 = vadd.f32 1.0, %v865_v56 }
 0x246   :  { %2599 = vpow2.f32 %v831_v59  ;;  %v868_v3 = vand.u32 2147483647, %v2588_v23  ;;  %v858_v15 = vmul.f32 %v2584_v5, %v857_v16  ;;  %vm860_vm1 = vcmp.lt.f32.partialorder %v859_v4, 0.0004427343 }
 0x247   :  { %2601 = vpow2.f32 %v827_v10  ;;  %v829_v19 = vmul.f32 1.442695, %v816_v63  ;;  %v848_v41 = vadd.f32 1.0, %v847_v24  ;;  %v840_v35 = vmul.f32 %v2586_v42, %v839_v52 }
 0x248   :  { %2603 = vpow2.f32 %v833_v12  ;;  %v850_v33 = vand.u32 2147483647, %v2590_v54  ;;  %vm3391_vm2 = vcmp.lt.f32.partialorder %v841_v21, 0.0004427343  ;;  %v867_v14 = vmul.f32 %v2588_v23, %v866_v22 }
 0x249   :  { %2605 = vpow2.f32 %v829_v19  ;;  %vm869_vm3 = vcmp.lt.f32.partialorder %v868_v3, 0.0004427343  ;;  %v780_v49 = vmax.f32 %v3371_v50, 0.0  ;;  %v849_v32 = vmul.f32 %v2590_v54, %v848_v41 }
 0x24a   :  { %vm851_vm4 = vcmp.lt.f32.partialorder %v850_v33, 0.0004427343  ;;  %vm792_vm15 = vcmp.ne.f32.partialorder %v3384_v2, %v3384_v2 }
 0x24c   :  { %v2592_v46 = vpop.eup %2591 }
 0x24d   :  { %v2594_v7 = vpop.eup %2593  ;;  %v855_v30 = vmul.f32 0.6931472, %v2592_v46 }
 0x24e   :  { %v2596_v31 = vpop.eup %2595  ;;  %v837_v51 = vmul.f32 0.6931472, %v2594_v7 }
 0x24f   :  { %v861_v36 = vsel %vm860_vm1, %v858_v15, %v855_v30  ;;  %v864_v55 = vmul.f32 0.6931472, %v2596_v31  ;;  %v2598_v37 = vpop.eup %2597 }
 0x250   :  { %v909_v18 = vadd.f32 %v861_v36, %v781_v20  ;;  %v843_v53 = vsel %vm3391_vm2, %v840_v35, %v837_v51  ;;  %v2600_v48 = vpop.eup %2599  ;;  %v846_v42 = vmul.f32 0.6931472, %v2598_v37  ;;  %v783_v37 = vmax.f32 %v3377_v6, 0.0 }
 0x251   :  { %v870_v5 = vsel %vm869_vm3, %v867_v14, %v864_v55  ;;  %v2602_v38 = vpop.eup %2601  ;;  %v889_v47 = vadd.f32 1.0, %v2600_v48  ;;  %v907_v0 = vadd.f32 %v843_v53, %v779_v62  ;;  %v892_v12 = vmul.f32 -0.5, %v2600_v48 }
 0x252   :  { %v917_v23 = vsel %vm789_vm0, %v3363_v25, %v909_v18  ;;  %v910_v58 = vadd.f32 %v870_v5, %v782_v44  ;;  %v852_v59 = vsel %vm851_vm4, %v849_v32, %v846_v42  ;;  %v871_v1 = vadd.f32 1.0, %v2602_v38  ;;  %v2604_v9 = vpop.eup %2603 }
 0x253   :  { %v908_v10 = vadd.f32 %v852_v59, %v780_v49  ;;  %2607 = vlog2.f32 %v889_v47  ;;  %v2088_v54 = vadd.f32 -0.6931472, %v917_v23  ;;  %v898_v56 = vadd.f32 1.0, %v2604_v9  ;;  %v2606_v16 = vpop.eup %2605 }
 0x254   :  { %v918_v28 = vsel %vm790_vm5, %v3368_v29, %v910_v58  ;;  %2609 = vlog2.f32 %v871_v1  ;;  %v915_v40 = vsel %vm787_vm6, %v3365_v27, %v907_v0  ;;  %v874_v4 = vmul.f32 -0.5, %v2602_v38 }
 0x255   :  { %v2089_v60 = vadd.f32 -0.6931472, %v918_v28  ;;  %2611 = vlog2.f32 %v898_v56  ;;  %v916_v29 = vsel %vm788_vm7, %v3371_v50, %v908_v10  ;;  %v880_v24 = vadd.f32 1.0, %v2606_v16 }
 0x256   :  { %v2086_v52 = vadd.f32 -0.6931472, %v915_v40  ;;  %v2087_v63 = vadd.f32 -0.6931472, %v916_v29  ;;  %v893_v20 = vadd.f32 1.0, %v892_v12  ;;  %v901_v21 = vmul.f32 -0.5, %v2604_v9 }
 0x257   :  { %v932_v25 = vpack.c.bf16 %v2089_v60, %v2088_v54  ;;  %2613 = vlog2.f32 %v880_v24  ;;  %v895_v22 = vand.u32 2147483647, %v2600_v48  ;;  %v875_v46 = vadd.f32 1.0, %v874_v4  ;;  %v2466_v12 = vld [vmem:[%s3815_s2 + $0xd8] sm:$0xff]   ;;  %v2467_v40 = vld [vmem:[%s3815_s2 + $0xe0] sm:$0xff]   ;;  %v2469_v4 = vld [vmem:[%s3815_s2 + $0xf0] sm:$0xff]  }
 0x258   :  { %v931_v62 = vpack.c.bf16 %v2087_v63, %v2086_v52  ;;  %v877_v3 = vand.u32 2147483647, %v2602_v38  ;;  %v883_v7 = vmul.f32 -0.5, %v2606_v16  ;;  %v785_v27 = vmax.f32 %v3375_v17, 0.0  ;;  %v2470_v29 = vld [vmem:[%s3815_s2 + $0xf8] sm:$0xff]  }
 0x259   :  { %v894_v41 = vmul.f32 %v2600_v48, %v893_v20  ;;  %v902_v31 = vadd.f32 1.0, %v901_v21  ;;  %vm896_vm8 = vcmp.lt.f32.partialorder %v895_v22, 0.0004427343  ;;  %v876_v51 = vmul.f32 %v2602_v38, %v875_v46  ;;  %v2110_v24 = vld [vmem:[%s3816_s3 + $0x2] ss:$0 sm:$0xff] }
 0x25a   :  { %2355 = vmatprep.mubr.bf16.mxu0 %v931_v62  ;;  %v904_v35 = vand.u32 2147483647, %v2604_v9  ;;  %vm878_vm9 = vcmp.lt.f32.partialorder %v877_v3, 0.0004427343  ;;  %v884_v14 = vadd.f32 1.0, %v883_v7  ;;  %v786_v5 = vmax.f32 %v3381_v13, 0.0 }
 0x25b   :  { %2356 = vmatmul.mubr.bf16.vlgmr.msra.gmra.mrb[8].mxu0 %v932_v25  ;;  %v903_v53 = vmul.f32 %v2604_v9, %v902_v31  ;;  %v886_v44 = vand.u32 2147483647, %v2606_v16  ;;  %v784_v47 = vmax.f32 %v3384_v2, 0.0 }
 0x25c   :  { %vm905_vm10 = vcmp.lt.f32.partialorder %v904_v35, 0.0004427343  ;;  %v885_v23 = vmul.f32 %v2606_v16, %v884_v14  ;;  %v2468_v16 = vld [vmem:[%s3815_s2 + $0xe8] sm:$0xff]  }
 0x25d   :  { %v2608_v19 = vpop.eup %2607  ;;  %vm887_vm12 = vcmp.lt.f32.partialorder %v886_v44, 0.0004427343 }
 0x25e   :  { %v2610_v30 = vpop.eup %2609  ;;  %v891_v15 = vmul.f32 0.6931472, %v2608_v19 }
 0x25f   :  { %v873_v50 = vmul.f32 0.6931472, %v2610_v30  ;;  %v2612_v36 = vpop.eup %2611 }
 0x260   :  { %v897_v33 = vsel %vm896_vm8, %v894_v41, %v891_v15  ;;  %v900_v18 = vmul.f32 0.6931472, %v2612_v36 }
 0x261   :  { %v913_v39 = vadd.f32 %v897_v33, %v785_v27  ;;  %v879_v55 = vsel %vm878_vm9, %v876_v51, %v873_v50  ;;  %v2614_v48 = vpop.eup %2613 }
 0x262   :  { %v911_v49 = vadd.f32 %v879_v55, %v783_v37  ;;  %v906_v42 = vsel %vm905_vm10, %v903_v53, %v900_v18  ;;  %v882_v38 = vmul.f32 0.6931472, %v2614_v48 }
 0x263   :  { %v914_v32 = vadd.f32 %v906_v42, %v786_v5  ;;  %v921_v58 = vsel %vm793_vm11, %v3375_v17, %v913_v39 }
 0x264   :  { %v888_v0 = vsel %vm887_vm12, %v885_v23, %v882_v38  ;;  %v919_v9 = vsel %vm791_vm14, %v3377_v6, %v911_v49  ;;  %v2092_v28 = vadd.f32 -0.6931472, %v921_v58  ;;  %v2464_v6 = vld [vmem:[%s3815_s2 + $0xc8] sm:$0xff]  }
 0x265   :  { %v922_v59 = vsel %vm794_vm13, %v3381_v13, %v914_v32  ;;  %v912_v1 = vadd.f32 %v888_v0, %v784_v47  ;;  %v2090_v60 = vadd.f32 -0.6931472, %v919_v9  ;;  %v2463_v13 = vld [vmem:[%s3815_s2 + $0xc0] sm:$0xff]  }
 0x266   :  { %v2093_v10 = vadd.f32 -0.6931472, %v922_v59  ;;  %2363 = vmatprep.subr.bf16.mxu1 %v2463_v13 }
 0x267   :  { %v920_v17 = vsel %vm792_vm15, %v3384_v2, %v912_v1  ;;  %2364 = vmatpush3.bf16.msra.mxu1 %v2463_v13  ;;  %v2465_v2 = vld [vmem:[%s3815_s2 + $0xd0] sm:$0xff]  }
 0x268   :  { %v934_v54 = vpack.c.bf16 %v2093_v10, %v2092_v28  ;;  %v2091_v56 = vadd.f32 -0.6931472, %v920_v17  ;;  %2365 = vmatprep.subr.bf16.mxu1 %v2464_v6 }
 0x26a   :  { %v933_v25 = vpack.c.bf16 %v2091_v56, %v2090_v60 }
 0x26b   :  { %2366 = vmatpush3.bf16.msra.mxu1 %v2464_v6 }
 0x26c   :  { %2359 = vmatprep.mubr.bf16.mxu0 %v933_v25  ;;  %2367 = vmatprep.subr.bf16.mxu1 %v2465_v2 }
 0x26d   :  { %2360 = vmatmul.mubr.bf16.gmra.mrb[12].mxu0 %v934_v54 }
 0x26f   :  { %2368 = vmatpush3.bf16.msra.mxu1 %v2465_v2 }
 0x270   :  { %2369 = vmatprep.subr.bf16.mxu1 %v2466_v12 }
 0x273   :  { %2370 = vmatpush3.bf16.msra.mxu1 %v2466_v12 }
 0x274   :  { %2371 = vmatprep.subr.bf16.mxu1 %v2467_v40 }
 0x277   :  { %2372 = vmatpush3.bf16.msra.mxu1 %v2467_v40 }
 0x278   :  { %2373 = vmatprep.subr.bf16.mxu1 %v2468_v16 }
 0x27b   :  { %2374 = vmatpush3.bf16.msra.mxu1 %v2468_v16 }
 0x27c   :  { %2375 = vmatprep.subr.bf16.mxu1 %v2469_v4 }
 0x27f   :  { %2376 = vmatpush3.bf16.msra.mxu1 %v2469_v4 }
 0x280   :  { %2377 = vmatprep.subr.bf16.mxu1 %v2470_v29 }
 0x283   :  { %2378 = vmatpush3.bf16.msra.mxu1 %v2470_v29 }
 0x32e   :  { %v2357_v52 = vpop.f32.mrb[8].mxu0 }
 0x32f   :  { %v1048_v63 = vadd.f32 %v2357_v52, %v2110_v24  ;;  %v1039_v20 = vpop.f32.mrb[9].mxu0 }
 0x330   :  { %v1040_v21 = vadd.f32 %v2110_v24, %v1039_v20  ;;  %v2358_v22 = vpop.f32.mrb[10].mxu0 }
 0x331   :  { %v3456_v46 = vadd.f32 %v1048_v63, %v3154_v8  ;;  %v1051_v62 = vadd.f32 %v2358_v22, %v2110_v24  ;;  %v1042_v3 = vpop.f32.mrb[11].mxu0 }
 0x332   :  { %v3459_v19 = vadd.f32 %v1040_v21, %v3156_v11  ;;  %v1043_v7 = vadd.f32 %v2110_v24, %v1042_v3 }
 0x333   :  { %v1104_v30 = vand.u32 2147483647, %v3456_v46  ;;  %v3463_v27 = vadd.f32 %v1051_v62, %v3170_v43  ;;  %vm1088_vm3 = vcmp.ne.f32.partialorder %v3456_v46, %v3456_v46 }
 0x334   :  { %v1102_v15 = vand.u32 2147483647, %v3459_v19  ;;  %v3467_v41 = vadd.f32 %v1043_v7, %v3182_v26  ;;  %vm1086_vm6 = vcmp.ne.f32.partialorder %v3459_v19, %v3459_v19 }
 0x335   :  { %v1112_v31 = vsub.f32 0.0, %v1104_v30  ;;  %v1105_v8 = vand.u32 2147483647, %v3463_v27  ;;  %v1081_v30 = vmax.f32 %v3463_v27, 0.0  ;;  %vm1089_vm4 = vcmp.ne.f32.partialorder %v3463_v27, %v3463_v27 }
 0x336   :  { %v1110_v50 = vsub.f32 0.0, %v1102_v15  ;;  %v1103_v51 = vand.u32 2147483647, %v3467_v41  ;;  %vm1087_vm7 = vcmp.ne.f32.partialorder %v3467_v41, %v3467_v41 }
 0x337   :  { %v1122_v35 = vmul.f32 1.442695, %v1112_v31  ;;  %v1113_v11 = vsub.f32 0.0, %v1105_v8 }
 0x338   :  { %v1118_v33 = vmul.f32 1.442695, %v1110_v50  ;;  %v1111_v36 = vsub.f32 0.0, %v1103_v51 }
 0x339   :  { %2615 = vpow2.f32 %v1122_v35  ;;  %v1124_v39 = vmul.f32 1.442695, %v1113_v11 }
 0x33a   :  { %2617 = vpow2.f32 %v1118_v33  ;;  %v1120_v43 = vmul.f32 1.442695, %v1111_v36 }
 0x33b   :  { %2619 = vpow2.f32 %v1124_v39 }
 0x33c   :  { %2621 = vpow2.f32 %v1120_v43 }
 0x340   :  { %v2361_v55 = vpop.f32.mrb[12].mxu0 }
 0x341   :  { %v1064_v14 = vadd.f32 %v2361_v55, %v2110_v24  ;;  %v1055_v26 = vpop.f32.mrb[13].mxu0  ;;  %v1078_v55 = vmax.f32 %v3459_v19, 0.0 }
 0x342   :  { %v1056_v37 = vadd.f32 %v2110_v24, %v1055_v26  ;;  %v2362_v18 = vpop.f32.mrb[14].mxu0 }
 0x343   :  { %v2616_v53 = vpop.eup %2615  ;;  %v3472_v44 = vadd.f32 %v1064_v14, %v3210_v34  ;;  %v1067_v5 = vadd.f32 %v2362_v18, %v2110_v24  ;;  %v1058_v48 = vpop.f32.mrb[15].mxu0 }
 0x344   :  { %v2618_v49 = vpop.eup %2617  ;;  %v1152_v42 = vadd.f32 1.0, %v2616_v53  ;;  %v3475_v32 = vadd.f32 %v1056_v37, %v3212_v45  ;;  %v1059_v47 = vadd.f32 %v2110_v24, %v1058_v48  ;;  %v1155_v6 = vmul.f32 -0.5, %v2616_v53 }
 0x345   :  { %v2620_v38 = vpop.eup %2619  ;;  %v1108_v23 = vand.u32 2147483647, %v3472_v44  ;;  %v3479_v58 = vadd.f32 %v1067_v5, %v3228_v57  ;;  %v1134_v59 = vadd.f32 1.0, %v2618_v49  ;;  %v1137_v12 = vmul.f32 -0.5, %v2618_v49 }
 0x346   :  { %2623 = vlog2.f32 %v1152_v42  ;;  %v1161_v0 = vadd.f32 1.0, %v2620_v38  ;;  %v1106_v34 = vand.u32 2147483647, %v3475_v32  ;;  %v3484_v28 = vadd.f32 %v1059_v47, %v3240_v61  ;;  %v3486_v45 = vpop.eup %2621 }
 0x347   :  { %v1116_v1 = vsub.f32 0.0, %v1108_v23  ;;  %v1109_v9 = vand.u32 2147483647, %v3479_v58  ;;  %v1164_v60 = vmul.f32 -0.5, %v2620_v38  ;;  %v1143_v13 = vadd.f32 1.0, %v3486_v45 }
 0x348   :  { %2625 = vlog2.f32 %v1161_v0  ;;  %v1114_v17 = vsub.f32 0.0, %v1106_v34  ;;  %v1107_v57 = vand.u32 2147483647, %v3484_v28  ;;  %v1167_v4 = vand.u32 2147483647, %v2620_v38 }
 0x349   :  { %v1130_v10 = vmul.f32 1.442695, %v1116_v1  ;;  %v1117_v54 = vsub.f32 0.0, %v1109_v9  ;;  %2627 = vlog2.f32 %v1134_v59  ;;  %v1165_v40 = vadd.f32 1.0, %v1164_v60 }
 0x34a   :  { %v1126_v56 = vmul.f32 1.442695, %v1114_v17  ;;  %v1115_v25 = vsub.f32 0.0, %v1107_v57  ;;  %v1156_v29 = vadd.f32 1.0, %v1155_v6  ;;  %v1138_v24 = vadd.f32 1.0, %v1137_v12 }
 0x34b   :  { %2629 = vpow2.f32 %v1130_v10  ;;  %v1132_v2 = vmul.f32 1.442695, %v1117_v54  ;;  %v1158_v63 = vand.u32 2147483647, %v2616_v53  ;;  %v1140_v20 = vand.u32 2147483647, %v2618_v49 }
 0x34c   :  { %2631 = vpow2.f32 %v1126_v56  ;;  %v1128_v61 = vmul.f32 1.442695, %v1115_v25  ;;  %v1146_v21 = vmul.f32 -0.5, %v3486_v45  ;;  %v1166_v3 = vmul.f32 %v2620_v38, %v1165_v40 }
 0x34d   :  { %2633 = vlog2.f32 %v1143_v13  ;;  %vm3492_vm0 = vcmp.lt.f32.partialorder %v1167_v4, 0.0004427343  ;;  %v1157_v8 = vmul.f32 %v2616_v53, %v1156_v29  ;;  %v1139_v35 = vmul.f32 %v2618_v49, %v1138_v24 }
 0x34e   :  { %2635 = vpow2.f32 %v1128_v61  ;;  %vm3500_vm1 = vcmp.lt.f32.partialorder %v1158_v63, 0.0004427343  ;;  %vm1141_vm2 = vcmp.lt.f32.partialorder %v1140_v20, 0.0004427343  ;;  %v1147_v33 = vadd.f32 1.0, %v1146_v21 }
 0x34f   :  { %2637 = vpow2.f32 %v1132_v2  ;;  %v1149_v26 = vand.u32 2147483647, %v3486_v45  ;;  %v1080_v37 = vmax.f32 %v3456_v46, 0.0  ;;  %v1079_v0 = vmax.f32 %v3467_v41, 0.0 }
 0x350   :  { %v2624_v16 = vpop.eup %2623  ;;  %v1148_v23 = vmul.f32 %v3486_v45, %v1147_v33  ;;  %vm1090_vm11 = vcmp.ne.f32.partialorder %v3475_v32, %v3475_v32  ;;  %vm1091_vm12 = vcmp.ne.f32.partialorder %v3484_v28, %v3484_v28  ;;  %vm1092_vm14 = vcmp.ne.f32.partialorder %v3472_v44, %v3472_v44 }
 0x351   :  { %v1154_v22 = vmul.f32 0.6931472, %v2624_v16  ;;  %vm1150_vm5 = vcmp.lt.f32.partialorder %v1149_v26, 0.0004427343  ;;  %vm1093_vm15 = vcmp.ne.f32.partialorder %v3479_v58, %v3479_v58 }
 0x352   :  { %v2626_v52 = vpop.eup %2625 }
 0x353   :  { %v1163_v62 = vmul.f32 0.6931472, %v2626_v52  ;;  %v2628_v7 = vpop.eup %2627  ;;  %v1160_v43 = vsel %vm3500_vm1, %v1157_v8, %v1154_v22 }
 0x354   :  { %v1136_v51 = vmul.f32 0.6931472, %v2628_v7  ;;  %v1208_v42 = vadd.f32 %v1160_v43, %v1080_v37 }
 0x355   :  { %v3496_v31 = vpop.eup %2629  ;;  %v1169_v50 = vsel %vm3492_vm0, %v1166_v3, %v1163_v62 }
 0x356   :  { %v1188_v36 = vadd.f32 1.0, %v3496_v31  ;;  %v2632_v39 = vpop.eup %2631  ;;  %v1142_v14 = vsel %vm1141_vm2, %v1139_v35, %v1136_v51  ;;  %v1209_v18 = vadd.f32 %v1169_v50, %v1081_v30  ;;  %v1191_v9 = vmul.f32 -0.5, %v3496_v31 }
 0x357   :  { %v1170_v53 = vadd.f32 1.0, %v2632_v39  ;;  %v2634_v5 = vpop.eup %2633  ;;  %v1206_v48 = vadd.f32 %v1142_v14, %v1078_v55  ;;  %v1173_v17 = vmul.f32 -0.5, %v2632_v39  ;;  %v1216_v54 = vsel %vm1088_vm3, %v3456_v46, %v1208_v42 }
 0x358   :  { %2639 = vlog2.f32 %v1188_v36  ;;  %v2636_v49 = vpop.eup %2635  ;;  %v1145_v38 = vmul.f32 0.6931472, %v2634_v5  ;;  %v1217_v34 = vsel %vm1089_vm4, %v3463_v27, %v1209_v18  ;;  %v2121_v2 = vadd.f32 -0.6931472, %v1216_v54  ;;  %v2474_v54 = vld [vmem:[%s3815_s2 + $0x118] sm:$0xff]  }
 0x359   :  { %2641 = vlog2.f32 %v1170_v53  ;;  %v3513_v47 = vpop.eup %2637  ;;  %v1179_v59 = vadd.f32 1.0, %v2636_v49  ;;  %v1214_v45 = vsel %vm1086_vm6, %v3459_v19, %v1206_v48  ;;  %v2122_v56 = vadd.f32 -0.6931472, %v1217_v34 }
 0x35a   :  { %v1151_v1 = vsel %vm1150_vm5, %v1148_v23, %v1145_v38  ;;  %v1197_v57 = vadd.f32 1.0, %v3513_v47  ;;  %v2119_v25 = vadd.f32 -0.6931472, %v1214_v45  ;;  %v1182_v6 = vmul.f32 -0.5, %v2636_v49  ;;  %v2472_v45 = vld [vmem:[%s3815_s2 + $0x108] sm:$0xff]  }
 0x35b   :  { %v1207_v10 = vadd.f32 %v1151_v1, %v1079_v0  ;;  %2643 = vlog2.f32 %v1179_v59  ;;  %v1174_v12 = vadd.f32 1.0, %v1173_v17  ;;  %v1192_v61 = vadd.f32 1.0, %v1191_v9  ;;  %v2473_v17 = vld [vmem:[%s3815_s2 + $0x110] sm:$0xff]  }
 0x35c   :  { %2645 = vlog2.f32 %v1197_v57  ;;  %v1176_v16 = vand.u32 2147483647, %v2632_v39  ;;  %v1194_v4 = vand.u32 2147483647, %v3496_v31  ;;  %v1231_v24 = vpack.c.bf16 %v2122_v56, %v2121_v2  ;;  %v2475_v57 = vld [vmem:[%s3815_s2 + $0x120] sm:$0xff]   ;;  %v2477_v56 = vld [vmem:[%s3815_s2 + $0x130] sm:$0xff]  }
 0x35d   :  { %v1215_v60 = vsel %vm1087_vm7, %v3467_v41, %v1207_v10  ;;  %v1200_v52 = vmul.f32 -0.5, %v3513_v47  ;;  %v1183_v20 = vadd.f32 1.0, %v1182_v6  ;;  %v1175_v62 = vmul.f32 %v2632_v39, %v1174_v12  ;;  %v2471_v10 = vld [vmem:[%s3815_s2 + $0x100] sm:$0xff]  }
 0x35e   :  { %v2120_v13 = vadd.f32 -0.6931472, %v1215_v60  ;;  %v1185_v3 = vand.u32 2147483647, %v2636_v49  ;;  %v1193_v7 = vmul.f32 %v3496_v31, %v1192_v61  ;;  %v1082_v30 = vmax.f32 %v3475_v32, 0.0  ;;  %2387 = vmatprep.subr.bf16.mxu0 %v2471_v10  ;;  %v2476_v60 = vld [vmem:[%s3815_s2 + $0x128] sm:$0xff]  }
 0x35f   :  { %vm1177_vm8 = vcmp.lt.f32.partialorder %v1176_v16, 0.0004427343  ;;  %vm1195_vm9 = vcmp.lt.f32.partialorder %v1194_v4, 0.0004427343  ;;  %v1084_v50 = vmax.f32 %v3472_v44, 0.0  ;;  %v1201_v35 = vadd.f32 1.0, %v1200_v52  ;;  %2388 = vmatpush3.bf16.msra.mxu0 %v2471_v10 }
 0x360   :  { %v1230_v40 = vpack.c.bf16 %v2120_v13, %v2119_v25  ;;  %v1184_v33 = vmul.f32 %v2636_v49, %v1183_v20  ;;  %v1203_v43 = vand.u32 2147483647, %v3513_v47  ;;  %v1083_v39 = vmax.f32 %v3484_v28, 0.0  ;;  %2389 = vmatprep.subr.bf16.mxu0 %v2472_v45  ;;  %v2478_v25 = vld [vmem:[%s3815_s2 + $0x138] sm:$0xff]   ;;  %v2143_v13 = vld [vmem:[%s3816_s3 + $0x3] ss:$0 sm:$0xff] }
 0x361   :  { %vm1186_vm10 = vcmp.lt.f32.partialorder %v1185_v3, 0.0004427343  ;;  %v1202_v53 = vmul.f32 %v3513_v47, %v1201_v35  ;;  %v1085_v5 = vmax.f32 %v3479_v58, 0.0 }
 0x362   :  { %v2640_v29 = vpop.eup %2639  ;;  %2379 = vmatprep.mubr.bf16.mxu1 %v1230_v40  ;;  %vm1204_vm13 = vcmp.lt.f32.partialorder %v1203_v43, 0.0004427343 }
 0x363   :  { %v2642_v63 = vpop.eup %2641  ;;  %v1190_v21 = vmul.f32 0.6931472, %v2640_v29  ;;  %2380 = vmatmul.mubr.bf16.vlgmr.msra.gmra.mrb[8].mxu1 %v1231_v24  ;;  %2390 = vmatpush3.bf16.msra.mxu0 %v2472_v45 }
 0x364   :  { %v1172_v22 = vmul.f32 0.6931472, %v2642_v63  ;;  %2391 = vmatprep.subr.bf16.mxu0 %v2473_v17 }
 0x365   :  { %v2644_v15 = vpop.eup %2643  ;;  %v1196_v51 = vsel %vm1195_vm9, %v1193_v7, %v1190_v21 }
 0x366   :  { %v1178_v8 = vsel %vm1177_vm8, %v1175_v62, %v1172_v22  ;;  %v1181_v11 = vmul.f32 0.6931472, %v2644_v15  ;;  %v2646_v55 = vpop.eup %2645  ;;  %v1212_v14 = vadd.f32 %v1196_v51, %v1084_v50 }
 0x367   :  { %v1210_v36 = vadd.f32 %v1178_v8, %v1082_v30  ;;  %v1199_v18 = vmul.f32 0.6931472, %v2646_v55  ;;  %2392 = vmatpush3.bf16.msra.mxu0 %v2473_v17 }
 0x368   :  { %v1187_v31 = vsel %vm1186_vm10, %v1184_v33, %v1181_v11  ;;  %v1220_v0 = vsel %vm1092_vm14, %v3472_v44, %v1212_v14  ;;  %2393 = vmatprep.subr.bf16.mxu0 %v2474_v54 }
 0x369   :  { %v1211_v26 = vadd.f32 %v1187_v31, %v1083_v39  ;;  %v1218_v37 = vsel %vm1090_vm11, %v3475_v32, %v1210_v36  ;;  %v1205_v49 = vsel %vm1204_vm13, %v1202_v53, %v1199_v18  ;;  %v2125_v1 = vadd.f32 -0.6931472, %v1220_v0 }
 0x36a   :  { %v2123_v42 = vadd.f32 -0.6931472, %v1218_v37  ;;  %v1213_v23 = vadd.f32 %v1205_v49, %v1085_v5 }
 0x36b   :  { %v1219_v48 = vsel %vm1091_vm12, %v3484_v28, %v1211_v26  ;;  %2394 = vmatpush3.bf16.msra.mxu0 %v2474_v54 }
 0x36c   :  { %v2124_v38 = vadd.f32 -0.6931472, %v1219_v48  ;;  %v1221_v59 = vsel %vm1093_vm15, %v3479_v58, %v1213_v23  ;;  %2395 = vmatprep.subr.bf16.mxu0 %v2475_v57 }
 0x36d   :  { %v2126_v34 = vadd.f32 -0.6931472, %v1221_v59 }
 0x36e   :  { %v1232_v47 = vpack.c.bf16 %v2124_v38, %v2123_v42 }
 0x36f   :  { %v1233_v9 = vpack.c.bf16 %v2126_v34, %v2125_v1  ;;  %2396 = vmatpush3.bf16.msra.mxu0 %v2475_v57 }
 0x370   :  { %2383 = vmatprep.mubr.bf16.mxu1 %v1232_v47  ;;  %2397 = vmatprep.subr.bf16.mxu0 %v2476_v60 }
 0x371   :  { %2384 = vmatmul.mubr.bf16.gmra.mrb[12].mxu1 %v1233_v9 }
 0x373   :  { %2398 = vmatpush3.bf16.msra.mxu0 %v2476_v60 }
 0x374   :  { %2399 = vmatprep.subr.bf16.mxu0 %v2477_v56 }
 0x377   :  { %2400 = vmatpush3.bf16.msra.mxu0 %v2477_v56 }
 0x378   :  { %2401 = vmatprep.subr.bf16.mxu0 %v2478_v25 }
 0x37b   :  { %2402 = vmatpush3.bf16.msra.mxu0 %v2478_v25 }
 0x436   :  { %v2381_v6 = vpop.f32.mrb[8].mxu1 }
 0x437   :  { %v3579_v2 = vadd.f32 %v2381_v6, %v2143_v13  ;;  %v1338_v12 = vpop.f32.mrb[9].mxu1 }
 0x438   :  { %v3581_v61 = vadd.f32 %v2143_v13, %v1338_v12  ;;  %v2382_v40 = vpop.f32.mrb[10].mxu1 }
 0x439   :  { %v1395_v16 = vand.u32 2147483647, %v3579_v2  ;;  %v3584_v4 = vadd.f32 %v2382_v40, %v2143_v13  ;;  %v1341_v29 = vpop.f32.mrb[11].mxu1  ;;  %v1371_v0 = vmax.f32 %v3579_v2, 0.0  ;;  %vm1379_vm0 = vcmp.ne.f32.partialorder %v3579_v2, %v3579_v2 }
 0x43a   :  { %v1393_v24 = vand.u32 2147483647, %v3581_v61  ;;  %v3587_v52 = vadd.f32 %v2143_v13, %v1341_v29  ;;  %v1369_v54 = vmax.f32 %v3581_v61, 0.0  ;;  %vm1377_vm6 = vcmp.ne.f32.partialorder %v3581_v61, %v3581_v61 }
 0x43b   :  { %v1403_v63 = vsub.f32 0.0, %v1395_v16  ;;  %v1396_v20 = vand.u32 2147483647, %v3584_v4  ;;  %vm1380_vm5 = vcmp.ne.f32.partialorder %v3584_v4, %v3584_v4 }
 0x43c   :  { %v1401_v21 = vsub.f32 0.0, %v1393_v24  ;;  %v1394_v22 = vand.u32 2147483647, %v3587_v52  ;;  %vm1378_vm7 = vcmp.ne.f32.partialorder %v3587_v52, %v3587_v52 }
 0x43d   :  { %v1413_v62 = vmul.f32 1.442695, %v1403_v63  ;;  %v1404_v3 = vsub.f32 0.0, %v1396_v20 }
 0x43e   :  { %v1409_v7 = vmul.f32 1.442695, %v1401_v21  ;;  %v1402_v30 = vsub.f32 0.0, %v1394_v22 }
 0x43f   :  { %2647 = vpow2.f32 %v1413_v62  ;;  %v1415_v15 = vmul.f32 1.442695, %v1404_v3 }
 0x440   :  { %2649 = vpow2.f32 %v1409_v7  ;;  %v1411_v8 = vmul.f32 1.442695, %v1402_v30 }
 0x441   :  { %2651 = vpow2.f32 %v1415_v15 }
 0x442   :  { %2653 = vpow2.f32 %v1411_v8 }
 0x444   :  { %v2385_v50 = vpop.f32.mrb[12].mxu1 }
 0x445   :  { %v3591_v51 = vadd.f32 %v2385_v50, %v2143_v13  ;;  %v1354_v35 = vpop.f32.mrb[13].mxu1 }
 0x446   :  { %v2386_v11 = vpop.f32.mrb[14].mxu1  ;;  %v3596_v53 = vadd.f32 %v2143_v13, %v1354_v35 }
 0x447   :  { %v1399_v36 = vand.u32 2147483647, %v3591_v51  ;;  %v1357_v43 = vpop.f32.mrb[15].mxu1  ;;  %v3599_v48 = vadd.f32 %v2386_v11, %v2143_v13  ;;  %vm1383_vm11 = vcmp.ne.f32.partialorder %v3591_v51, %v3591_v51 }
 0x448   :  { %v1397_v23 = vand.u32 2147483647, %v3596_v53  ;;  %v3604_v9 = vadd.f32 %v2143_v13, %v1357_v43  ;;  %v1372_v13 = vmax.f32 %v3584_v4, 0.0  ;;  %vm1381_vm13 = vcmp.ne.f32.partialorder %v3596_v53, %v3596_v53 }
 0x449   :  { %v2648_v33 = vpop.eup %2647  ;;  %v1407_v18 = vsub.f32 0.0, %v1399_v36  ;;  %v1400_v34 = vand.u32 2147483647, %v3599_v48  ;;  %vm1384_vm14 = vcmp.ne.f32.partialorder %v3599_v48, %v3599_v48 }
 0x44a   :  { %v2650_v39 = vpop.eup %2649  ;;  %v1443_v55 = vadd.f32 1.0, %v2648_v33  ;;  %v1446_v49 = vmul.f32 -0.5, %v2648_v33  ;;  %v1449_v47 = vand.u32 2147483647, %v2648_v33  ;;  %v1405_v1 = vsub.f32 0.0, %v1397_v23 }
 0x44b   :  { %v2652_v31 = vpop.eup %2651  ;;  %v1425_v14 = vadd.f32 1.0, %v2650_v39  ;;  %v1428_v42 = vmul.f32 -0.5, %v2650_v39  ;;  %v1421_v38 = vmul.f32 1.442695, %v1407_v18  ;;  %v1408_v60 = vsub.f32 0.0, %v1400_v34 }
 0x44c   :  { %v3594_v26 = vpop.eup %2653  ;;  %2655 = vlog2.f32 %v1443_v55  ;;  %v1452_v37 = vadd.f32 1.0, %v2652_v31  ;;  %v1455_v59 = vmul.f32 -0.5, %v2652_v31  ;;  %v1447_v10 = vadd.f32 1.0, %v1446_v49 }
 0x44d   :  { %2657 = vlog2.f32 %v1425_v14  ;;  %v1434_v5 = vadd.f32 1.0, %v3594_v26  ;;  %v1429_v45 = vadd.f32 1.0, %v1428_v42  ;;  %v1437_v17 = vmul.f32 -0.5, %v3594_v26 }
 0x44e   :  { %2659 = vlog2.f32 %v1452_v37  ;;  %v1417_v57 = vmul.f32 1.442695, %v1405_v1  ;;  %v1398_v56 = vand.u32 2147483647, %v3604_v9  ;;  %vm3611_vm1 = vcmp.lt.f32.partialorder %v1449_v47, 0.0004427343 }
 0x44f   :  { %2661 = vlog2.f32 %v1434_v5  ;;  %v1431_v6 = vand.u32 2147483647, %v2650_v39  ;;  %v1456_v12 = vadd.f32 1.0, %v1455_v59  ;;  %v1458_v16 = vand.u32 2147483647, %v2652_v31 }
 0x450   :  { %2663 = vpow2.f32 %v1421_v38  ;;  %v1423_v29 = vmul.f32 1.442695, %v1408_v60  ;;  %v1406_v24 = vsub.f32 0.0, %v1398_v56  ;;  %v1448_v21 = vmul.f32 %v2648_v33, %v1447_v10 }
 0x451   :  { %2665 = vpow2.f32 %v1417_v57  ;;  %v1430_v22 = vmul.f32 %v2650_v39, %v1429_v45  ;;  %v1438_v62 = vadd.f32 1.0, %v1437_v17  ;;  %v1440_v30 = vand.u32 2147483647, %v3594_v26 }
 0x452   :  { %2667 = vpow2.f32 %v1423_v29  ;;  %v1419_v15 = vmul.f32 1.442695, %v1406_v24  ;;  %vm1432_vm2 = vcmp.lt.f32.partialorder %v1431_v6, 0.0004427343  ;;  %v1457_v35 = vmul.f32 %v2652_v31, %v1456_v12 }
 0x453   :  { %vm1459_vm3 = vcmp.lt.f32.partialorder %v1458_v16, 0.0004427343  ;;  %v1439_v14 = vmul.f32 %v3594_v26, %v1438_v62  ;;  %v1370_v49 = vmax.f32 %v3587_v52, 0.0  ;;  %vm1441_vm4 = vcmp.lt.f32.partialorder %v1440_v30, 0.0004427343 }
 0x454   :  { %2669 = vpow2.f32 %v1419_v15  ;;  %vm1382_vm15 = vcmp.ne.f32.partialorder %v3604_v9, %v3604_v9 }
 0x456   :  { %v2656_v40 = vpop.eup %2655 }
 0x457   :  { %v2658_v63 = vpop.eup %2657  ;;  %v1445_v20 = vmul.f32 0.6931472, %v2656_v40 }
 0x458   :  { %v2660_v3 = vpop.eup %2659  ;;  %v1427_v7 = vmul.f32 0.6931472, %v2658_v63 }
 0x459   :  { %v1451_v8 = vsel %vm3611_vm1, %v1448_v21, %v1445_v20  ;;  %v1454_v50 = vmul.f32 0.6931472, %v2660_v3  ;;  %v2662_v11 = vpop.eup %2661 }
 0x45a   :  { %v1499_v36 = vadd.f32 %v1451_v8, %v1371_v0  ;;  %v1433_v43 = vsel %vm1432_vm2, %v1430_v22, %v1427_v7  ;;  %v1436_v55 = vmul.f32 0.6931472, %v2662_v11  ;;  %v2664_v37 = vpop.eup %2663  ;;  %v1375_v22 = vmax.f32 %v3591_v51, 0.0 }
 0x45b   :  { %v1497_v33 = vadd.f32 %v1433_v43, %v1369_v54  ;;  %v1460_v39 = vsel %vm1459_vm3, %v1457_v35, %v1454_v50  ;;  %v1479_v42 = vadd.f32 1.0, %v2664_v37  ;;  %v2666_v47 = vpop.eup %2665  ;;  %v1482_v45 = vmul.f32 -0.5, %v2664_v37 }
 0x45c   :  { %v1507_v18 = vsel %vm1379_vm0, %v3579_v2, %v1499_v36  ;;  %v1500_v5 = vadd.f32 %v1460_v39, %v1372_v13  ;;  %v1442_v31 = vsel %vm1441_vm4, %v1439_v14, %v1436_v55  ;;  %v1461_v34 = vadd.f32 1.0, %v2666_v47  ;;  %v2668_v10 = vpop.eup %2667 }
 0x45d   :  { %v1498_v23 = vadd.f32 %v1442_v31, %v1370_v49  ;;  %v2154_v26 = vadd.f32 -0.6931472, %v1507_v18  ;;  %2671 = vlog2.f32 %v1479_v42  ;;  %v1505_v0 = vsel %vm1377_vm6, %v3581_v61, %v1497_v33 }
 0x45e   :  { %v1508_v38 = vsel %vm1380_vm5, %v3584_v4, %v1500_v5  ;;  %v2152_v4 = vadd.f32 -0.6931472, %v1505_v0  ;;  %2673 = vlog2.f32 %v1461_v34  ;;  %v1488_v54 = vadd.f32 1.0, %v2668_v10  ;;  %v2670_v57 = vpop.eup %2669 }
 0x45f   :  { %v2155_v2 = vadd.f32 -0.6931472, %v1508_v38  ;;  %v1506_v59 = vsel %vm1378_vm7, %v3587_v52, %v1498_v23  ;;  %v1470_v56 = vadd.f32 1.0, %v2670_v57  ;;  %v1483_v25 = vadd.f32 1.0, %v1482_v45  ;;  %v2483_v45 = vld [vmem:[%s3815_s2 + $0x160] sm:$0xff]  }
 0x460   :  { %v2153_v17 = vadd.f32 -0.6931472, %v1506_v59  ;;  %2675 = vlog2.f32 %v1488_v54  ;;  %v1464_v6 = vmul.f32 -0.5, %v2666_v47  ;;  %v1485_v13 = vand.u32 2147483647, %v2664_v37  ;;  %v2486_v54 = vld [vmem:[%s3815_s2 + $0x178] sm:$0xff]  }
 0x461   :  { %v1522_v1 = vpack.c.bf16 %v2155_v2, %v2154_v26  ;;  %2677 = vlog2.f32 %v1470_v56  ;;  %v1491_v61 = vmul.f32 -0.5, %v2668_v10  ;;  %v1484_v40 = vmul.f32 %v2664_v37, %v1483_v25 }
 0x462   :  { %v1521_v60 = vpack.c.bf16 %v2153_v17, %v2152_v4  ;;  %v1465_v16 = vadd.f32 1.0, %v1464_v6  ;;  %v1473_v29 = vmul.f32 -0.5, %v2670_v57  ;;  %vm1486_vm8 = vcmp.lt.f32.partialorder %v1485_v13, 0.0004427343  ;;  %v2484_v4 = vld [vmem:[%s3815_s2 + $0x168] sm:$0xff]   ;;  %v2485_v17 = vld [vmem:[%s3815_s2 + $0x170] sm:$0xff]  }
 0x463   :  { %v1467_v24 = vand.u32 2147483647, %v2666_v47  ;;  %v1492_v20 = vadd.f32 1.0, %v1491_v61  ;;  %v1494_v62 = vand.u32 2147483647, %v2668_v10  ;;  %v1373_v50 = vmax.f32 %v3596_v53, 0.0 }
 0x464   :  { %2403 = vmatprep.mubr.bf16.mxu0 %v1521_v60  ;;  %v1466_v7 = vmul.f32 %v2666_v47, %v1465_v16  ;;  %v1474_v30 = vadd.f32 1.0, %v1473_v29  ;;  %v1476_v35 = vand.u32 2147483647, %v2670_v57  ;;  %v1376_v55 = vmax.f32 %v3599_v48, 0.0 }
 0x465   :  { %2404 = vmatmul.mubr.bf16.vlgmr.msra.gmra.mrb[16].mxu0 %v1522_v1  ;;  %vm1468_vm9 = vcmp.lt.f32.partialorder %v1467_v24, 0.0004427343  ;;  %v1493_v43 = vmul.f32 %v2668_v10, %v1492_v20  ;;  %vm1495_vm10 = vcmp.lt.f32.partialorder %v1494_v62, 0.0004427343  ;;  %v1374_v49 = vmax.f32 %v3604_v9, 0.0  ;;  %v2479_v10 = vld [vmem:[%s3815_s2 + $0x140] sm:$0xff]  }
 0x466   :  { %v1475_v18 = vmul.f32 %v2670_v57, %v1474_v30  ;;  %vm1477_vm12 = vcmp.lt.f32.partialorder %v1476_v35, 0.0004427343  ;;  %2411 = vmatprep.subr.bf16.mxu1 %v2479_v10  ;;  %v2176_v57 = vld [vmem:[%s3816_s3 + $0x4] ss:$0 sm:$0xff] }
 0x467   :  { %v2672_v52 = vpop.eup %2671  ;;  %2412 = vmatpush3.bf16.msra.mxu1 %v2479_v10 }
 0x468   :  { %v1481_v12 = vmul.f32 0.6931472, %v2672_v52  ;;  %v2674_v21 = vpop.eup %2673 }
 0x469   :  { %v1463_v3 = vmul.f32 0.6931472, %v2674_v21 }
 0x46a   :  { %v1487_v63 = vsel %vm1486_vm8, %v1484_v40, %v1481_v12  ;;  %v2676_v15 = vpop.eup %2675 }
 0x46b   :  { %v1503_v8 = vadd.f32 %v1487_v63, %v1375_v22  ;;  %v1469_v11 = vsel %vm1468_vm9, %v1466_v7, %v1463_v3  ;;  %v1490_v36 = vmul.f32 0.6931472, %v2676_v15  ;;  %v2678_v33 = vpop.eup %2677 }
 0x46c   :  { %v1501_v39 = vadd.f32 %v1469_v11, %v1373_v50  ;;  %v1472_v37 = vmul.f32 0.6931472, %v2678_v33 }
 0x46d   :  { %v1496_v14 = vsel %vm1495_vm10, %v1493_v43, %v1490_v36  ;;  %v1511_v31 = vsel %vm1383_vm11, %v3591_v51, %v1503_v8 }
 0x46e   :  { %v1504_v5 = vadd.f32 %v1496_v14, %v1376_v55  ;;  %v1478_v42 = vsel %vm1477_vm12, %v1475_v18, %v1472_v37  ;;  %v1509_v23 = vsel %vm1381_vm13, %v3596_v53, %v1501_v39  ;;  %v2158_v2 = vadd.f32 -0.6931472, %v1511_v31  ;;  %v2480_v53 = vld [vmem:[%s3815_s2 + $0x148] sm:$0xff]  }
 0x46f   :  { %v1502_v38 = vadd.f32 %v1478_v42, %v1374_v49  ;;  %v2156_v51 = vadd.f32 -0.6931472, %v1509_v23  ;;  %2413 = vmatprep.subr.bf16.mxu1 %v2480_v53 }
 0x470   :  { %v1512_v26 = vsel %vm1384_vm14, %v3599_v48, %v1504_v5  ;;  %2414 = vmatpush3.bf16.msra.mxu1 %v2480_v53  ;;  %v2481_v48 = vld [vmem:[%s3815_s2 + $0x150] sm:$0xff]  }
 0x471   :  { %v2159_v0 = vadd.f32 -0.6931472, %v1512_v26  ;;  %v1510_v47 = vsel %vm1382_vm15, %v3604_v9, %v1502_v38  ;;  %2415 = vmatprep.subr.bf16.mxu1 %v2481_v48  ;;  %v2482_v9 = vld [vmem:[%s3815_s2 + $0x158] sm:$0xff]   ;;  %s2767_s2 = smov [#allocation4]  }
 0x472   :  { %v2157_v59 = vadd.f32 -0.6931472, %v1510_v47  ;;  %s2013_s28 = sshll.u32 %s2767_s2, 4  ;;  %s2014_s28 = int_to_ptr.vmem [resolvable:$true] %s2013_s28 }
 0x473   :  { %v1524_v1 = vpack.c.bf16 %v2159_v0, %v2158_v2  ;;  %s2719_s29 = scalar_lea.vmem %s2014_s28, 1024  ;;  %p2724_p1 = scmp.lt.s32.totalorder %s2014_s28, %s2014_s28 }
 0x474   :  { %v1523_v34 = vpack.c.bf16 %v2157_v59, %v2156_v51  ;;  %2416 = vmatpush3.bf16.msra.mxu1 %v2481_v48  ;;  %p2720_p0 = scmp.ne.s32.totalorder %s2014_s28, %s2719_s29  ;;  %p2725_p2 = scmp.lt.s32.totalorder %s2719_s29, %s2719_s29 }
 0x475   :  { %2417 = vmatprep.subr.bf16.mxu1 %v2482_v9 }
 0x476   :  { %2407 = vmatprep.mubr.bf16.mxu0 %v1523_v34  ;;  %p2726_p3 = por %p2725_p2, %p2724_p1 }
 0x477   :  { %2408 = vmatmul.mubr.bf16.gmra.mrb[20].mxu0 %v1524_v1 }
 0x478   :  { %2418 = vmatpush3.bf16.msra.mxu1 %v2482_v9  ;;  %p2727_p4 = pnand %p2726_p3, %p2720_p0 }
 0x479   :  { %2419 = vmatprep.subr.bf16.mxu1 %v2483_v45 }
 0x47c   :  { %2420 = vmatpush3.bf16.msra.mxu1 %v2483_v45 }
 0x47d   :  { %2421 = vmatprep.subr.bf16.mxu1 %v2484_v4 }
 0x480   :  { %2422 = vmatpush3.bf16.msra.mxu1 %v2484_v4 }
 0x481   :  { %2423 = vmatprep.subr.bf16.mxu1 %v2485_v17 }
 0x484   :  { %2424 = vmatpush3.bf16.msra.mxu1 %v2485_v17 }
 0x485   :  { %2425 = vmatprep.subr.bf16.mxu1 %v2486_v54 }
 0x488   :  { %2426 = vmatpush3.bf16.msra.mxu1 %v2486_v54 }
 0x538   :  { %v2405_v60 = vpop.f32.mrb[16].mxu0 }
 0x539   :  { %v1638_v56 = vadd.f32 %v2405_v60, %v2176_v57  ;;  %v1629_v25 = vpop.f32.mrb[17].mxu0 }
 0x53a   :  { %v1630_v6 = vadd.f32 %v2176_v57, %v1629_v25  ;;  %v2406_v13 = vpop.f32.mrb[18].mxu0 }
 0x53b   :  { %v3678_v61 = vadd.f32 %v1638_v56, %v3456_v46  ;;  %v1641_v52 = vadd.f32 %v2406_v13, %v2176_v57  ;;  %v1632_v12 = vpop.f32.mrb[19].mxu0 }
 0x53c   :  { %v3681_v40 = vadd.f32 %v1630_v6, %v3459_v19  ;;  %v1633_v16 = vadd.f32 %v2176_v57, %v1632_v12 }
 0x53d   :  { %v1694_v29 = vand.u32 2147483647, %v3678_v61  ;;  %v3685_v24 = vadd.f32 %v1641_v52, %v3463_v27  ;;  %v1670_v9 = vmax.f32 %v3678_v61, 0.0  ;;  %vm1678_vm2 = vcmp.ne.f32.partialorder %v3678_v61, %v3678_v61 }
 0x53e   :  { %v1692_v63 = vand.u32 2147483647, %v3681_v40  ;;  %v3689_v20 = vadd.f32 %v1633_v16, %v3467_v41  ;;  %vm1676_vm6 = vcmp.ne.f32.partialorder %v3681_v40, %v3681_v40 }
 0x53f   :  { %v1702_v21 = vsub.f32 0.0, %v1694_v29  ;;  %v1695_v46 = vand.u32 2147483647, %v3685_v24  ;;  %vm1679_vm4 = vcmp.ne.f32.partialorder %v3685_v24, %v3685_v24 }
 0x540   :  { %v1700_v22 = vsub.f32 0.0, %v1692_v63  ;;  %v1693_v62 = vand.u32 2147483647, %v3689_v20  ;;  %vm1677_vm7 = vcmp.ne.f32.partialorder %v3689_v20, %v3689_v20 }
 0x541   :  { %v1712_v3 = vmul.f32 1.442695, %v1702_v21  ;;  %v1703_v19 = vsub.f32 0.0, %v1695_v46 }
 0x542   :  { %v1708_v7 = vmul.f32 1.442695, %v1700_v22  ;;  %v1701_v15 = vsub.f32 0.0, %v1693_v62  ;;  %v1671_v22 = vmax.f32 %v3685_v24, 0.0 }
 0x543   :  { %2679 = vpow2.f32 %v1712_v3  ;;  %v1714_v30 = vmul.f32 1.442695, %v1703_v19 }
 0x544   :  { %2681 = vpow2.f32 %v1708_v7  ;;  %v1710_v27 = vmul.f32 1.442695, %v1701_v15 }
 0x545   :  { %2683 = vpow2.f32 %v1714_v30 }
 0x546   :  { %2685 = vpow2.f32 %v1710_v27 }
 0x54a   :  { %v2409_v35 = vpop.f32.mrb[20].mxu0 }
 0x54b   :  { %v1654_v36 = vadd.f32 %v2409_v35, %v2176_v57  ;;  %v1645_v43 = vpop.f32.mrb[21].mxu0 }
 0x54c   :  { %v2410_v39 = vpop.f32.mrb[22].mxu0  ;;  %v1646_v37 = vadd.f32 %v2176_v57, %v1645_v43 }
 0x54d   :  { %v2680_v8 = vpop.eup %2679  ;;  %v3697_v14 = vadd.f32 %v1654_v36, %v3472_v44  ;;  %v1648_v18 = vpop.f32.mrb[23].mxu0  ;;  %v1657_v5 = vadd.f32 %v2410_v39, %v2176_v57 }
 0x54e   :  { %v3693_v50 = vpop.eup %2681  ;;  %v1742_v41 = vadd.f32 1.0, %v2680_v8  ;;  %v1649_v49 = vadd.f32 %v2176_v57, %v1648_v18  ;;  %v1745_v31 = vmul.f32 -0.5, %v2680_v8  ;;  %v3701_v23 = vadd.f32 %v1646_v37, %v3475_v32 }
 0x54f   :  { %v2684_v11 = vpop.eup %2683  ;;  %v1724_v55 = vadd.f32 1.0, %v3693_v50  ;;  %v1698_v38 = vand.u32 2147483647, %v3697_v14  ;;  %v3704_v26 = vadd.f32 %v1657_v5, %v3479_v58  ;;  %v1748_v47 = vand.u32 2147483647, %v2680_v8 }
 0x550   :  { %2687 = vlog2.f32 %v1742_v41  ;;  %v1751_v33 = vadd.f32 1.0, %v2684_v11  ;;  %v1754_v42 = vmul.f32 -0.5, %v2684_v11  ;;  %v3707_v2 = vadd.f32 %v1649_v49, %v3484_v28  ;;  %v3709_v44 = vpop.eup %2685 }
 0x551   :  { %v1706_v0 = vsub.f32 0.0, %v1698_v38  ;;  %v1696_v51 = vand.u32 2147483647, %v3701_v23  ;;  %v1699_v59 = vand.u32 2147483647, %v3704_v26  ;;  %v1746_v1 = vadd.f32 1.0, %v1745_v31 }
 0x552   :  { %2689 = vlog2.f32 %v1751_v33  ;;  %v1697_v32 = vand.u32 2147483647, %v3707_v2  ;;  %v1727_v10 = vmul.f32 -0.5, %v3693_v50  ;;  %v1755_v58 = vadd.f32 1.0, %v1754_v42 }
 0x553   :  { %2691 = vlog2.f32 %v1724_v55  ;;  %v1720_v34 = vmul.f32 1.442695, %v1706_v0  ;;  %v1704_v53 = vsub.f32 0.0, %v1696_v51  ;;  %v1707_v48 = vsub.f32 0.0, %v1699_v59 }
 0x554   :  { %v1733_v28 = vadd.f32 1.0, %v3709_v44  ;;  %v1705_v45 = vsub.f32 0.0, %v1697_v32  ;;  %v1757_v17 = vand.u32 2147483647, %v2684_v11  ;;  %v1747_v56 = vmul.f32 %v2680_v8, %v1746_v1 }
 0x555   :  { %2693 = vpow2.f32 %v1720_v34  ;;  %v1716_v54 = vmul.f32 1.442695, %v1704_v53  ;;  %v1722_v57 = vmul.f32 1.442695, %v1707_v48  ;;  %v1728_v6 = vadd.f32 1.0, %v1727_v10 }
 0x556   :  { %2695 = vlog2.f32 %v1733_v28  ;;  %v1718_v25 = vmul.f32 1.442695, %v1705_v45  ;;  %vm1749_vm0 = vcmp.lt.f32.partialorder %v1748_v47, 0.0004427343  ;;  %v1756_v52 = vmul.f32 %v2684_v11, %v1755_v58 }
 0x557   :  { %2697 = vpow2.f32 %v1716_v54  ;;  %v1730_v12 = vand.u32 2147483647, %v3693_v50  ;;  %v1736_v63 = vmul.f32 -0.5, %v3709_v44  ;;  %vm1758_vm1 = vcmp.lt.f32.partialorder %v1757_v17, 0.0004427343 }
 0x558   :  { %2699 = vpow2.f32 %v1722_v57  ;;  %v1729_v19 = vmul.f32 %v3693_v50, %v1728_v6  ;;  %v1668_v8 = vmax.f32 %v3681_v40, 0.0  ;;  %v1739_v35 = vand.u32 2147483647, %v3709_v44 }
 0x559   :  { %2701 = vpow2.f32 %v1718_v25  ;;  %vm1731_vm3 = vcmp.lt.f32.partialorder %v1730_v12, 0.0004427343  ;;  %v1737_v27 = vadd.f32 1.0, %v1736_v63  ;;  %v1669_v5 = vmax.f32 %v3689_v20, 0.0 }
 0x55a   :  { %v2688_v4 = vpop.eup %2687  ;;  %vm1740_vm5 = vcmp.lt.f32.partialorder %v1739_v35, 0.0004427343  ;;  %v1672_v25 = vmax.f32 %v3701_v23, 0.0  ;;  %v1675_v12 = vmax.f32 %v3704_v26, 0.0  ;;  %vm1682_vm12 = vcmp.ne.f32.partialorder %v3697_v14, %v3697_v14 }
 0x55b   :  { %v1744_v60 = vmul.f32 0.6931472, %v2688_v4  ;;  %v1738_v55 = vmul.f32 %v3709_v44, %v1737_v27  ;;  %vm1680_vm13 = vcmp.ne.f32.partialorder %v3701_v23, %v3701_v23  ;;  %vm1683_vm14 = vcmp.ne.f32.partialorder %v3704_v26, %v3704_v26 }
 0x55c   :  { %v2690_v13 = vpop.eup %2689  ;;  %vm1681_vm15 = vcmp.ne.f32.partialorder %v3707_v2, %v3707_v2 }
 0x55d   :  { %v1750_v16 = vsel %vm1749_vm0, %v1747_v56, %v1744_v60  ;;  %v1753_v29 = vmul.f32 0.6931472, %v2690_v13  ;;  %v2692_v21 = vpop.eup %2691 }
 0x55e   :  { %v1798_v46 = vadd.f32 %v1750_v16, %v1670_v9  ;;  %v1726_v3 = vmul.f32 0.6931472, %v2692_v21 }
 0x55f   :  { %v1759_v62 = vsel %vm1758_vm1, %v1756_v52, %v1753_v29  ;;  %v2694_v11 = vpop.eup %2693 }
 0x560   :  { %v1806_v7 = vsel %vm1678_vm2, %v3678_v61, %v1798_v46  ;;  %v1799_v30 = vadd.f32 %v1759_v62, %v1671_v22  ;;  %v1732_v15 = vsel %vm1731_vm3, %v1729_v19, %v1726_v3  ;;  %v2696_v33 = vpop.eup %2695  ;;  %v1778_v39 = vadd.f32 1.0, %v2694_v11 }
 0x561   :  { %v2187_v36 = vadd.f32 -0.6931472, %v1806_v7  ;;  %v1796_v50 = vadd.f32 %v1732_v15, %v1668_v8  ;;  %v1735_v61 = vmul.f32 0.6931472, %v2696_v33  ;;  %v2698_v18 = vpop.eup %2697  ;;  %v1781_v51 = vmul.f32 -0.5, %v2694_v11 }
 0x562   :  { %v1807_v41 = vsel %vm1679_vm4, %v3685_v24, %v1799_v30  ;;  %2703 = vlog2.f32 %v1778_v39  ;;  %v2700_v49 = vpop.eup %2699  ;;  %v1760_v31 = vadd.f32 1.0, %v2698_v18  ;;  %v1763_v32 = vmul.f32 -0.5, %v2698_v18 }
 0x563   :  { %v2188_v43 = vadd.f32 -0.6931472, %v1807_v41  ;;  %v1741_v24 = vsel %vm1740_vm5, %v1738_v55, %v1735_v61  ;;  %v2702_v42 = vpop.eup %2701  ;;  %v1804_v0 = vsel %vm1676_vm6, %v3681_v40, %v1796_v50  ;;  %v1787_v47 = vadd.f32 1.0, %v2700_v49 }
 0x564   :  { %v1797_v38 = vadd.f32 %v1741_v24, %v1669_v5  ;;  %2705 = vlog2.f32 %v1760_v31  ;;  %v1769_v44 = vadd.f32 1.0, %v2702_v42  ;;  %v2185_v1 = vadd.f32 -0.6931472, %v1804_v0 }
 0x565   :  { %v1821_v37 = vpack.c.bf16 %v2188_v43, %v2187_v36  ;;  %2707 = vlog2.f32 %v1787_v47  ;;  %v1782_v58 = vadd.f32 1.0, %v1781_v51  ;;  %v1790_v53 = vmul.f32 -0.5, %v2700_v49 }
 0x566   :  { %v1805_v59 = vsel %vm1677_vm7, %v3689_v20, %v1797_v38  ;;  %2709 = vlog2.f32 %v1769_v44  ;;  %v1772_v48 = vmul.f32 -0.5, %v2702_v42  ;;  %v1784_v28 = vand.u32 2147483647, %v2694_v11 }
 0x567   :  { %v2186_v34 = vadd.f32 -0.6931472, %v1805_v59  ;;  %v1764_v9 = vadd.f32 1.0, %v1763_v32  ;;  %v1766_v45 = vand.u32 2147483647, %v2698_v18  ;;  %v1783_v17 = vmul.f32 %v2694_v11, %v1782_v58 }
 0x568   :  { %v1791_v54 = vadd.f32 1.0, %v1790_v53  ;;  %v1674_v20 = vmax.f32 %v3697_v14, 0.0  ;;  %v1773_v57 = vadd.f32 1.0, %v1772_v48  ;;  %vm1785_vm8 = vcmp.lt.f32.partialorder %v1784_v28, 0.0004427343 }
 0x569   :  { %v1820_v10 = vpack.c.bf16 %v2186_v34, %v2185_v1  ;;  %v1793_v60 = vand.u32 2147483647, %v2700_v49  ;;  %v1775_v6 = vand.u32 2147483647, %v2702_v42  ;;  %v1765_v29 = vmul.f32 %v2698_v18, %v1764_v9 }
 0x56a   :  { %v1673_v46 = vmax.f32 %v3707_v2, 0.0  ;;  %vm1767_vm9 = vcmp.lt.f32.partialorder %v1766_v45, 0.0004427343  ;;  %v1792_v62 = vmul.f32 %v2700_v49, %v1791_v54  ;;  %v1774_v7 = vmul.f32 %v2702_v42, %v1773_v57 }
 0x56b   :  { %2427 = vmatprep.mubr.bf16.mxu1 %v1820_v10  ;;  %vm1794_vm10 = vcmp.lt.f32.partialorder %v1793_v60, 0.0004427343  ;;  %vm1776_vm11 = vcmp.lt.f32.partialorder %v1775_v6, 0.0004427343 }
 0x56c   :  { %v2704_v40 = vpop.eup %2703  ;;  %2428 = vmatmul.mubr.bf16.vlgmr.msra.gmra.mrb[16].mxu1 %v1821_v37 }
 0x56d   :  { %v1780_v4 = vmul.f32 0.6931472, %v2704_v40 }
 0x56e   :  { %v2706_v56 = vpop.eup %2705 }
 0x56f   :  { %v1786_v13 = vsel %vm1785_vm8, %v1783_v17, %v1780_v4  ;;  %v2708_v52 = vpop.eup %2707  ;;  %v1762_v16 = vmul.f32 0.6931472, %v2706_v56 }
 0x570   :  { %v1802_v63 = vadd.f32 %v1786_v13, %v1674_v20  ;;  %v2710_v21 = vpop.eup %2709  ;;  %v1789_v22 = vmul.f32 0.6931472, %v2708_v52 }
 0x571   :  { %v1768_v3 = vsel %vm1767_vm9, %v1765_v29, %v1762_v16  ;;  %v1771_v19 = vmul.f32 0.6931472, %v2710_v21 }
 0x572   :  { %v1800_v30 = vadd.f32 %v1768_v3, %v1672_v25  ;;  %v1795_v15 = vsel %vm1794_vm10, %v1792_v62, %v1789_v22  ;;  %v1810_v41 = vsel %vm1682_vm12, %v3697_v14, %v1802_v63 }
 0x573   :  { %v1777_v27 = vsel %vm1776_vm11, %v1774_v7, %v1771_v19  ;;  %v1803_v8 = vadd.f32 %v1795_v15, %v1675_v12  ;;  %v2191_v33 = vadd.f32 -0.6931472, %v1810_v41 }
 0x574   :  { %v1801_v35 = vadd.f32 %v1777_v27, %v1673_v46  ;;  %v1808_v11 = vsel %vm1680_vm13, %v3701_v23, %v1800_v30 }
 0x575   :  { %v1811_v36 = vsel %vm1683_vm14, %v3704_v26, %v1803_v8  ;;  %v2189_v39 = vadd.f32 -0.6931472, %v1808_v11 }
 0x576   :  { %v1809_v43 = vsel %vm1681_vm15, %v3707_v2, %v1801_v35  ;;  %v2192_v50 = vadd.f32 -0.6931472, %v1811_v36 }
 0x577   :  { %v2190_v61 = vadd.f32 -0.6931472, %v1809_v43 }
 0x578   :  { %v1823_v55 = vpack.c.bf16 %v2192_v50, %v2191_v33 }
 0x579   :  { %v1822_v37 = vpack.c.bf16 %v2190_v61, %v2189_v39 }
 0x57b   :  { %2431 = vmatprep.mubr.bf16.mxu1 %v1822_v37 }
 0x57c   :  { %2432 = vmatmul.mubr.bf16.gmra.mrb[20].mxu1 %v1823_v55 }
 0x57d   :  { %2730 = shalt.err (!%p2727_p4)
}
 0x57e   :  { %s2731_s7 = scalar_lea.hbm %s3818_s5, 1024 }
 0x57f   :  { %p2732_p5 = scmp.ne.s32.totalorder %s3818_s5, %s2731_s7  ;;  %p2735_p6 = scmp.lt.u32.totalorder %s2731_s7, %s3818_s5 }
 0x581   :  { %p2737_p7 = pnand %p2735_p6, %p2732_p5 }
 0x583   :  { %2740 = shalt.err (!%p2737_p7)
}
 0x584   :  { %s2768_s11 = smov 128   ;;  %s2769_s12 = smov 8   ;;  %v2218_v14 = vld [vmem:[%s3816_s3 + $0x6] ss:$0 sm:$0xff]  ;;  %v2209_v23 = vld [vmem:[%s3816_s3 + $0x5] ss:$0 sm:$0xff] }
 0x585   :  { %2019 = dma.vmem_to_hbm [thread:$0]  %s2014_s28, 1024, %s3818_s5, [#allocation5], %s2768_s11, %s2768_s11, %s2769_s12  }
 0x586   :  { %v2711_v26 = vld [vmem:[%s3813_s0 + $0x10] sm:$0xff]  ;;  %v2712_v5 = vld [vmem:[%s3813_s0] sm:$0xff]  ;;  %v2713_v42 = vld [vmem:[%s3813_s0 + $0x18] sm:$0xff]  ;;  %s2770_s7 = smov [#allocation2]  }
 0x587   :  { %v1966_v2 = vmul.f32 %v2711_v26, %v2218_v14  ;;  %v1964_v49 = vmul.f32 %v2712_v5, %v2218_v14  ;;  %v1967_v38 = vmul.f32 %v2713_v42, %v2218_v14  ;;  %v2714_v44 = vld [vmem:[%s3813_s0 + $0x8] sm:$0xff]  ;;  %v2715_v48 = vld [vmem:[%s3813_s0 + $0x30] sm:$0xff]  ;;  %v2716_v9 = vld [vmem:[%s3813_s0 + $0x20] sm:$0xff]  ;;  %s2001_s8 = sshll.u32 %s2770_s7, 4  ;;  %s2002_s8 = int_to_ptr.vmem [resolvable:$true] %s2001_s8 }
 0x588   :  { %v1965_v51 = vmul.f32 %v2714_v44, %v2218_v14  ;;  %v1970_v28 = vmul.f32 %v2715_v48, %v2218_v14  ;;  %v1968_v45 = vmul.f32 %v2716_v9, %v2218_v14  ;;  %v2717_v54 = vld [vmem:[%s3813_s0 + $0x38] sm:$0xff]  ;;  %v2718_v56 = vld [vmem:[%s3813_s0 + $0x28] sm:$0xff]  ;;  %s2741_s1 = scalar_lea.vmem %s2002_s8, 1024  ;;  %p2746_p9 = scmp.lt.s32.totalorder %s2002_s8, %s2002_s8 }
 0x589   :  { %v1971_v20 = vmul.f32 %v2717_v54, %v2218_v14  ;;  %v1969_v25 = vmul.f32 %v2718_v56, %v2218_v14  ;;  %p2742_p8 = scmp.ne.s32.totalorder %s2002_s8, %s2741_s1  ;;  %p2747_p10 = scmp.lt.s32.totalorder %s2741_s1, %s2741_s1 }
 0x58b   :  { %p2748_p11 = por %p2747_p10, %p2746_p9 }
 0x58d   :  { %p2749_p12 = pnand %p2748_p11, %p2742_p8 }
 0x63f   :  { %v2429_v18 = vpop.f32.mrb[16].mxu1 }
 0x640   :  { %v1937_v24 = vadd.f32 %v2429_v18, %v2209_v23  ;;  %v1928_v31 = vpop.f32.mrb[17].mxu1 }
 0x641   :  { %v1929_v0 = vadd.f32 %v2209_v23, %v1928_v31  ;;  %v2430_v47 = vpop.f32.mrb[18].mxu1 }
 0x642   :  { %v1974_v59 = vadd.f32 %v1966_v2, %v1937_v24  ;;  %v1940_v1 = vadd.f32 %v2430_v47, %v2209_v23  ;;  %v1931_v34 = vpop.f32.mrb[19].mxu1 }
 0x643   :  { %v1972_v32 = vadd.f32 %v1964_v49, %v1929_v0  ;;  %v1932_v10 = vadd.f32 %v2209_v23, %v1931_v34 }
 0x644   :  { %1982 = vst [vmem:[#allocation2 + $0x10] sm:$0xff] %v1974_v59  ;;  %v1975_v58 = vadd.f32 %v1967_v38, %v1940_v1 }
 0x645   :  { %1980 = vst [vmem:[#allocation2] sm:$0xff] %v1972_v32  ;;  %v1973_v53 = vadd.f32 %v1965_v51, %v1932_v10 }
 0x646   :  { %1983 = vst [vmem:[#allocation2 + $0x18] sm:$0xff] %v1975_v58 }
 0x647   :  { %1981 = vst [vmem:[#allocation2 + $0x8] sm:$0xff] %v1973_v53 }
 0x64f   :  { %v2433_v40 = vpop.f32.mrb[20].mxu1 }
 0x650   :  { %v1953_v4 = vadd.f32 %v2433_v40, %v2209_v23  ;;  %v1944_v17 = vpop.f32.mrb[21].mxu1 }
 0x651   :  { %v1945_v57 = vadd.f32 %v2209_v23, %v1944_v17  ;;  %v2434_v60 = vpop.f32.mrb[22].mxu1 }
 0x652   :  { %v1978_v6 = vadd.f32 %v1970_v28, %v1953_v4  ;;  %v1956_v13 = vadd.f32 %v2434_v60, %v2209_v23  ;;  %v1947_v52 = vpop.f32.mrb[23].mxu1 }
 0x653   :  { %v1976_v12 = vadd.f32 %v1968_v45, %v1945_v57  ;;  %v1948_v16 = vadd.f32 %v2209_v23, %v1947_v52 }
 0x654   :  { %1986 = vst [vmem:[#allocation2 + $0x30] sm:$0xff] %v1978_v6  ;;  %v1979_v29 = vadd.f32 %v1971_v20, %v1956_v13 }
 0x655   :  { %1984 = vst [vmem:[#allocation2 + $0x20] sm:$0xff] %v1976_v12  ;;  %v1977_v63 = vadd.f32 %v1969_v25, %v1948_v16 }
 0x656   :  { %1987 = vst [vmem:[#allocation2 + $0x38] sm:$0xff] %v1979_v29 }
 0x657   :  { %1985 = vst [vmem:[#allocation2 + $0x28] sm:$0xff] %v1977_v63 }
 0x658   :  { %2752 = shalt.err (!%p2749_p12)
}
 0x659   :  { %s2753_s10 = scalar_lea.hbm %s3817_s4, 1024 }
 0x65a   :  { %p2754_p13 = scmp.ne.s32.totalorder %s3817_s4, %s2753_s10  ;;  %p2757_p0 = scmp.lt.u32.totalorder %s2753_s10, %s3817_s4 }
 0x65c   :  { %p2759_p1 = pnand %p2757_p0, %p2754_p13 }
 0x65e   :  { %2762 = shalt.err (!%p2759_p1)
}
 0x65f   :  { %2007 = dma.vmem_to_hbm [thread:$0]  %s2002_s8, 1024, %s3817_s4, [#allocation3], %s2768_s11, %s2768_s11, %s2769_s12  }
 0x660   :  { %2763 = dma.done.wait [#allocation3], 1024  }
 0x661   :  { %2764 = vsyncadd [#allocation3], 4294966272 }
 0x662   :  { %2765 = dma.done.wait [#allocation5], 1024  }
 0x663   :  { %2766 = vsyncadd [#allocation5], 4294966272 }
 0x664   :  { %2026 = vsyncpa [#allocation3], 1 }
 0x665   :  { %2027 = vsyncpa [#allocation5], 1 }

</bundles_post_ra>
